<compile_context>
chip_gen: v6e
topology: v6e:2x2x1
jax: 0.10.0
libtpu: 0.0.40
codegen_flags: <defaults>
</compile_context>

<pallas_src>
import jax
import jax.numpy as jnp
import numpy as np
from jax.experimental import pallas as pl
from jax.experimental.pallas import tpu as pltpu

EPS = 1e-8


# ----------------------------- fused Pallas kernel -------------------------- #

def _make_tcn_kernel(dilations, num_mic, F, B, H, O, L, K):
    """Build the fused whole-network kernel body (fully unrolled at trace time)."""
    assert K == 3, "dilated path of the module requires kernel=3 (padding == dilation)"
    assert L % 128 == 0 and H % 8 == 0 and F % 8 == 0 and B % 8 == 0 and O % 8 == 0
    assert all(0 < d < L for d in dilations)
    f32 = jnp.float32
    ML = num_mic * L           # mics stacked along the lane (time) axis

    def prelu(v, a):
        return jnp.where(v >= 0.0, v, a * v)

    def gn(v, g, b):
        # GroupNorm(1, C) over one (C, L) slab + per-channel affine (two-pass variance).
        m = jnp.mean(v)
        c = v - m
        var = jnp.mean(c * c)
        return c * jax.lax.rsqrt(var + EPS) * g + b

    def kernel(a1_ref, a2_ref, b2d_ref, w2d_ref, winv_ref, binv_ref, outa_ref,   # SMEM
               x_ref, ln_g_ref, ln_b_ref, bnw_ref, bnb_ref,                       # VMEM
               wc_ref, bc_ref, g1_ref, be1_ref, wd_ref, bd_ref,
               g2_ref, be2_ref, wres_ref, bres_ref, wskip_ref, bskip_ref,
               outw_ref, outb_ref,
               o_ref):
        ln_g = ln_g_ref[...].astype(f32)
        ln_b = ln_b_ref[...].astype(f32)
        bnw = bnw_ref[...].astype(f32)
        bnb = bnb_ref[...].astype(f32)

        # edge masks for the roll-based shifts (built once, reused by every block)
        rowH = jax.lax.broadcasted_iota(jnp.int32, (H, ML), 0)    # sublane (feature) index
        laneL = jax.lax.broadcasted_iota(jnp.int32, (H, L), 1)    # lane (time) index

        # ---- top-level per-mic GroupNorm(1, F); mics then stay lane-stacked ----------
        x_cat = jnp.concatenate(
            [gn(x_ref[m].astype(f32), ln_g, ln_b) for m in range(num_mic)], axis=1)  # (F, ML)
        # bottleneck 1x1 conv for all mics in ONE matmul
        out_cat = jnp.dot(bnw, x_cat, preferred_element_type=f32) + bnb              # (B, ML)
        skip_cat = jnp.zeros((B, ML), f32)

        # ---- residual blocks (unrolled; everything VMEM resident) --------------------
        for i, dil in enumerate(dilations):
            a1 = a1_ref[i]
            a2 = a2_ref[i]
            wc = wc_ref[i].astype(f32);      bc = bc_ref[i].astype(f32)
            g1 = g1_ref[i].astype(f32);      be1 = be1_ref[i].astype(f32)
            wd = wd_ref[i].astype(f32);      bd = bd_ref[i].astype(f32)
            g2 = g2_ref[i].astype(f32);      be2 = be2_ref[i].astype(f32)
            wres = wres_ref[i].astype(f32);  bres = bres_ref[i].astype(f32)
            wskp = wskip_ref[i].astype(f32); bskp = bskip_ref[i].astype(f32)

            # (a) per-mic 1x1 conv batched over mics (one matmul) -> per-mic PReLU+GN
            h_cat = jnp.dot(wc, out_cat, preferred_element_type=f32) + bc            # (H, ML)
            y_cat = jnp.concatenate(
                [gn(prelu(h_cat[:, m * L:(m + 1) * L], a1), g1, be1)
                 for m in range(num_mic)], axis=1)                                    # (H, ML)

            # (b) Conv2d(num_mic -> 1, kernel (3,1), padding (1,0)): 3-tap conv along the
            #     feature (sublane) axis summed over mics.  +/-1 shifts = XLU sublane roll
            #     with the wrapped row masked to zero.
            y_dn = jnp.where(rowH >= 1, pltpu.roll(y_cat, shift=1, axis=0), 0.0)         # y[h-1]
            y_up = jnp.where(rowH < H - 1, pltpu.roll(y_cat, shift=H - 1, axis=0), 0.0)  # y[h+1]
            acc = jnp.zeros((H, L), f32)
            for m in range(num_mic):
                s0 = m * L
                acc = (acc
                       + w2d_ref[i, 3 * m + 0] * y_dn[:, s0:s0 + L]
                       + w2d_ref[i, 3 * m + 1] * y_cat[:, s0:s0 + L]
                       + w2d_ref[i, 3 * m + 2] * y_up[:, s0:s0 + L])
            z = acc + b2d_ref[i]

            # (c) PReLU(a1) -> GN(g1, be1) on the single (H, L) slab
            z = gn(prelu(z, a1), g1, be1)

            # (d) depthwise dilated conv (K=3, padding=dil): taps at l-dil, l, l+dil,
            #     realised as XLU lane rolls with the wrapped lanes masked to zero.
            z_m = jnp.where(laneL >= dil, pltpu.roll(z, shift=dil, axis=1), 0.0)          # z[:, l-dil]
            z_p = jnp.where(laneL < L - dil, pltpu.roll(z, shift=L - dil, axis=1), 0.0)   # z[:, l+dil]
            dz = wd[:, 0:1] * z_m + wd[:, 1:2] * z + wd[:, 2:3] * z_p + bd

            # (e) PReLU(a2) -> GN(g2, be2)
            dz = gn(prelu(dz, a2), g2, be2)

            # (f) inversion Conv2d(1 -> num_mic, 1x1) -> PReLU(a1) -> GN(g1, be1) per mic,
            #     then residual / skip 1x1 convs batched over mics (two matmuls).
            u_cat = jnp.concatenate(
                [gn(prelu(winv_ref[i, m] * dz + binv_ref[i, m], a1), g1, be1)
                 for m in range(num_mic)], axis=1)                                    # (H, ML)
            out_cat = out_cat + jnp.dot(wres, u_cat, preferred_element_type=f32) + bres
            skip_cat = skip_cat + jnp.dot(wskp, u_cat, preferred_element_type=f32) + bskp

        # ---- output head: PReLU + 1x1 conv on the skip sum, all mics in one matmul ----
        ow = outw_ref[...].astype(f32)
        ob = outb_ref[...].astype(f32)
        fin = jnp.dot(ow, prelu(skip_cat, outa_ref[0]),
                      preferred_element_type=f32) + ob                                # (O, ML)
        for m in range(num_mic):
            o_ref[m] = fin[:, m * L:(m + 1) * L].astype(o_ref.dtype)

    return kernel


def tcn_d2_forward(params, x, dilations, kernel_size=3):
    """x: (num_mic, input_dim, L) -> (num_mic, output_dim, L); single fused pallas_call."""
    num_mic, F, L = x.shape
    B = params["bn_w"].shape[0]
    H = params["wc"].shape[1]
    O = params["out_w"].shape[0]
    nb = len(dilations)

    kern = _make_tcn_kernel(tuple(dilations), num_mic, F, B, H, O, L, kernel_size)
    smem = pl.BlockSpec(memory_space=pltpu.MemorySpace.SMEM)
    vmem = pl.BlockSpec(memory_space=pltpu.MemorySpace.VMEM)

    return pl.pallas_call(
        kern,
        out_shape=jax.ShapeDtypeStruct((num_mic, O, L), x.dtype),
        in_specs=([smem] * 7 + [vmem] * 19),
        out_specs=vmem,
    )(
        # SMEM scalar tables
        params["a1"], params["a2"], params["b2d"],
        params["w2d"].reshape(nb, num_mic * 3),
        params["winv"], params["binv"], params["out_a"],
        # VMEM tensors
        x, params["ln_g"], params["ln_b"], params["bn_w"], params["bn_b"],
        params["wc"], params["bc"], params["g1"], params["be1"],
        params["wd"], params["bd"], params["g2"], params["be2"],
        params["wres"], params["bres"], params["wskip"], params["bskip"],
        params["out_w"], params["out_b"],
    )


# ----------------------------- parameters ----------------------------------- #

def init_params(key, input_dim, output_dim, BN_dim, hidden_dim, layer, stack,
                kernel=3, num_mic=4):
    nb = layer * stack
    ks = jax.random.split(key, 24)

    def nrm(k, shape, scale=0.1):
        return (scale * jax.random.normal(k, shape)).astype(jnp.float32)

    F, B, H, O = input_dim, BN_dim, hidden_dim, output_dim
    return dict(
        # top-level GroupNorm(1, F) (noise added to the affine just to exercise the math)
        ln_g=1.0 + nrm(ks[0], (F, 1)), ln_b=nrm(ks[1], (F, 1)),
        # Conv1d(F -> B, 1)
        bn_w=nrm(ks[2], (B, F)), bn_b=nrm(ks[3], (B, 1)),
        # per-block parameters, stacked on a leading block axis
        wc=nrm(ks[4], (nb, H, B)), bc=nrm(ks[5], (nb, H, 1)),
        a1=jnp.full((nb,), 0.25, jnp.float32),
        g1=1.0 + nrm(ks[6], (nb, H, 1)), be1=nrm(ks[7], (nb, H, 1)),
        w2d=nrm(ks[8], (nb, num_mic, 3)), b2d=nrm(ks[9], (nb,)),
        wd=nrm(ks[10], (nb, H, kernel)), bd=nrm(ks[11], (nb, H, 1)),
        a2=jnp.full((nb,), 0.25, jnp.float32),
        g2=1.0 + nrm(ks[12], (nb, H, 1)), be2=nrm(ks[13], (nb, H, 1)),
        winv=nrm(ks[14], (nb, num_mic)), binv=nrm(ks[15], (nb, num_mic)),
        wres=nrm(ks[16], (nb, B, H)), bres=nrm(ks[17], (nb, B, 1)),
        wskip=nrm(ks[18], (nb, B, H)), bskip=nrm(ks[19], (nb, B, 1)),
        # output head: PReLU + Conv1d(B -> O, 1)
        out_a=jnp.full((1,), 0.25, jnp.float32),
        out_w=nrm(ks[20], (O, B)), out_b=nrm(ks[21], (O, 1)),
    )


# ----------------------------- pure-JAX reference --------------------------- #

def reference_forward(params, x, dilations, kernel_size=3):
    def gn(v, g, b):
        m = jnp.mean(v)
        c = v - m
        var = jnp.mean(c * c)
        return c / jnp.sqrt(var + EPS) * g + b

    def prelu(v, a):
        return jnp.where(v >= 0.0, v, a * v)

    mm = lambda a, b: jnp.dot(a, b, precision=jax.lax.Precision.HIGHEST)

    num_mic, F, L = x.shape
    K = kernel_size
    out = []
    for m in range(num_mic):
        xm = gn(x[m], params["ln_g"], params["ln_b"])
        out.append(mm(params["bn_w"], xm) + params["bn_b"])
    skip_sum = [jnp.zeros_like(out[0]) for _ in range(num_mic)]

    for i, d in enumerate(dilations):
        a1 = params["a1"][i]; a2 = params["a2"][i]
        g1 = params["g1"][i]; be1 = params["be1"][i]
        g2 = params["g2"][i]; be2 = params["be2"][i]
        wc = params["wc"][i]; bc = params["bc"][i]
        w2d = params["w2d"][i]; b2d = params["b2d"][i]
        wd = params["wd"][i]; bd = params["bd"][i]
        winv = params["winv"][i]; binv = params["binv"][i]
        wres = params["wres"][i]; bres = params["bres"][i]
        wskp = params["wskip"][i]; bskp = params["bskip"][i]

        y = [gn(prelu(mm(wc, out[m]) + bc, a1), g1, be1) for m in range(num_mic)]

        ys = jnp.stack(y)                                    # (num_mic, H, L)
        H = ys.shape[1]
        ypad = jnp.pad(ys, ((0, 0), (1, 1), (0, 0)))
        z = b2d + sum(w2d[m, kh] * ypad[m, kh:kh + H, :]
                      for m in range(num_mic) for kh in range(3))
        z = gn(prelu(z, a1), g1, be1)

        zpad = jnp.pad(z, ((0, 0), (d, d)))
        dz = sum(wd[:, k:k + 1] * zpad[:, k * d:k * d + L] for k in range(K)) + bd
        dz = gn(prelu(dz, a2), g2, be2)

        for m in range(num_mic):
            u = gn(prelu(winv[m] * dz + binv[m], a1), g1, be1)
            out[m] = out[m] + mm(wres, u) + bres
            skip_sum[m] = skip_sum[m] + mm(wskp, u) + bskp

    oa = params["out_a"][0]
    fin = [mm(params["out_w"], prelu(skip_sum[m], oa)) + params["out_b"]
           for m in range(num_mic)]
    return jnp.stack(fin)


# ----------------------------------- main ------------------------------------ #

if __name__ == "__main__":
    input_dim, output_dim = 16, 8
    BN_dim, hidden_dim = 8, 16
    layer, stack, kernel = 2, 1, 3
    num_mic = 4
    L = 128   # lane-dense time length (multiple of 128)

    dilations = [2 ** i for _ in range(stack) for i in range(layer)]   # dilated=True

    params = init_params(jax.random.PRNGKey(0), input_dim, output_dim,
                         BN_dim, hidden_dim, layer, stack, kernel, num_mic)
    x = jax.random.normal(jax.random.PRNGKey(0), (num_mic, input_dim, L), jnp.float32)

    fwd = jax.jit(lambda p, xx: tcn_d2_forward(p, xx, tuple(dilations), kernel))
    out = jax.block_until_ready(fwd(params, x))
    assert out.shape == (num_mic, output_dim, L), out.shape

    ref = jax.block_until_ready(reference_forward(params, x, dilations, kernel))
    np.testing.assert_allclose(np.asarray(out), np.asarray(ref), rtol=1e-3, atol=1e-3)

    print("KERNEL_OK")
</pallas_src>

<mosaic_0001>
module attributes {stable_mosaic.version = 11 : i64} {
  func.func @kernel(%arg0: memref<2xf32, #tpu.memory_space<smem>>, %arg1: memref<2xf32, #tpu.memory_space<smem>>, %arg2: memref<2xf32, #tpu.memory_space<smem>>, %arg3: memref<2x12xf32, #tpu.memory_space<smem>>, %arg4: memref<2x4xf32, #tpu.memory_space<smem>>, %arg5: memref<2x4xf32, #tpu.memory_space<smem>>, %arg6: memref<1xf32, #tpu.memory_space<smem>>, %arg7: memref<4x16x128xf32, #tpu.memory_space<vmem>>, %arg8: memref<16x1xf32, #tpu.memory_space<vmem>>, %arg9: memref<16x1xf32, #tpu.memory_space<vmem>>, %arg10: memref<8x16xf32, #tpu.memory_space<vmem>>, %arg11: memref<8x1xf32, #tpu.memory_space<vmem>>, %arg12: memref<2x16x8xf32, #tpu.memory_space<vmem>>, %arg13: memref<2x16x1xf32, #tpu.memory_space<vmem>>, %arg14: memref<2x16x1xf32, #tpu.memory_space<vmem>>, %arg15: memref<2x16x1xf32, #tpu.memory_space<vmem>>, %arg16: memref<2x16x3xf32, #tpu.memory_space<vmem>>, %arg17: memref<2x16x1xf32, #tpu.memory_space<vmem>>, %arg18: memref<2x16x1xf32, #tpu.memory_space<vmem>>, %arg19: memref<2x16x1xf32, #tpu.memory_space<vmem>>, %arg20: memref<2x8x16xf32, #tpu.memory_space<vmem>>, %arg21: memref<2x8x1xf32, #tpu.memory_space<vmem>>, %arg22: memref<2x8x16xf32, #tpu.memory_space<vmem>>, %arg23: memref<2x8x1xf32, #tpu.memory_space<vmem>>, %arg24: memref<8x8xf32, #tpu.memory_space<vmem>>, %arg25: memref<8x1xf32, #tpu.memory_space<vmem>>, %arg26: memref<4x8x128xf32, #tpu.memory_space<vmem>>) attributes {dimension_semantics = [], scalar_prefetch = 0 : i64, scratch_operands = 0 : i64, tpu.core_type = #tpu.core_type<tc>} {
    %c0 = arith.constant 0 : index
    %c0_0 = arith.constant 0 : index
    %0 = vector.load %arg8[%c0, %c0_0] : memref<16x1xf32, #tpu.memory_space<vmem>>, vector<16x1xf32>
    %c0_1 = arith.constant 0 : index
    %c0_2 = arith.constant 0 : index
    %1 = vector.load %arg9[%c0_1, %c0_2] : memref<16x1xf32, #tpu.memory_space<vmem>>, vector<16x1xf32>
    %c0_3 = arith.constant 0 : index
    %c0_4 = arith.constant 0 : index
    %2 = vector.load %arg10[%c0_3, %c0_4] : memref<8x16xf32, #tpu.memory_space<vmem>>, vector<8x16xf32>
    %c0_5 = arith.constant 0 : index
    %c0_6 = arith.constant 0 : index
    %3 = vector.load %arg11[%c0_5, %c0_6] : memref<8x1xf32, #tpu.memory_space<vmem>>, vector<8x1xf32>
    %4 = tpu.iota {dimensions = array<i32: 0>} : vector<16x512xi32>
    %5 = tpu.iota {dimensions = array<i32: 1>} : vector<16x128xi32>
    %c0_7 = arith.constant 0 : index
    %c0_8 = arith.constant 0 : index
    %c0_9 = arith.constant 0 : index
    %6 = vector.load %arg7[%c0_7, %c0_8, %c0_9] : memref<4x16x128xf32, #tpu.memory_space<vmem>>, vector<1x16x128xf32>
    %7 = vector.shape_cast %6 : vector<1x16x128xf32> to vector<16x128xf32>
    %8 = vector.shape_cast %7 : vector<16x128xf32> to vector<1x16x128xf32>
    %cst = arith.constant dense<0.000000e+00> : vector<1xf32>
    %9 = vector.multi_reduction <add>, %8, %cst [1, 2] : vector<1x16x128xf32> to vector<1xf32>
    %10 = vector.shape_cast %9 : vector<1xf32> to vector<1x1x1xf32>
    %11 = vector.extract %10[0, 0, 0] : f32 from vector<1x1x1xf32>
    %cst_10 = arith.constant 2.048000e+03 : f32
    %12 = arith.divf %11, %cst_10 : f32
    %13 = vector.broadcast %12 : f32 to vector<16x128xf32>
    %14 = arith.subf %7, %13 : vector<16x128xf32>
    %15 = arith.mulf %14, %14 : vector<16x128xf32>
    %16 = vector.shape_cast %15 : vector<16x128xf32> to vector<1x16x128xf32>
    %cst_11 = arith.constant dense<0.000000e+00> : vector<1xf32>
    %17 = vector.multi_reduction <add>, %16, %cst_11 [1, 2] : vector<1x16x128xf32> to vector<1xf32>
    %18 = vector.shape_cast %17 : vector<1xf32> to vector<1x1x1xf32>
    %19 = vector.extract %18[0, 0, 0] : f32 from vector<1x1x1xf32>
    %cst_12 = arith.constant 2.048000e+03 : f32
    %20 = arith.divf %19, %cst_12 : f32
    %cst_13 = arith.constant 9.99999993E-9 : f32
    %21 = arith.addf %20, %cst_13 : f32
    %22 = math.rsqrt %21 : f32
    %23 = vector.broadcast %22 : f32 to vector<16x128xf32>
    %24 = arith.mulf %14, %23 : vector<16x128xf32>
    %25 = vector.broadcast %0 : vector<16x1xf32> to vector<16x128xf32>
    %26 = arith.mulf %24, %25 : vector<16x128xf32>
    %27 = vector.broadcast %1 : vector<16x1xf32> to vector<16x128xf32>
    %28 = arith.addf %26, %27 : vector<16x128xf32>
    %c1 = arith.constant 1 : index
    %c0_14 = arith.constant 0 : index
    %c0_15 = arith.constant 0 : index
    %29 = vector.load %arg7[%c1, %c0_14, %c0_15] : memref<4x16x128xf32, #tpu.memory_space<vmem>>, vector<1x16x128xf32>
    %30 = vector.shape_cast %29 : vector<1x16x128xf32> to vector<16x128xf32>
    %31 = vector.shape_cast %30 : vector<16x128xf32> to vector<1x16x128xf32>
    %cst_16 = arith.constant dense<0.000000e+00> : vector<1xf32>
    %32 = vector.multi_reduction <add>, %31, %cst_16 [1, 2] : vector<1x16x128xf32> to vector<1xf32>
    %33 = vector.shape_cast %32 : vector<1xf32> to vector<1x1x1xf32>
    %34 = vector.extract %33[0, 0, 0] : f32 from vector<1x1x1xf32>
    %cst_17 = arith.constant 2.048000e+03 : f32
    %35 = arith.divf %34, %cst_17 : f32
    %36 = vector.broadcast %35 : f32 to vector<16x128xf32>
    %37 = arith.subf %30, %36 : vector<16x128xf32>
    %38 = arith.mulf %37, %37 : vector<16x128xf32>
    %39 = vector.shape_cast %38 : vector<16x128xf32> to vector<1x16x128xf32>
    %cst_18 = arith.constant dense<0.000000e+00> : vector<1xf32>
    %40 = vector.multi_reduction <add>, %39, %cst_18 [1, 2] : vector<1x16x128xf32> to vector<1xf32>
    %41 = vector.shape_cast %40 : vector<1xf32> to vector<1x1x1xf32>
    %42 = vector.extract %41[0, 0, 0] : f32 from vector<1x1x1xf32>
    %cst_19 = arith.constant 2.048000e+03 : f32
    %43 = arith.divf %42, %cst_19 : f32
    %cst_20 = arith.constant 9.99999993E-9 : f32
    %44 = arith.addf %43, %cst_20 : f32
    %45 = math.rsqrt %44 : f32
    %46 = vector.broadcast %45 : f32 to vector<16x128xf32>
    %47 = arith.mulf %37, %46 : vector<16x128xf32>
    %48 = vector.broadcast %0 : vector<16x1xf32> to vector<16x128xf32>
    %49 = arith.mulf %47, %48 : vector<16x128xf32>
    %50 = vector.broadcast %1 : vector<16x1xf32> to vector<16x128xf32>
    %51 = arith.addf %49, %50 : vector<16x128xf32>
    %c2 = arith.constant 2 : index
    %c0_21 = arith.constant 0 : index
    %c0_22 = arith.constant 0 : index
    %52 = vector.load %arg7[%c2, %c0_21, %c0_22] : memref<4x16x128xf32, #tpu.memory_space<vmem>>, vector<1x16x128xf32>
    %53 = vector.shape_cast %52 : vector<1x16x128xf32> to vector<16x128xf32>
    %54 = vector.shape_cast %53 : vector<16x128xf32> to vector<1x16x128xf32>
    %cst_23 = arith.constant dense<0.000000e+00> : vector<1xf32>
    %55 = vector.multi_reduction <add>, %54, %cst_23 [1, 2] : vector<1x16x128xf32> to vector<1xf32>
    %56 = vector.shape_cast %55 : vector<1xf32> to vector<1x1x1xf32>
    %57 = vector.extract %56[0, 0, 0] : f32 from vector<1x1x1xf32>
    %cst_24 = arith.constant 2.048000e+03 : f32
    %58 = arith.divf %57, %cst_24 : f32
    %59 = vector.broadcast %58 : f32 to vector<16x128xf32>
    %60 = arith.subf %53, %59 : vector<16x128xf32>
    %61 = arith.mulf %60, %60 : vector<16x128xf32>
    %62 = vector.shape_cast %61 : vector<16x128xf32> to vector<1x16x128xf32>
    %cst_25 = arith.constant dense<0.000000e+00> : vector<1xf32>
    %63 = vector.multi_reduction <add>, %62, %cst_25 [1, 2] : vector<1x16x128xf32> to vector<1xf32>
    %64 = vector.shape_cast %63 : vector<1xf32> to vector<1x1x1xf32>
    %65 = vector.extract %64[0, 0, 0] : f32 from vector<1x1x1xf32>
    %cst_26 = arith.constant 2.048000e+03 : f32
    %66 = arith.divf %65, %cst_26 : f32
    %cst_27 = arith.constant 9.99999993E-9 : f32
    %67 = arith.addf %66, %cst_27 : f32
    %68 = math.rsqrt %67 : f32
    %69 = vector.broadcast %68 : f32 to vector<16x128xf32>
    %70 = arith.mulf %60, %69 : vector<16x128xf32>
    %71 = vector.broadcast %0 : vector<16x1xf32> to vector<16x128xf32>
    %72 = arith.mulf %70, %71 : vector<16x128xf32>
    %73 = vector.broadcast %1 : vector<16x1xf32> to vector<16x128xf32>
    %74 = arith.addf %72, %73 : vector<16x128xf32>
    %c3 = arith.constant 3 : index
    %c0_28 = arith.constant 0 : index
    %c0_29 = arith.constant 0 : index
    %75 = vector.load %arg7[%c3, %c0_28, %c0_29] : memref<4x16x128xf32, #tpu.memory_space<vmem>>, vector<1x16x128xf32>
    %76 = vector.shape_cast %75 : vector<1x16x128xf32> to vector<16x128xf32>
    %77 = vector.shape_cast %76 : vector<16x128xf32> to vector<1x16x128xf32>
    %cst_30 = arith.constant dense<0.000000e+00> : vector<1xf32>
    %78 = vector.multi_reduction <add>, %77, %cst_30 [1, 2] : vector<1x16x128xf32> to vector<1xf32>
    %79 = vector.shape_cast %78 : vector<1xf32> to vector<1x1x1xf32>
    %80 = vector.extract %79[0, 0, 0] : f32 from vector<1x1x1xf32>
    %cst_31 = arith.constant 2.048000e+03 : f32
    %81 = arith.divf %80, %cst_31 : f32
    %82 = vector.broadcast %81 : f32 to vector<16x128xf32>
    %83 = arith.subf %76, %82 : vector<16x128xf32>
    %84 = arith.mulf %83, %83 : vector<16x128xf32>
    %85 = vector.shape_cast %84 : vector<16x128xf32> to vector<1x16x128xf32>
    %cst_32 = arith.constant dense<0.000000e+00> : vector<1xf32>
    %86 = vector.multi_reduction <add>, %85, %cst_32 [1, 2] : vector<1x16x128xf32> to vector<1xf32>
    %87 = vector.shape_cast %86 : vector<1xf32> to vector<1x1x1xf32>
    %88 = vector.extract %87[0, 0, 0] : f32 from vector<1x1x1xf32>
    %cst_33 = arith.constant 2.048000e+03 : f32
    %89 = arith.divf %88, %cst_33 : f32
    %cst_34 = arith.constant 9.99999993E-9 : f32
    %90 = arith.addf %89, %cst_34 : f32
    %91 = math.rsqrt %90 : f32
    %92 = vector.broadcast %91 : f32 to vector<16x128xf32>
    %93 = arith.mulf %83, %92 : vector<16x128xf32>
    %94 = vector.broadcast %0 : vector<16x1xf32> to vector<16x128xf32>
    %95 = arith.mulf %93, %94 : vector<16x128xf32>
    %96 = vector.broadcast %1 : vector<16x1xf32> to vector<16x128xf32>
    %97 = arith.addf %95, %96 : vector<16x128xf32>
    %98 = tpu.concatenate %28, %51, %74, %97 in 1 : vector<16x128xf32>, vector<16x128xf32>, vector<16x128xf32>, vector<16x128xf32> -> vector<16x512xf32>
    %cst_35 = arith.constant dense<0.000000e+00> : vector<8x512xf32>
    %99 = tpu.matmul %2, %98, %cst_35 {dimension_numbers = #tpu.dot_dimension_numbers<[1], [0], [0], [1], [0, 0, 1, 1], [], []>} : vector<8x16xf32>, vector<16x512xf32>, vector<8x512xf32> -> vector<8x512xf32>
    %100 = vector.broadcast %3 : vector<8x1xf32> to vector<8x512xf32>
    %101 = arith.addf %99, %100 : vector<8x512xf32>
    %cst_36 = arith.constant 0.000000e+00 : f32
    %102 = vector.broadcast %cst_36 : f32 to vector<8x512xf32>
    %c0_37 = arith.constant 0 : index
    %103 = memref.load %arg0[%c0_37] : memref<2xf32, #tpu.memory_space<smem>>
    %c0_38 = arith.constant 0 : index
    %104 = memref.load %arg1[%c0_38] : memref<2xf32, #tpu.memory_space<smem>>
    %c0_39 = arith.constant 0 : index
    %c0_40 = arith.constant 0 : index
    %c0_41 = arith.constant 0 : index
    %105 = vector.load %arg12[%c0_39, %c0_40, %c0_41] : memref<2x16x8xf32, #tpu.memory_space<vmem>>, vector<1x16x8xf32>
    %106 = vector.shape_cast %105 : vector<1x16x8xf32> to vector<16x8xf32>
    %c0_42 = arith.constant 0 : index
    %c0_43 = arith.constant 0 : index
    %c0_44 = arith.constant 0 : index
    %107 = vector.load %arg13[%c0_42, %c0_43, %c0_44] : memref<2x16x1xf32, #tpu.memory_space<vmem>>, vector<1x16x1xf32>
    %108 = vector.shape_cast %107 : vector<1x16x1xf32> to vector<16x1xf32>
    %c0_45 = arith.constant 0 : index
    %c0_46 = arith.constant 0 : index
    %c0_47 = arith.constant 0 : index
    %109 = vector.load %arg14[%c0_45, %c0_46, %c0_47] : memref<2x16x1xf32, #tpu.memory_space<vmem>>, vector<1x16x1xf32>
    %110 = vector.shape_cast %109 : vector<1x16x1xf32> to vector<16x1xf32>
    %c0_48 = arith.constant 0 : index
    %c0_49 = arith.constant 0 : index
    %c0_50 = arith.constant 0 : index
    %111 = vector.load %arg15[%c0_48, %c0_49, %c0_50] : memref<2x16x1xf32, #tpu.memory_space<vmem>>, vector<1x16x1xf32>
    %112 = vector.shape_cast %111 : vector<1x16x1xf32> to vector<16x1xf32>
    %c0_51 = arith.constant 0 : index
    %c0_52 = arith.constant 0 : index
    %c0_53 = arith.constant 0 : index
    %113 = vector.load %arg16[%c0_51, %c0_52, %c0_53] : memref<2x16x3xf32, #tpu.memory_space<vmem>>, vector<1x16x3xf32>
    %114 = vector.shape_cast %113 : vector<1x16x3xf32> to vector<16x3xf32>
    %c0_54 = arith.constant 0 : index
    %c0_55 = arith.constant 0 : index
    %c0_56 = arith.constant 0 : index
    %115 = vector.load %arg17[%c0_54, %c0_55, %c0_56] : memref<2x16x1xf32, #tpu.memory_space<vmem>>, vector<1x16x1xf32>
    %116 = vector.shape_cast %115 : vector<1x16x1xf32> to vector<16x1xf32>
    %c0_57 = arith.constant 0 : index
    %c0_58 = arith.constant 0 : index
    %c0_59 = arith.constant 0 : index
    %117 = vector.load %arg18[%c0_57, %c0_58, %c0_59] : memref<2x16x1xf32, #tpu.memory_space<vmem>>, vector<1x16x1xf32>
    %118 = vector.shape_cast %117 : vector<1x16x1xf32> to vector<16x1xf32>
    %c0_60 = arith.constant 0 : index
    %c0_61 = arith.constant 0 : index
    %c0_62 = arith.constant 0 : index
    %119 = vector.load %arg19[%c0_60, %c0_61, %c0_62] : memref<2x16x1xf32, #tpu.memory_space<vmem>>, vector<1x16x1xf32>
    %120 = vector.shape_cast %119 : vector<1x16x1xf32> to vector<16x1xf32>
    %c0_63 = arith.constant 0 : index
    %c0_64 = arith.constant 0 : index
    %c0_65 = arith.constant 0 : index
    %121 = vector.load %arg20[%c0_63, %c0_64, %c0_65] : memref<2x8x16xf32, #tpu.memory_space<vmem>>, vector<1x8x16xf32>
    %122 = vector.shape_cast %121 : vector<1x8x16xf32> to vector<8x16xf32>
    %c0_66 = arith.constant 0 : index
    %c0_67 = arith.constant 0 : index
    %c0_68 = arith.constant 0 : index
    %123 = vector.load %arg21[%c0_66, %c0_67, %c0_68] : memref<2x8x1xf32, #tpu.memory_space<vmem>>, vector<1x8x1xf32>
    %124 = vector.shape_cast %123 : vector<1x8x1xf32> to vector<8x1xf32>
    %c0_69 = arith.constant 0 : index
    %c0_70 = arith.constant 0 : index
    %c0_71 = arith.constant 0 : index
    %125 = vector.load %arg22[%c0_69, %c0_70, %c0_71] : memref<2x8x16xf32, #tpu.memory_space<vmem>>, vector<1x8x16xf32>
    %126 = vector.shape_cast %125 : vector<1x8x16xf32> to vector<8x16xf32>
    %c0_72 = arith.constant 0 : index
    %c0_73 = arith.constant 0 : index
    %c0_74 = arith.constant 0 : index
    %127 = vector.load %arg23[%c0_72, %c0_73, %c0_74] : memref<2x8x1xf32, #tpu.memory_space<vmem>>, vector<1x8x1xf32>
    %128 = vector.shape_cast %127 : vector<1x8x1xf32> to vector<8x1xf32>
    %cst_75 = arith.constant dense<0.000000e+00> : vector<16x512xf32>
    %129 = tpu.matmul %106, %101, %cst_75 {dimension_numbers = #tpu.dot_dimension_numbers<[1], [0], [0], [1], [0, 0, 1, 1], [], []>} : vector<16x8xf32>, vector<8x512xf32>, vector<16x512xf32> -> vector<16x512xf32>
    %130 = vector.broadcast %108 : vector<16x1xf32> to vector<16x512xf32>
    %131 = arith.addf %129, %130 : vector<16x512xf32>
    %132 = vector.extract_strided_slice %131 {offsets = [0, 0], sizes = [16, 128], strides = [1, 1]} : vector<16x512xf32> to vector<16x128xf32>
    %cst_76 = arith.constant 0.000000e+00 : f32
    %133 = vector.broadcast %cst_76 : f32 to vector<16x128xf32>
    %134 = arith.cmpf oge, %132, %133 : vector<16x128xf32>
    %135 = vector.broadcast %103 : f32 to vector<16x128xf32>
    %136 = arith.mulf %135, %132 : vector<16x128xf32>
    %137 = arith.select %134, %132, %136 : vector<16x128xi1>, vector<16x128xf32>
    %138 = vector.shape_cast %137 : vector<16x128xf32> to vector<1x16x128xf32>
    %cst_77 = arith.constant dense<0.000000e+00> : vector<1xf32>
    %139 = vector.multi_reduction <add>, %138, %cst_77 [1, 2] : vector<1x16x128xf32> to vector<1xf32>
    %140 = vector.shape_cast %139 : vector<1xf32> to vector<1x1x1xf32>
    %141 = vector.extract %140[0, 0, 0] : f32 from vector<1x1x1xf32>
    %cst_78 = arith.constant 2.048000e+03 : f32
    %142 = arith.divf %141, %cst_78 : f32
    %143 = vector.broadcast %142 : f32 to vector<16x128xf32>
    %144 = arith.subf %137, %143 : vector<16x128xf32>
    %145 = arith.mulf %144, %144 : vector<16x128xf32>
    %146 = vector.shape_cast %145 : vector<16x128xf32> to vector<1x16x128xf32>
    %cst_79 = arith.constant dense<0.000000e+00> : vector<1xf32>
    %147 = vector.multi_reduction <add>, %146, %cst_79 [1, 2] : vector<1x16x128xf32> to vector<1xf32>
    %148 = vector.shape_cast %147 : vector<1xf32> to vector<1x1x1xf32>
    %149 = vector.extract %148[0, 0, 0] : f32 from vector<1x1x1xf32>
    %cst_80 = arith.constant 2.048000e+03 : f32
    %150 = arith.divf %149, %cst_80 : f32
    %cst_81 = arith.constant 9.99999993E-9 : f32
    %151 = arith.addf %150, %cst_81 : f32
    %152 = math.rsqrt %151 : f32
    %153 = vector.broadcast %152 : f32 to vector<16x128xf32>
    %154 = arith.mulf %144, %153 : vector<16x128xf32>
    %155 = vector.broadcast %110 : vector<16x1xf32> to vector<16x128xf32>
    %156 = arith.mulf %154, %155 : vector<16x128xf32>
    %157 = vector.broadcast %112 : vector<16x1xf32> to vector<16x128xf32>
    %158 = arith.addf %156, %157 : vector<16x128xf32>
    %159 = vector.extract_strided_slice %131 {offsets = [0, 128], sizes = [16, 128], strides = [1, 1]} : vector<16x512xf32> to vector<16x128xf32>
    %cst_82 = arith.constant 0.000000e+00 : f32
    %160 = vector.broadcast %cst_82 : f32 to vector<16x128xf32>
    %161 = arith.cmpf oge, %159, %160 : vector<16x128xf32>
    %162 = vector.broadcast %103 : f32 to vector<16x128xf32>
    %163 = arith.mulf %162, %159 : vector<16x128xf32>
    %164 = arith.select %161, %159, %163 : vector<16x128xi1>, vector<16x128xf32>
    %165 = vector.shape_cast %164 : vector<16x128xf32> to vector<1x16x128xf32>
    %cst_83 = arith.constant dense<0.000000e+00> : vector<1xf32>
    %166 = vector.multi_reduction <add>, %165, %cst_83 [1, 2] : vector<1x16x128xf32> to vector<1xf32>
    %167 = vector.shape_cast %166 : vector<1xf32> to vector<1x1x1xf32>
    %168 = vector.extract %167[0, 0, 0] : f32 from vector<1x1x1xf32>
    %cst_84 = arith.constant 2.048000e+03 : f32
    %169 = arith.divf %168, %cst_84 : f32
    %170 = vector.broadcast %169 : f32 to vector<16x128xf32>
    %171 = arith.subf %164, %170 : vector<16x128xf32>
    %172 = arith.mulf %171, %171 : vector<16x128xf32>
    %173 = vector.shape_cast %172 : vector<16x128xf32> to vector<1x16x128xf32>
    %cst_85 = arith.constant dense<0.000000e+00> : vector<1xf32>
    %174 = vector.multi_reduction <add>, %173, %cst_85 [1, 2] : vector<1x16x128xf32> to vector<1xf32>
    %175 = vector.shape_cast %174 : vector<1xf32> to vector<1x1x1xf32>
    %176 = vector.extract %175[0, 0, 0] : f32 from vector<1x1x1xf32>
    %cst_86 = arith.constant 2.048000e+03 : f32
    %177 = arith.divf %176, %cst_86 : f32
    %cst_87 = arith.constant 9.99999993E-9 : f32
    %178 = arith.addf %177, %cst_87 : f32
    %179 = math.rsqrt %178 : f32
    %180 = vector.broadcast %179 : f32 to vector<16x128xf32>
    %181 = arith.mulf %171, %180 : vector<16x128xf32>
    %182 = vector.broadcast %110 : vector<16x1xf32> to vector<16x128xf32>
    %183 = arith.mulf %181, %182 : vector<16x128xf32>
    %184 = vector.broadcast %112 : vector<16x1xf32> to vector<16x128xf32>
    %185 = arith.addf %183, %184 : vector<16x128xf32>
    %186 = vector.extract_strided_slice %131 {offsets = [0, 256], sizes = [16, 128], strides = [1, 1]} : vector<16x512xf32> to vector<16x128xf32>
    %cst_88 = arith.constant 0.000000e+00 : f32
    %187 = vector.broadcast %cst_88 : f32 to vector<16x128xf32>
    %188 = arith.cmpf oge, %186, %187 : vector<16x128xf32>
    %189 = vector.broadcast %103 : f32 to vector<16x128xf32>
    %190 = arith.mulf %189, %186 : vector<16x128xf32>
    %191 = arith.select %188, %186, %190 : vector<16x128xi1>, vector<16x128xf32>
    %192 = vector.shape_cast %191 : vector<16x128xf32> to vector<1x16x128xf32>
    %cst_89 = arith.constant dense<0.000000e+00> : vector<1xf32>
    %193 = vector.multi_reduction <add>, %192, %cst_89 [1, 2] : vector<1x16x128xf32> to vector<1xf32>
    %194 = vector.shape_cast %193 : vector<1xf32> to vector<1x1x1xf32>
    %195 = vector.extract %194[0, 0, 0] : f32 from vector<1x1x1xf32>
    %cst_90 = arith.constant 2.048000e+03 : f32
    %196 = arith.divf %195, %cst_90 : f32
    %197 = vector.broadcast %196 : f32 to vector<16x128xf32>
    %198 = arith.subf %191, %197 : vector<16x128xf32>
    %199 = arith.mulf %198, %198 : vector<16x128xf32>
    %200 = vector.shape_cast %199 : vector<16x128xf32> to vector<1x16x128xf32>
    %cst_91 = arith.constant dense<0.000000e+00> : vector<1xf32>
    %201 = vector.multi_reduction <add>, %200, %cst_91 [1, 2] : vector<1x16x128xf32> to vector<1xf32>
    %202 = vector.shape_cast %201 : vector<1xf32> to vector<1x1x1xf32>
    %203 = vector.extract %202[0, 0, 0] : f32 from vector<1x1x1xf32>
    %cst_92 = arith.constant 2.048000e+03 : f32
    %204 = arith.divf %203, %cst_92 : f32
    %cst_93 = arith.constant 9.99999993E-9 : f32
    %205 = arith.addf %204, %cst_93 : f32
    %206 = math.rsqrt %205 : f32
    %207 = vector.broadcast %206 : f32 to vector<16x128xf32>
    %208 = arith.mulf %198, %207 : vector<16x128xf32>
    %209 = vector.broadcast %110 : vector<16x1xf32> to vector<16x128xf32>
    %210 = arith.mulf %208, %209 : vector<16x128xf32>
    %211 = vector.broadcast %112 : vector<16x1xf32> to vector<16x128xf32>
    %212 = arith.addf %210, %211 : vector<16x128xf32>
    %213 = vector.extract_strided_slice %131 {offsets = [0, 384], sizes = [16, 128], strides = [1, 1]} : vector<16x512xf32> to vector<16x128xf32>
    %cst_94 = arith.constant 0.000000e+00 : f32
    %214 = vector.broadcast %cst_94 : f32 to vector<16x128xf32>
    %215 = arith.cmpf oge, %213, %214 : vector<16x128xf32>
    %216 = vector.broadcast %103 : f32 to vector<16x128xf32>
    %217 = arith.mulf %216, %213 : vector<16x128xf32>
    %218 = arith.select %215, %213, %217 : vector<16x128xi1>, vector<16x128xf32>
    %219 = vector.shape_cast %218 : vector<16x128xf32> to vector<1x16x128xf32>
    %cst_95 = arith.constant dense<0.000000e+00> : vector<1xf32>
    %220 = vector.multi_reduction <add>, %219, %cst_95 [1, 2] : vector<1x16x128xf32> to vector<1xf32>
    %221 = vector.shape_cast %220 : vector<1xf32> to vector<1x1x1xf32>
    %222 = vector.extract %221[0, 0, 0] : f32 from vector<1x1x1xf32>
    %cst_96 = arith.constant 2.048000e+03 : f32
    %223 = arith.divf %222, %cst_96 : f32
    %224 = vector.broadcast %223 : f32 to vector<16x128xf32>
    %225 = arith.subf %218, %224 : vector<16x128xf32>
    %226 = arith.mulf %225, %225 : vector<16x128xf32>
    %227 = vector.shape_cast %226 : vector<16x128xf32> to vector<1x16x128xf32>
    %cst_97 = arith.constant dense<0.000000e+00> : vector<1xf32>
    %228 = vector.multi_reduction <add>, %227, %cst_97 [1, 2] : vector<1x16x128xf32> to vector<1xf32>
    %229 = vector.shape_cast %228 : vector<1xf32> to vector<1x1x1xf32>
    %230 = vector.extract %229[0, 0, 0] : f32 from vector<1x1x1xf32>
    %cst_98 = arith.constant 2.048000e+03 : f32
    %231 = arith.divf %230, %cst_98 : f32
    %cst_99 = arith.constant 9.99999993E-9 : f32
    %232 = arith.addf %231, %cst_99 : f32
    %233 = math.rsqrt %232 : f32
    %234 = vector.broadcast %233 : f32 to vector<16x128xf32>
    %235 = arith.mulf %225, %234 : vector<16x128xf32>
    %236 = vector.broadcast %110 : vector<16x1xf32> to vector<16x128xf32>
    %237 = arith.mulf %235, %236 : vector<16x128xf32>
    %238 = vector.broadcast %112 : vector<16x1xf32> to vector<16x128xf32>
    %239 = arith.addf %237, %238 : vector<16x128xf32>
    %240 = tpu.concatenate %158, %185, %212, %239 in 1 : vector<16x128xf32>, vector<16x128xf32>, vector<16x128xf32>, vector<16x128xf32> -> vector<16x512xf32>
    %c1_i32 = arith.constant 1 : i32
    %241 = vector.broadcast %c1_i32 : i32 to vector<16x512xi32>
    %242 = arith.cmpi sge, %4, %241 : vector<16x512xi32>
    %c1_i32_100 = arith.constant 1 : i32
    %243 = tpu.dynamic_rotate %240 by %c1_i32_100 dim 0 : vector<16x512xf32>, i32 -> vector<16x512xf32>
    %cst_101 = arith.constant 0.000000e+00 : f32
    %244 = vector.broadcast %cst_101 : f32 to vector<16x512xf32>
    %245 = arith.select %242, %243, %244 : vector<16x512xi1>, vector<16x512xf32>
    %c15_i32 = arith.constant 15 : i32
    %246 = vector.broadcast %c15_i32 : i32 to vector<16x512xi32>
    %247 = arith.cmpi slt, %4, %246 : vector<16x512xi32>
    %c15_i32_102 = arith.constant 15 : i32
    %248 = tpu.dynamic_rotate %240 by %c15_i32_102 dim 0 : vector<16x512xf32>, i32 -> vector<16x512xf32>
    %cst_103 = arith.constant 0.000000e+00 : f32
    %249 = vector.broadcast %cst_103 : f32 to vector<16x512xf32>
    %250 = arith.select %247, %248, %249 : vector<16x512xi1>, vector<16x512xf32>
    %cst_104 = arith.constant 0.000000e+00 : f32
    %251 = vector.broadcast %cst_104 : f32 to vector<16x128xf32>
    %c0_105 = arith.constant 0 : index
    %c0_106 = arith.constant 0 : index
    %252 = memref.load %arg3[%c0_105, %c0_106] : memref<2x12xf32, #tpu.memory_space<smem>>
    %253 = vector.extract_strided_slice %245 {offsets = [0, 0], sizes = [16, 128], strides = [1, 1]} : vector<16x512xf32> to vector<16x128xf32>
    %254 = vector.broadcast %252 : f32 to vector<16x128xf32>
    %255 = arith.mulf %254, %253 : vector<16x128xf32>
    %256 = arith.addf %251, %255 : vector<16x128xf32>
    %c0_107 = arith.constant 0 : index
    %c1_108 = arith.constant 1 : index
    %257 = memref.load %arg3[%c0_107, %c1_108] : memref<2x12xf32, #tpu.memory_space<smem>>
    %258 = vector.extract_strided_slice %240 {offsets = [0, 0], sizes = [16, 128], strides = [1, 1]} : vector<16x512xf32> to vector<16x128xf32>
    %259 = vector.broadcast %257 : f32 to vector<16x128xf32>
    %260 = arith.mulf %259, %258 : vector<16x128xf32>
    %261 = arith.addf %256, %260 : vector<16x128xf32>
    %c0_109 = arith.constant 0 : index
    %c2_110 = arith.constant 2 : index
    %262 = memref.load %arg3[%c0_109, %c2_110] : memref<2x12xf32, #tpu.memory_space<smem>>
    %263 = vector.extract_strided_slice %250 {offsets = [0, 0], sizes = [16, 128], strides = [1, 1]} : vector<16x512xf32> to vector<16x128xf32>
    %264 = vector.broadcast %262 : f32 to vector<16x128xf32>
    %265 = arith.mulf %264, %263 : vector<16x128xf32>
    %266 = arith.addf %261, %265 : vector<16x128xf32>
    %c0_111 = arith.constant 0 : index
    %c3_112 = arith.constant 3 : index
    %267 = memref.load %arg3[%c0_111, %c3_112] : memref<2x12xf32, #tpu.memory_space<smem>>
    %268 = vector.extract_strided_slice %245 {offsets = [0, 128], sizes = [16, 128], strides = [1, 1]} : vector<16x512xf32> to vector<16x128xf32>
    %269 = vector.broadcast %267 : f32 to vector<16x128xf32>
    %270 = arith.mulf %269, %268 : vector<16x128xf32>
    %271 = arith.addf %266, %270 : vector<16x128xf32>
    %c0_113 = arith.constant 0 : index
    %c4 = arith.constant 4 : index
    %272 = memref.load %arg3[%c0_113, %c4] : memref<2x12xf32, #tpu.memory_space<smem>>
    %273 = vector.extract_strided_slice %240 {offsets = [0, 128], sizes = [16, 128], strides = [1, 1]} : vector<16x512xf32> to vector<16x128xf32>
    %274 = vector.broadcast %272 : f32 to vector<16x128xf32>
    %275 = arith.mulf %274, %273 : vector<16x128xf32>
    %276 = arith.addf %271, %275 : vector<16x128xf32>
    %c0_114 = arith.constant 0 : index
    %c5 = arith.constant 5 : index
    %277 = memref.load %arg3[%c0_114, %c5] : memref<2x12xf32, #tpu.memory_space<smem>>
    %278 = vector.extract_strided_slice %250 {offsets = [0, 128], sizes = [16, 128], strides = [1, 1]} : vector<16x512xf32> to vector<16x128xf32>
    %279 = vector.broadcast %277 : f32 to vector<16x128xf32>
    %280 = arith.mulf %279, %278 : vector<16x128xf32>
    %281 = arith.addf %276, %280 : vector<16x128xf32>
    %c0_115 = arith.constant 0 : index
    %c6 = arith.constant 6 : index
    %282 = memref.load %arg3[%c0_115, %c6] : memref<2x12xf32, #tpu.memory_space<smem>>
    %283 = vector.extract_strided_slice %245 {offsets = [0, 256], sizes = [16, 128], strides = [1, 1]} : vector<16x512xf32> to vector<16x128xf32>
    %284 = vector.broadcast %282 : f32 to vector<16x128xf32>
    %285 = arith.mulf %284, %283 : vector<16x128xf32>
    %286 = arith.addf %281, %285 : vector<16x128xf32>
    %c0_116 = arith.constant 0 : index
    %c7 = arith.constant 7 : index
    %287 = memref.load %arg3[%c0_116, %c7] : memref<2x12xf32, #tpu.memory_space<smem>>
    %288 = vector.extract_strided_slice %240 {offsets = [0, 256], sizes = [16, 128], strides = [1, 1]} : vector<16x512xf32> to vector<16x128xf32>
    %289 = vector.broadcast %287 : f32 to vector<16x128xf32>
    %290 = arith.mulf %289, %288 : vector<16x128xf32>
    %291 = arith.addf %286, %290 : vector<16x128xf32>
    %c0_117 = arith.constant 0 : index
    %c8 = arith.constant 8 : index
    %292 = memref.load %arg3[%c0_117, %c8] : memref<2x12xf32, #tpu.memory_space<smem>>
    %293 = vector.extract_strided_slice %250 {offsets = [0, 256], sizes = [16, 128], strides = [1, 1]} : vector<16x512xf32> to vector<16x128xf32>
    %294 = vector.broadcast %292 : f32 to vector<16x128xf32>
    %295 = arith.mulf %294, %293 : vector<16x128xf32>
    %296 = arith.addf %291, %295 : vector<16x128xf32>
    %c0_118 = arith.constant 0 : index
    %c9 = arith.constant 9 : index
    %297 = memref.load %arg3[%c0_118, %c9] : memref<2x12xf32, #tpu.memory_space<smem>>
    %298 = vector.extract_strided_slice %245 {offsets = [0, 384], sizes = [16, 128], strides = [1, 1]} : vector<16x512xf32> to vector<16x128xf32>
    %299 = vector.broadcast %297 : f32 to vector<16x128xf32>
    %300 = arith.mulf %299, %298 : vector<16x128xf32>
    %301 = arith.addf %296, %300 : vector<16x128xf32>
    %c0_119 = arith.constant 0 : index
    %c10 = arith.constant 10 : index
    %302 = memref.load %arg3[%c0_119, %c10] : memref<2x12xf32, #tpu.memory_space<smem>>
    %303 = vector.extract_strided_slice %240 {offsets = [0, 384], sizes = [16, 128], strides = [1, 1]} : vector<16x512xf32> to vector<16x128xf32>
    %304 = vector.broadcast %302 : f32 to vector<16x128xf32>
    %305 = arith.mulf %304, %303 : vector<16x128xf32>
    %306 = arith.addf %301, %305 : vector<16x128xf32>
    %c0_120 = arith.constant 0 : index
    %c11 = arith.constant 11 : index
    %307 = memref.load %arg3[%c0_120, %c11] : memref<2x12xf32, #tpu.memory_space<smem>>
    %308 = vector.extract_strided_slice %250 {offsets = [0, 384], sizes = [16, 128], strides = [1, 1]} : vector<16x512xf32> to vector<16x128xf32>
    %309 = vector.broadcast %307 : f32 to vector<16x128xf32>
    %310 = arith.mulf %309, %308 : vector<16x128xf32>
    %311 = arith.addf %306, %310 : vector<16x128xf32>
    %c0_121 = arith.constant 0 : index
    %312 = memref.load %arg2[%c0_121] : memref<2xf32, #tpu.memory_space<smem>>
    %313 = vector.broadcast %312 : f32 to vector<16x128xf32>
    %314 = arith.addf %311, %313 : vector<16x128xf32>
    %cst_122 = arith.constant 0.000000e+00 : f32
    %315 = vector.broadcast %cst_122 : f32 to vector<16x128xf32>
    %316 = arith.cmpf oge, %314, %315 : vector<16x128xf32>
    %317 = vector.broadcast %103 : f32 to vector<16x128xf32>
    %318 = arith.mulf %317, %314 : vector<16x128xf32>
    %319 = arith.select %316, %314, %318 : vector<16x128xi1>, vector<16x128xf32>
    %320 = vector.shape_cast %319 : vector<16x128xf32> to vector<1x16x128xf32>
    %cst_123 = arith.constant dense<0.000000e+00> : vector<1xf32>
    %321 = vector.multi_reduction <add>, %320, %cst_123 [1, 2] : vector<1x16x128xf32> to vector<1xf32>
    %322 = vector.shape_cast %321 : vector<1xf32> to vector<1x1x1xf32>
    %323 = vector.extract %322[0, 0, 0] : f32 from vector<1x1x1xf32>
    %cst_124 = arith.constant 2.048000e+03 : f32
    %324 = arith.divf %323, %cst_124 : f32
    %325 = vector.broadcast %324 : f32 to vector<16x128xf32>
    %326 = arith.subf %319, %325 : vector<16x128xf32>
    %327 = arith.mulf %326, %326 : vector<16x128xf32>
    %328 = vector.shape_cast %327 : vector<16x128xf32> to vector<1x16x128xf32>
    %cst_125 = arith.constant dense<0.000000e+00> : vector<1xf32>
    %329 = vector.multi_reduction <add>, %328, %cst_125 [1, 2] : vector<1x16x128xf32> to vector<1xf32>
    %330 = vector.shape_cast %329 : vector<1xf32> to vector<1x1x1xf32>
    %331 = vector.extract %330[0, 0, 0] : f32 from vector<1x1x1xf32>
    %cst_126 = arith.constant 2.048000e+03 : f32
    %332 = arith.divf %331, %cst_126 : f32
    %cst_127 = arith.constant 9.99999993E-9 : f32
    %333 = arith.addf %332, %cst_127 : f32
    %334 = math.rsqrt %333 : f32
    %335 = vector.broadcast %334 : f32 to vector<16x128xf32>
    %336 = arith.mulf %326, %335 : vector<16x128xf32>
    %337 = vector.broadcast %110 : vector<16x1xf32> to vector<16x128xf32>
    %338 = arith.mulf %336, %337 : vector<16x128xf32>
    %339 = vector.broadcast %112 : vector<16x1xf32> to vector<16x128xf32>
    %340 = arith.addf %338, %339 : vector<16x128xf32>
    %c1_i32_128 = arith.constant 1 : i32
    %341 = vector.broadcast %c1_i32_128 : i32 to vector<16x128xi32>
    %342 = arith.cmpi sge, %5, %341 : vector<16x128xi32>
    %c1_i32_129 = arith.constant 1 : i32
    %343 = tpu.dynamic_rotate %340 by %c1_i32_129 dim 1 : vector<16x128xf32>, i32 -> vector<16x128xf32>
    %cst_130 = arith.constant 0.000000e+00 : f32
    %344 = vector.broadcast %cst_130 : f32 to vector<16x128xf32>
    %345 = arith.select %342, %343, %344 : vector<16x128xi1>, vector<16x128xf32>
    %c127_i32 = arith.constant 127 : i32
    %346 = vector.broadcast %c127_i32 : i32 to vector<16x128xi32>
    %347 = arith.cmpi slt, %5, %346 : vector<16x128xi32>
    %c127_i32_131 = arith.constant 127 : i32
    %348 = tpu.dynamic_rotate %340 by %c127_i32_131 dim 1 : vector<16x128xf32>, i32 -> vector<16x128xf32>
    %cst_132 = arith.constant 0.000000e+00 : f32
    %349 = vector.broadcast %cst_132 : f32 to vector<16x128xf32>
    %350 = arith.select %347, %348, %349 : vector<16x128xi1>, vector<16x128xf32>
    %351 = vector.extract_strided_slice %114 {offsets = [0, 0], sizes = [16, 1], strides = [1, 1]} : vector<16x3xf32> to vector<16x1xf32>
    %352 = vector.broadcast %351 : vector<16x1xf32> to vector<16x128xf32>
    %353 = arith.mulf %352, %345 : vector<16x128xf32>
    %354 = vector.extract_strided_slice %114 {offsets = [0, 1], sizes = [16, 1], strides = [1, 1]} : vector<16x3xf32> to vector<16x1xf32>
    %355 = vector.broadcast %354 : vector<16x1xf32> to vector<16x128xf32>
    %356 = arith.mulf %355, %340 : vector<16x128xf32>
    %357 = arith.addf %353, %356 : vector<16x128xf32>
    %358 = vector.extract_strided_slice %114 {offsets = [0, 2], sizes = [16, 1], strides = [1, 1]} : vector<16x3xf32> to vector<16x1xf32>
    %359 = vector.broadcast %358 : vector<16x1xf32> to vector<16x128xf32>
    %360 = arith.mulf %359, %350 : vector<16x128xf32>
    %361 = arith.addf %357, %360 : vector<16x128xf32>
    %362 = vector.broadcast %116 : vector<16x1xf32> to vector<16x128xf32>
    %363 = arith.addf %361, %362 : vector<16x128xf32>
    %cst_133 = arith.constant 0.000000e+00 : f32
    %364 = vector.broadcast %cst_133 : f32 to vector<16x128xf32>
    %365 = arith.cmpf oge, %363, %364 : vector<16x128xf32>
    %366 = vector.broadcast %104 : f32 to vector<16x128xf32>
    %367 = arith.mulf %366, %363 : vector<16x128xf32>
    %368 = arith.select %365, %363, %367 : vector<16x128xi1>, vector<16x128xf32>
    %369 = vector.shape_cast %368 : vector<16x128xf32> to vector<1x16x128xf32>
    %cst_134 = arith.constant dense<0.000000e+00> : vector<1xf32>
    %370 = vector.multi_reduction <add>, %369, %cst_134 [1, 2] : vector<1x16x128xf32> to vector<1xf32>
    %371 = vector.shape_cast %370 : vector<1xf32> to vector<1x1x1xf32>
    %372 = vector.extract %371[0, 0, 0] : f32 from vector<1x1x1xf32>
    %cst_135 = arith.constant 2.048000e+03 : f32
    %373 = arith.divf %372, %cst_135 : f32
    %374 = vector.broadcast %373 : f32 to vector<16x128xf32>
    %375 = arith.subf %368, %374 : vector<16x128xf32>
    %376 = arith.mulf %375, %375 : vector<16x128xf32>
    %377 = vector.shape_cast %376 : vector<16x128xf32> to vector<1x16x128xf32>
    %cst_136 = arith.constant dense<0.000000e+00> : vector<1xf32>
    %378 = vector.multi_reduction <add>, %377, %cst_136 [1, 2] : vector<1x16x128xf32> to vector<1xf32>
    %379 = vector.shape_cast %378 : vector<1xf32> to vector<1x1x1xf32>
    %380 = vector.extract %379[0, 0, 0] : f32 from vector<1x1x1xf32>
    %cst_137 = arith.constant 2.048000e+03 : f32
    %381 = arith.divf %380, %cst_137 : f32
    %cst_138 = arith.constant 9.99999993E-9 : f32
    %382 = arith.addf %381, %cst_138 : f32
    %383 = math.rsqrt %382 : f32
    %384 = vector.broadcast %383 : f32 to vector<16x128xf32>
    %385 = arith.mulf %375, %384 : vector<16x128xf32>
    %386 = vector.broadcast %118 : vector<16x1xf32> to vector<16x128xf32>
    %387 = arith.mulf %385, %386 : vector<16x128xf32>
    %388 = vector.broadcast %120 : vector<16x1xf32> to vector<16x128xf32>
    %389 = arith.addf %387, %388 : vector<16x128xf32>
    %c0_139 = arith.constant 0 : index
    %c0_140 = arith.constant 0 : index
    %390 = memref.load %arg4[%c0_139, %c0_140] : memref<2x4xf32, #tpu.memory_space<smem>>
    %391 = vector.broadcast %390 : f32 to vector<16x128xf32>
    %392 = arith.mulf %391, %389 : vector<16x128xf32>
    %c0_141 = arith.constant 0 : index
    %c0_142 = arith.constant 0 : index
    %393 = memref.load %arg5[%c0_141, %c0_142] : memref<2x4xf32, #tpu.memory_space<smem>>
    %394 = vector.broadcast %393 : f32 to vector<16x128xf32>
    %395 = arith.addf %392, %394 : vector<16x128xf32>
    %cst_143 = arith.constant 0.000000e+00 : f32
    %396 = vector.broadcast %cst_143 : f32 to vector<16x128xf32>
    %397 = arith.cmpf oge, %395, %396 : vector<16x128xf32>
    %398 = vector.broadcast %103 : f32 to vector<16x128xf32>
    %399 = arith.mulf %398, %395 : vector<16x128xf32>
    %400 = arith.select %397, %395, %399 : vector<16x128xi1>, vector<16x128xf32>
    %401 = vector.shape_cast %400 : vector<16x128xf32> to vector<1x16x128xf32>
    %cst_144 = arith.constant dense<0.000000e+00> : vector<1xf32>
    %402 = vector.multi_reduction <add>, %401, %cst_144 [1, 2] : vector<1x16x128xf32> to vector<1xf32>
    %403 = vector.shape_cast %402 : vector<1xf32> to vector<1x1x1xf32>
    %404 = vector.extract %403[0, 0, 0] : f32 from vector<1x1x1xf32>
    %cst_145 = arith.constant 2.048000e+03 : f32
    %405 = arith.divf %404, %cst_145 : f32
    %406 = vector.broadcast %405 : f32 to vector<16x128xf32>
    %407 = arith.subf %400, %406 : vector<16x128xf32>
    %408 = arith.mulf %407, %407 : vector<16x128xf32>
    %409 = vector.shape_cast %408 : vector<16x128xf32> to vector<1x16x128xf32>
    %cst_146 = arith.constant dense<0.000000e+00> : vector<1xf32>
    %410 = vector.multi_reduction <add>, %409, %cst_146 [1, 2] : vector<1x16x128xf32> to vector<1xf32>
    %411 = vector.shape_cast %410 : vector<1xf32> to vector<1x1x1xf32>
    %412 = vector.extract %411[0, 0, 0] : f32 from vector<1x1x1xf32>
    %cst_147 = arith.constant 2.048000e+03 : f32
    %413 = arith.divf %412, %cst_147 : f32
    %cst_148 = arith.constant 9.99999993E-9 : f32
    %414 = arith.addf %413, %cst_148 : f32
    %415 = math.rsqrt %414 : f32
    %416 = vector.broadcast %415 : f32 to vector<16x128xf32>
    %417 = arith.mulf %407, %416 : vector<16x128xf32>
    %418 = vector.broadcast %110 : vector<16x1xf32> to vector<16x128xf32>
    %419 = arith.mulf %417, %418 : vector<16x128xf32>
    %420 = vector.broadcast %112 : vector<16x1xf32> to vector<16x128xf32>
    %421 = arith.addf %419, %420 : vector<16x128xf32>
    %c0_149 = arith.constant 0 : index
    %c1_150 = arith.constant 1 : index
    %422 = memref.load %arg4[%c0_149, %c1_150] : memref<2x4xf32, #tpu.memory_space<smem>>
    %423 = vector.broadcast %422 : f32 to vector<16x128xf32>
    %424 = arith.mulf %423, %389 : vector<16x128xf32>
    %c0_151 = arith.constant 0 : index
    %c1_152 = arith.constant 1 : index
    %425 = memref.load %arg5[%c0_151, %c1_152] : memref<2x4xf32, #tpu.memory_space<smem>>
    %426 = vector.broadcast %425 : f32 to vector<16x128xf32>
    %427 = arith.addf %424, %426 : vector<16x128xf32>
    %cst_153 = arith.constant 0.000000e+00 : f32
    %428 = vector.broadcast %cst_153 : f32 to vector<16x128xf32>
    %429 = arith.cmpf oge, %427, %428 : vector<16x128xf32>
    %430 = vector.broadcast %103 : f32 to vector<16x128xf32>
    %431 = arith.mulf %430, %427 : vector<16x128xf32>
    %432 = arith.select %429, %427, %431 : vector<16x128xi1>, vector<16x128xf32>
    %433 = vector.shape_cast %432 : vector<16x128xf32> to vector<1x16x128xf32>
    %cst_154 = arith.constant dense<0.000000e+00> : vector<1xf32>
    %434 = vector.multi_reduction <add>, %433, %cst_154 [1, 2] : vector<1x16x128xf32> to vector<1xf32>
    %435 = vector.shape_cast %434 : vector<1xf32> to vector<1x1x1xf32>
    %436 = vector.extract %435[0, 0, 0] : f32 from vector<1x1x1xf32>
    %cst_155 = arith.constant 2.048000e+03 : f32
    %437 = arith.divf %436, %cst_155 : f32
    %438 = vector.broadcast %437 : f32 to vector<16x128xf32>
    %439 = arith.subf %432, %438 : vector<16x128xf32>
    %440 = arith.mulf %439, %439 : vector<16x128xf32>
    %441 = vector.shape_cast %440 : vector<16x128xf32> to vector<1x16x128xf32>
    %cst_156 = arith.constant dense<0.000000e+00> : vector<1xf32>
    %442 = vector.multi_reduction <add>, %441, %cst_156 [1, 2] : vector<1x16x128xf32> to vector<1xf32>
    %443 = vector.shape_cast %442 : vector<1xf32> to vector<1x1x1xf32>
    %444 = vector.extract %443[0, 0, 0] : f32 from vector<1x1x1xf32>
    %cst_157 = arith.constant 2.048000e+03 : f32
    %445 = arith.divf %444, %cst_157 : f32
    %cst_158 = arith.constant 9.99999993E-9 : f32
    %446 = arith.addf %445, %cst_158 : f32
    %447 = math.rsqrt %446 : f32
    %448 = vector.broadcast %447 : f32 to vector<16x128xf32>
    %449 = arith.mulf %439, %448 : vector<16x128xf32>
    %450 = vector.broadcast %110 : vector<16x1xf32> to vector<16x128xf32>
    %451 = arith.mulf %449, %450 : vector<16x128xf32>
    %452 = vector.broadcast %112 : vector<16x1xf32> to vector<16x128xf32>
    %453 = arith.addf %451, %452 : vector<16x128xf32>
    %c0_159 = arith.constant 0 : index
    %c2_160 = arith.constant 2 : index
    %454 = memref.load %arg4[%c0_159, %c2_160] : memref<2x4xf32, #tpu.memory_space<smem>>
    %455 = vector.broadcast %454 : f32 to vector<16x128xf32>
    %456 = arith.mulf %455, %389 : vector<16x128xf32>
    %c0_161 = arith.constant 0 : index
    %c2_162 = arith.constant 2 : index
    %457 = memref.load %arg5[%c0_161, %c2_162] : memref<2x4xf32, #tpu.memory_space<smem>>
    %458 = vector.broadcast %457 : f32 to vector<16x128xf32>
    %459 = arith.addf %456, %458 : vector<16x128xf32>
    %cst_163 = arith.constant 0.000000e+00 : f32
    %460 = vector.broadcast %cst_163 : f32 to vector<16x128xf32>
    %461 = arith.cmpf oge, %459, %460 : vector<16x128xf32>
    %462 = vector.broadcast %103 : f32 to vector<16x128xf32>
    %463 = arith.mulf %462, %459 : vector<16x128xf32>
    %464 = arith.select %461, %459, %463 : vector<16x128xi1>, vector<16x128xf32>
    %465 = vector.shape_cast %464 : vector<16x128xf32> to vector<1x16x128xf32>
    %cst_164 = arith.constant dense<0.000000e+00> : vector<1xf32>
    %466 = vector.multi_reduction <add>, %465, %cst_164 [1, 2] : vector<1x16x128xf32> to vector<1xf32>
    %467 = vector.shape_cast %466 : vector<1xf32> to vector<1x1x1xf32>
    %468 = vector.extract %467[0, 0, 0] : f32 from vector<1x1x1xf32>
    %cst_165 = arith.constant 2.048000e+03 : f32
    %469 = arith.divf %468, %cst_165 : f32
    %470 = vector.broadcast %469 : f32 to vector<16x128xf32>
    %471 = arith.subf %464, %470 : vector<16x128xf32>
    %472 = arith.mulf %471, %471 : vector<16x128xf32>
    %473 = vector.shape_cast %472 : vector<16x128xf32> to vector<1x16x128xf32>
    %cst_166 = arith.constant dense<0.000000e+00> : vector<1xf32>
    %474 = vector.multi_reduction <add>, %473, %cst_166 [1, 2] : vector<1x16x128xf32> to vector<1xf32>
    %475 = vector.shape_cast %474 : vector<1xf32> to vector<1x1x1xf32>
    %476 = vector.extract %475[0, 0, 0] : f32 from vector<1x1x1xf32>
    %cst_167 = arith.constant 2.048000e+03 : f32
    %477 = arith.divf %476, %cst_167 : f32
    %cst_168 = arith.constant 9.99999993E-9 : f32
    %478 = arith.addf %477, %cst_168 : f32
    %479 = math.rsqrt %478 : f32
    %480 = vector.broadcast %479 : f32 to vector<16x128xf32>
    %481 = arith.mulf %471, %480 : vector<16x128xf32>
    %482 = vector.broadcast %110 : vector<16x1xf32> to vector<16x128xf32>
    %483 = arith.mulf %481, %482 : vector<16x128xf32>
    %484 = vector.broadcast %112 : vector<16x1xf32> to vector<16x128xf32>
    %485 = arith.addf %483, %484 : vector<16x128xf32>
    %c0_169 = arith.constant 0 : index
    %c3_170 = arith.constant 3 : index
    %486 = memref.load %arg4[%c0_169, %c3_170] : memref<2x4xf32, #tpu.memory_space<smem>>
    %487 = vector.broadcast %486 : f32 to vector<16x128xf32>
    %488 = arith.mulf %487, %389 : vector<16x128xf32>
    %c0_171 = arith.constant 0 : index
    %c3_172 = arith.constant 3 : index
    %489 = memref.load %arg5[%c0_171, %c3_172] : memref<2x4xf32, #tpu.memory_space<smem>>
    %490 = vector.broadcast %489 : f32 to vector<16x128xf32>
    %491 = arith.addf %488, %490 : vector<16x128xf32>
    %cst_173 = arith.constant 0.000000e+00 : f32
    %492 = vector.broadcast %cst_173 : f32 to vector<16x128xf32>
    %493 = arith.cmpf oge, %491, %492 : vector<16x128xf32>
    %494 = vector.broadcast %103 : f32 to vector<16x128xf32>
    %495 = arith.mulf %494, %491 : vector<16x128xf32>
    %496 = arith.select %493, %491, %495 : vector<16x128xi1>, vector<16x128xf32>
    %497 = vector.shape_cast %496 : vector<16x128xf32> to vector<1x16x128xf32>
    %cst_174 = arith.constant dense<0.000000e+00> : vector<1xf32>
    %498 = vector.multi_reduction <add>, %497, %cst_174 [1, 2] : vector<1x16x128xf32> to vector<1xf32>
    %499 = vector.shape_cast %498 : vector<1xf32> to vector<1x1x1xf32>
    %500 = vector.extract %499[0, 0, 0] : f32 from vector<1x1x1xf32>
    %cst_175 = arith.constant 2.048000e+03 : f32
    %501 = arith.divf %500, %cst_175 : f32
    %502 = vector.broadcast %501 : f32 to vector<16x128xf32>
    %503 = arith.subf %496, %502 : vector<16x128xf32>
    %504 = arith.mulf %503, %503 : vector<16x128xf32>
    %505 = vector.shape_cast %504 : vector<16x128xf32> to vector<1x16x128xf32>
    %cst_176 = arith.constant dense<0.000000e+00> : vector<1xf32>
    %506 = vector.multi_reduction <add>, %505, %cst_176 [1, 2] : vector<1x16x128xf32> to vector<1xf32>
    %507 = vector.shape_cast %506 : vector<1xf32> to vector<1x1x1xf32>
    %508 = vector.extract %507[0, 0, 0] : f32 from vector<1x1x1xf32>
    %cst_177 = arith.constant 2.048000e+03 : f32
    %509 = arith.divf %508, %cst_177 : f32
    %cst_178 = arith.constant 9.99999993E-9 : f32
    %510 = arith.addf %509, %cst_178 : f32
    %511 = math.rsqrt %510 : f32
    %512 = vector.broadcast %511 : f32 to vector<16x128xf32>
    %513 = arith.mulf %503, %512 : vector<16x128xf32>
    %514 = vector.broadcast %110 : vector<16x1xf32> to vector<16x128xf32>
    %515 = arith.mulf %513, %514 : vector<16x128xf32>
    %516 = vector.broadcast %112 : vector<16x1xf32> to vector<16x128xf32>
    %517 = arith.addf %515, %516 : vector<16x128xf32>
    %518 = tpu.concatenate %421, %453, %485, %517 in 1 : vector<16x128xf32>, vector<16x128xf32>, vector<16x128xf32>, vector<16x128xf32> -> vector<16x512xf32>
    %cst_179 = arith.constant dense<0.000000e+00> : vector<8x512xf32>
    %519 = tpu.matmul %122, %518, %cst_179 {dimension_numbers = #tpu.dot_dimension_numbers<[1], [0], [0], [1], [0, 0, 1, 1], [], []>} : vector<8x16xf32>, vector<16x512xf32>, vector<8x512xf32> -> vector<8x512xf32>
    %520 = arith.addf %101, %519 : vector<8x512xf32>
    %521 = vector.broadcast %124 : vector<8x1xf32> to vector<8x512xf32>
    %522 = arith.addf %520, %521 : vector<8x512xf32>
    %cst_180 = arith.constant dense<0.000000e+00> : vector<8x512xf32>
    %523 = tpu.matmul %126, %518, %cst_180 {dimension_numbers = #tpu.dot_dimension_numbers<[1], [0], [0], [1], [0, 0, 1, 1], [], []>} : vector<8x16xf32>, vector<16x512xf32>, vector<8x512xf32> -> vector<8x512xf32>
    %524 = arith.addf %102, %523 : vector<8x512xf32>
    %525 = vector.broadcast %128 : vector<8x1xf32> to vector<8x512xf32>
    %526 = arith.addf %524, %525 : vector<8x512xf32>
    %c1_181 = arith.constant 1 : index
    %527 = memref.load %arg0[%c1_181] : memref<2xf32, #tpu.memory_space<smem>>
    %c1_182 = arith.constant 1 : index
    %528 = memref.load %arg1[%c1_182] : memref<2xf32, #tpu.memory_space<smem>>
    %c1_183 = arith.constant 1 : index
    %c0_184 = arith.constant 0 : index
    %c0_185 = arith.constant 0 : index
    %529 = vector.load %arg12[%c1_183, %c0_184, %c0_185] : memref<2x16x8xf32, #tpu.memory_space<vmem>>, vector<1x16x8xf32>
    %530 = vector.shape_cast %529 : vector<1x16x8xf32> to vector<16x8xf32>
    %c1_186 = arith.constant 1 : index
    %c0_187 = arith.constant 0 : index
    %c0_188 = arith.constant 0 : index
    %531 = vector.load %arg13[%c1_186, %c0_187, %c0_188] : memref<2x16x1xf32, #tpu.memory_space<vmem>>, vector<1x16x1xf32>
    %532 = vector.shape_cast %531 : vector<1x16x1xf32> to vector<16x1xf32>
    %c1_189 = arith.constant 1 : index
    %c0_190 = arith.constant 0 : index
    %c0_191 = arith.constant 0 : index
    %533 = vector.load %arg14[%c1_189, %c0_190, %c0_191] : memref<2x16x1xf32, #tpu.memory_space<vmem>>, vector<1x16x1xf32>
    %534 = vector.shape_cast %533 : vector<1x16x1xf32> to vector<16x1xf32>
    %c1_192 = arith.constant 1 : index
    %c0_193 = arith.constant 0 : index
    %c0_194 = arith.constant 0 : index
    %535 = vector.load %arg15[%c1_192, %c0_193, %c0_194] : memref<2x16x1xf32, #tpu.memory_space<vmem>>, vector<1x16x1xf32>
    %536 = vector.shape_cast %535 : vector<1x16x1xf32> to vector<16x1xf32>
    %c1_195 = arith.constant 1 : index
    %c0_196 = arith.constant 0 : index
    %c0_197 = arith.constant 0 : index
    %537 = vector.load %arg16[%c1_195, %c0_196, %c0_197] : memref<2x16x3xf32, #tpu.memory_space<vmem>>, vector<1x16x3xf32>
    %538 = vector.shape_cast %537 : vector<1x16x3xf32> to vector<16x3xf32>
    %c1_198 = arith.constant 1 : index
    %c0_199 = arith.constant 0 : index
    %c0_200 = arith.constant 0 : index
    %539 = vector.load %arg17[%c1_198, %c0_199, %c0_200] : memref<2x16x1xf32, #tpu.memory_space<vmem>>, vector<1x16x1xf32>
    %540 = vector.shape_cast %539 : vector<1x16x1xf32> to vector<16x1xf32>
    %c1_201 = arith.constant 1 : index
    %c0_202 = arith.constant 0 : index
    %c0_203 = arith.constant 0 : index
    %541 = vector.load %arg18[%c1_201, %c0_202, %c0_203] : memref<2x16x1xf32, #tpu.memory_space<vmem>>, vector<1x16x1xf32>
    %542 = vector.shape_cast %541 : vector<1x16x1xf32> to vector<16x1xf32>
    %c1_204 = arith.constant 1 : index
    %c0_205 = arith.constant 0 : index
    %c0_206 = arith.constant 0 : index
    %543 = vector.load %arg19[%c1_204, %c0_205, %c0_206] : memref<2x16x1xf32, #tpu.memory_space<vmem>>, vector<1x16x1xf32>
    %544 = vector.shape_cast %543 : vector<1x16x1xf32> to vector<16x1xf32>
    %c1_207 = arith.constant 1 : index
    %c0_208 = arith.constant 0 : index
    %c0_209 = arith.constant 0 : index
    %545 = vector.load %arg22[%c1_207, %c0_208, %c0_209] : memref<2x8x16xf32, #tpu.memory_space<vmem>>, vector<1x8x16xf32>
    %546 = vector.shape_cast %545 : vector<1x8x16xf32> to vector<8x16xf32>
    %c1_210 = arith.constant 1 : index
    %c0_211 = arith.constant 0 : index
    %c0_212 = arith.constant 0 : index
    %547 = vector.load %arg23[%c1_210, %c0_211, %c0_212] : memref<2x8x1xf32, #tpu.memory_space<vmem>>, vector<1x8x1xf32>
    %548 = vector.shape_cast %547 : vector<1x8x1xf32> to vector<8x1xf32>
    %cst_213 = arith.constant dense<0.000000e+00> : vector<16x512xf32>
    %549 = tpu.matmul %530, %522, %cst_213 {dimension_numbers = #tpu.dot_dimension_numbers<[1], [0], [0], [1], [0, 0, 1, 1], [], []>} : vector<16x8xf32>, vector<8x512xf32>, vector<16x512xf32> -> vector<16x512xf32>
    %550 = vector.broadcast %532 : vector<16x1xf32> to vector<16x512xf32>
    %551 = arith.addf %549, %550 : vector<16x512xf32>
    %552 = vector.extract_strided_slice %551 {offsets = [0, 0], sizes = [16, 128], strides = [1, 1]} : vector<16x512xf32> to vector<16x128xf32>
    %cst_214 = arith.constant 0.000000e+00 : f32
    %553 = vector.broadcast %cst_214 : f32 to vector<16x128xf32>
    %554 = arith.cmpf oge, %552, %553 : vector<16x128xf32>
    %555 = vector.broadcast %527 : f32 to vector<16x128xf32>
    %556 = arith.mulf %555, %552 : vector<16x128xf32>
    %557 = arith.select %554, %552, %556 : vector<16x128xi1>, vector<16x128xf32>
    %558 = vector.shape_cast %557 : vector<16x128xf32> to vector<1x16x128xf32>
    %cst_215 = arith.constant dense<0.000000e+00> : vector<1xf32>
    %559 = vector.multi_reduction <add>, %558, %cst_215 [1, 2] : vector<1x16x128xf32> to vector<1xf32>
    %560 = vector.shape_cast %559 : vector<1xf32> to vector<1x1x1xf32>
    %561 = vector.extract %560[0, 0, 0] : f32 from vector<1x1x1xf32>
    %cst_216 = arith.constant 2.048000e+03 : f32
    %562 = arith.divf %561, %cst_216 : f32
    %563 = vector.broadcast %562 : f32 to vector<16x128xf32>
    %564 = arith.subf %557, %563 : vector<16x128xf32>
    %565 = arith.mulf %564, %564 : vector<16x128xf32>
    %566 = vector.shape_cast %565 : vector<16x128xf32> to vector<1x16x128xf32>
    %cst_217 = arith.constant dense<0.000000e+00> : vector<1xf32>
    %567 = vector.multi_reduction <add>, %566, %cst_217 [1, 2] : vector<1x16x128xf32> to vector<1xf32>
    %568 = vector.shape_cast %567 : vector<1xf32> to vector<1x1x1xf32>
    %569 = vector.extract %568[0, 0, 0] : f32 from vector<1x1x1xf32>
    %cst_218 = arith.constant 2.048000e+03 : f32
    %570 = arith.divf %569, %cst_218 : f32
    %cst_219 = arith.constant 9.99999993E-9 : f32
    %571 = arith.addf %570, %cst_219 : f32
    %572 = math.rsqrt %571 : f32
    %573 = vector.broadcast %572 : f32 to vector<16x128xf32>
    %574 = arith.mulf %564, %573 : vector<16x128xf32>
    %575 = vector.broadcast %534 : vector<16x1xf32> to vector<16x128xf32>
    %576 = arith.mulf %574, %575 : vector<16x128xf32>
    %577 = vector.broadcast %536 : vector<16x1xf32> to vector<16x128xf32>
    %578 = arith.addf %576, %577 : vector<16x128xf32>
    %579 = vector.extract_strided_slice %551 {offsets = [0, 128], sizes = [16, 128], strides = [1, 1]} : vector<16x512xf32> to vector<16x128xf32>
    %cst_220 = arith.constant 0.000000e+00 : f32
    %580 = vector.broadcast %cst_220 : f32 to vector<16x128xf32>
    %581 = arith.cmpf oge, %579, %580 : vector<16x128xf32>
    %582 = vector.broadcast %527 : f32 to vector<16x128xf32>
    %583 = arith.mulf %582, %579 : vector<16x128xf32>
    %584 = arith.select %581, %579, %583 : vector<16x128xi1>, vector<16x128xf32>
    %585 = vector.shape_cast %584 : vector<16x128xf32> to vector<1x16x128xf32>
    %cst_221 = arith.constant dense<0.000000e+00> : vector<1xf32>
    %586 = vector.multi_reduction <add>, %585, %cst_221 [1, 2] : vector<1x16x128xf32> to vector<1xf32>
    %587 = vector.shape_cast %586 : vector<1xf32> to vector<1x1x1xf32>
    %588 = vector.extract %587[0, 0, 0] : f32 from vector<1x1x1xf32>
    %cst_222 = arith.constant 2.048000e+03 : f32
    %589 = arith.divf %588, %cst_222 : f32
    %590 = vector.broadcast %589 : f32 to vector<16x128xf32>
    %591 = arith.subf %584, %590 : vector<16x128xf32>
    %592 = arith.mulf %591, %591 : vector<16x128xf32>
    %593 = vector.shape_cast %592 : vector<16x128xf32> to vector<1x16x128xf32>
    %cst_223 = arith.constant dense<0.000000e+00> : vector<1xf32>
    %594 = vector.multi_reduction <add>, %593, %cst_223 [1, 2] : vector<1x16x128xf32> to vector<1xf32>
    %595 = vector.shape_cast %594 : vector<1xf32> to vector<1x1x1xf32>
    %596 = vector.extract %595[0, 0, 0] : f32 from vector<1x1x1xf32>
    %cst_224 = arith.constant 2.048000e+03 : f32
    %597 = arith.divf %596, %cst_224 : f32
    %cst_225 = arith.constant 9.99999993E-9 : f32
    %598 = arith.addf %597, %cst_225 : f32
    %599 = math.rsqrt %598 : f32
    %600 = vector.broadcast %599 : f32 to vector<16x128xf32>
    %601 = arith.mulf %591, %600 : vector<16x128xf32>
    %602 = vector.broadcast %534 : vector<16x1xf32> to vector<16x128xf32>
    %603 = arith.mulf %601, %602 : vector<16x128xf32>
    %604 = vector.broadcast %536 : vector<16x1xf32> to vector<16x128xf32>
    %605 = arith.addf %603, %604 : vector<16x128xf32>
    %606 = vector.extract_strided_slice %551 {offsets = [0, 256], sizes = [16, 128], strides = [1, 1]} : vector<16x512xf32> to vector<16x128xf32>
    %cst_226 = arith.constant 0.000000e+00 : f32
    %607 = vector.broadcast %cst_226 : f32 to vector<16x128xf32>
    %608 = arith.cmpf oge, %606, %607 : vector<16x128xf32>
    %609 = vector.broadcast %527 : f32 to vector<16x128xf32>
    %610 = arith.mulf %609, %606 : vector<16x128xf32>
    %611 = arith.select %608, %606, %610 : vector<16x128xi1>, vector<16x128xf32>
    %612 = vector.shape_cast %611 : vector<16x128xf32> to vector<1x16x128xf32>
    %cst_227 = arith.constant dense<0.000000e+00> : vector<1xf32>
    %613 = vector.multi_reduction <add>, %612, %cst_227 [1, 2] : vector<1x16x128xf32> to vector<1xf32>
    %614 = vector.shape_cast %613 : vector<1xf32> to vector<1x1x1xf32>
    %615 = vector.extract %614[0, 0, 0] : f32 from vector<1x1x1xf32>
    %cst_228 = arith.constant 2.048000e+03 : f32
    %616 = arith.divf %615, %cst_228 : f32
    %617 = vector.broadcast %616 : f32 to vector<16x128xf32>
    %618 = arith.subf %611, %617 : vector<16x128xf32>
    %619 = arith.mulf %618, %618 : vector<16x128xf32>
    %620 = vector.shape_cast %619 : vector<16x128xf32> to vector<1x16x128xf32>
    %cst_229 = arith.constant dense<0.000000e+00> : vector<1xf32>
    %621 = vector.multi_reduction <add>, %620, %cst_229 [1, 2] : vector<1x16x128xf32> to vector<1xf32>
    %622 = vector.shape_cast %621 : vector<1xf32> to vector<1x1x1xf32>
    %623 = vector.extract %622[0, 0, 0] : f32 from vector<1x1x1xf32>
    %cst_230 = arith.constant 2.048000e+03 : f32
    %624 = arith.divf %623, %cst_230 : f32
    %cst_231 = arith.constant 9.99999993E-9 : f32
    %625 = arith.addf %624, %cst_231 : f32
    %626 = math.rsqrt %625 : f32
    %627 = vector.broadcast %626 : f32 to vector<16x128xf32>
    %628 = arith.mulf %618, %627 : vector<16x128xf32>
    %629 = vector.broadcast %534 : vector<16x1xf32> to vector<16x128xf32>
    %630 = arith.mulf %628, %629 : vector<16x128xf32>
    %631 = vector.broadcast %536 : vector<16x1xf32> to vector<16x128xf32>
    %632 = arith.addf %630, %631 : vector<16x128xf32>
    %633 = vector.extract_strided_slice %551 {offsets = [0, 384], sizes = [16, 128], strides = [1, 1]} : vector<16x512xf32> to vector<16x128xf32>
    %cst_232 = arith.constant 0.000000e+00 : f32
    %634 = vector.broadcast %cst_232 : f32 to vector<16x128xf32>
    %635 = arith.cmpf oge, %633, %634 : vector<16x128xf32>
    %636 = vector.broadcast %527 : f32 to vector<16x128xf32>
    %637 = arith.mulf %636, %633 : vector<16x128xf32>
    %638 = arith.select %635, %633, %637 : vector<16x128xi1>, vector<16x128xf32>
    %639 = vector.shape_cast %638 : vector<16x128xf32> to vector<1x16x128xf32>
    %cst_233 = arith.constant dense<0.000000e+00> : vector<1xf32>
    %640 = vector.multi_reduction <add>, %639, %cst_233 [1, 2] : vector<1x16x128xf32> to vector<1xf32>
    %641 = vector.shape_cast %640 : vector<1xf32> to vector<1x1x1xf32>
    %642 = vector.extract %641[0, 0, 0] : f32 from vector<1x1x1xf32>
    %cst_234 = arith.constant 2.048000e+03 : f32
    %643 = arith.divf %642, %cst_234 : f32
    %644 = vector.broadcast %643 : f32 to vector<16x128xf32>
    %645 = arith.subf %638, %644 : vector<16x128xf32>
    %646 = arith.mulf %645, %645 : vector<16x128xf32>
    %647 = vector.shape_cast %646 : vector<16x128xf32> to vector<1x16x128xf32>
    %cst_235 = arith.constant dense<0.000000e+00> : vector<1xf32>
    %648 = vector.multi_reduction <add>, %647, %cst_235 [1, 2] : vector<1x16x128xf32> to vector<1xf32>
    %649 = vector.shape_cast %648 : vector<1xf32> to vector<1x1x1xf32>
    %650 = vector.extract %649[0, 0, 0] : f32 from vector<1x1x1xf32>
    %cst_236 = arith.constant 2.048000e+03 : f32
    %651 = arith.divf %650, %cst_236 : f32
    %cst_237 = arith.constant 9.99999993E-9 : f32
    %652 = arith.addf %651, %cst_237 : f32
    %653 = math.rsqrt %652 : f32
    %654 = vector.broadcast %653 : f32 to vector<16x128xf32>
    %655 = arith.mulf %645, %654 : vector<16x128xf32>
    %656 = vector.broadcast %534 : vector<16x1xf32> to vector<16x128xf32>
    %657 = arith.mulf %655, %656 : vector<16x128xf32>
    %658 = vector.broadcast %536 : vector<16x1xf32> to vector<16x128xf32>
    %659 = arith.addf %657, %658 : vector<16x128xf32>
    %660 = tpu.concatenate %578, %605, %632, %659 in 1 : vector<16x128xf32>, vector<16x128xf32>, vector<16x128xf32>, vector<16x128xf32> -> vector<16x512xf32>
    %c1_i32_238 = arith.constant 1 : i32
    %661 = vector.broadcast %c1_i32_238 : i32 to vector<16x512xi32>
    %662 = arith.cmpi sge, %4, %661 : vector<16x512xi32>
    %c1_i32_239 = arith.constant 1 : i32
    %663 = tpu.dynamic_rotate %660 by %c1_i32_239 dim 0 : vector<16x512xf32>, i32 -> vector<16x512xf32>
    %cst_240 = arith.constant 0.000000e+00 : f32
    %664 = vector.broadcast %cst_240 : f32 to vector<16x512xf32>
    %665 = arith.select %662, %663, %664 : vector<16x512xi1>, vector<16x512xf32>
    %c15_i32_241 = arith.constant 15 : i32
    %666 = vector.broadcast %c15_i32_241 : i32 to vector<16x512xi32>
    %667 = arith.cmpi slt, %4, %666 : vector<16x512xi32>
    %c15_i32_242 = arith.constant 15 : i32
    %668 = tpu.dynamic_rotate %660 by %c15_i32_242 dim 0 : vector<16x512xf32>, i32 -> vector<16x512xf32>
    %cst_243 = arith.constant 0.000000e+00 : f32
    %669 = vector.broadcast %cst_243 : f32 to vector<16x512xf32>
    %670 = arith.select %667, %668, %669 : vector<16x512xi1>, vector<16x512xf32>
    %cst_244 = arith.constant 0.000000e+00 : f32
    %671 = vector.broadcast %cst_244 : f32 to vector<16x128xf32>
    %c1_245 = arith.constant 1 : index
    %c0_246 = arith.constant 0 : index
    %672 = memref.load %arg3[%c1_245, %c0_246] : memref<2x12xf32, #tpu.memory_space<smem>>
    %673 = vector.extract_strided_slice %665 {offsets = [0, 0], sizes = [16, 128], strides = [1, 1]} : vector<16x512xf32> to vector<16x128xf32>
    %674 = vector.broadcast %672 : f32 to vector<16x128xf32>
    %675 = arith.mulf %674, %673 : vector<16x128xf32>
    %676 = arith.addf %671, %675 : vector<16x128xf32>
    %c1_247 = arith.constant 1 : index
    %c1_248 = arith.constant 1 : index
    %677 = memref.load %arg3[%c1_247, %c1_248] : memref<2x12xf32, #tpu.memory_space<smem>>
    %678 = vector.extract_strided_slice %660 {offsets = [0, 0], sizes = [16, 128], strides = [1, 1]} : vector<16x512xf32> to vector<16x128xf32>
    %679 = vector.broadcast %677 : f32 to vector<16x128xf32>
    %680 = arith.mulf %679, %678 : vector<16x128xf32>
    %681 = arith.addf %676, %680 : vector<16x128xf32>
    %c1_249 = arith.constant 1 : index
    %c2_250 = arith.constant 2 : index
    %682 = memref.load %arg3[%c1_249, %c2_250] : memref<2x12xf32, #tpu.memory_space<smem>>
    %683 = vector.extract_strided_slice %670 {offsets = [0, 0], sizes = [16, 128], strides = [1, 1]} : vector<16x512xf32> to vector<16x128xf32>
    %684 = vector.broadcast %682 : f32 to vector<16x128xf32>
    %685 = arith.mulf %684, %683 : vector<16x128xf32>
    %686 = arith.addf %681, %685 : vector<16x128xf32>
    %c1_251 = arith.constant 1 : index
    %c3_252 = arith.constant 3 : index
    %687 = memref.load %arg3[%c1_251, %c3_252] : memref<2x12xf32, #tpu.memory_space<smem>>
    %688 = vector.extract_strided_slice %665 {offsets = [0, 128], sizes = [16, 128], strides = [1, 1]} : vector<16x512xf32> to vector<16x128xf32>
    %689 = vector.broadcast %687 : f32 to vector<16x128xf32>
    %690 = arith.mulf %689, %688 : vector<16x128xf32>
    %691 = arith.addf %686, %690 : vector<16x128xf32>
    %c1_253 = arith.constant 1 : index
    %c4_254 = arith.constant 4 : index
    %692 = memref.load %arg3[%c1_253, %c4_254] : memref<2x12xf32, #tpu.memory_space<smem>>
    %693 = vector.extract_strided_slice %660 {offsets = [0, 128], sizes = [16, 128], strides = [1, 1]} : vector<16x512xf32> to vector<16x128xf32>
    %694 = vector.broadcast %692 : f32 to vector<16x128xf32>
    %695 = arith.mulf %694, %693 : vector<16x128xf32>
    %696 = arith.addf %691, %695 : vector<16x128xf32>
    %c1_255 = arith.constant 1 : index
    %c5_256 = arith.constant 5 : index
    %697 = memref.load %arg3[%c1_255, %c5_256] : memref<2x12xf32, #tpu.memory_space<smem>>
    %698 = vector.extract_strided_slice %670 {offsets = [0, 128], sizes = [16, 128], strides = [1, 1]} : vector<16x512xf32> to vector<16x128xf32>
    %699 = vector.broadcast %697 : f32 to vector<16x128xf32>
    %700 = arith.mulf %699, %698 : vector<16x128xf32>
    %701 = arith.addf %696, %700 : vector<16x128xf32>
    %c1_257 = arith.constant 1 : index
    %c6_258 = arith.constant 6 : index
    %702 = memref.load %arg3[%c1_257, %c6_258] : memref<2x12xf32, #tpu.memory_space<smem>>
    %703 = vector.extract_strided_slice %665 {offsets = [0, 256], sizes = [16, 128], strides = [1, 1]} : vector<16x512xf32> to vector<16x128xf32>
    %704 = vector.broadcast %702 : f32 to vector<16x128xf32>
    %705 = arith.mulf %704, %703 : vector<16x128xf32>
    %706 = arith.addf %701, %705 : vector<16x128xf32>
    %c1_259 = arith.constant 1 : index
    %c7_260 = arith.constant 7 : index
    %707 = memref.load %arg3[%c1_259, %c7_260] : memref<2x12xf32, #tpu.memory_space<smem>>
    %708 = vector.extract_strided_slice %660 {offsets = [0, 256], sizes = [16, 128], strides = [1, 1]} : vector<16x512xf32> to vector<16x128xf32>
    %709 = vector.broadcast %707 : f32 to vector<16x128xf32>
    %710 = arith.mulf %709, %708 : vector<16x128xf32>
    %711 = arith.addf %706, %710 : vector<16x128xf32>
    %c1_261 = arith.constant 1 : index
    %c8_262 = arith.constant 8 : index
    %712 = memref.load %arg3[%c1_261, %c8_262] : memref<2x12xf32, #tpu.memory_space<smem>>
    %713 = vector.extract_strided_slice %670 {offsets = [0, 256], sizes = [16, 128], strides = [1, 1]} : vector<16x512xf32> to vector<16x128xf32>
    %714 = vector.broadcast %712 : f32 to vector<16x128xf32>
    %715 = arith.mulf %714, %713 : vector<16x128xf32>
    %716 = arith.addf %711, %715 : vector<16x128xf32>
    %c1_263 = arith.constant 1 : index
    %c9_264 = arith.constant 9 : index
    %717 = memref.load %arg3[%c1_263, %c9_264] : memref<2x12xf32, #tpu.memory_space<smem>>
    %718 = vector.extract_strided_slice %665 {offsets = [0, 384], sizes = [16, 128], strides = [1, 1]} : vector<16x512xf32> to vector<16x128xf32>
    %719 = vector.broadcast %717 : f32 to vector<16x128xf32>
    %720 = arith.mulf %719, %718 : vector<16x128xf32>
    %721 = arith.addf %716, %720 : vector<16x128xf32>
    %c1_265 = arith.constant 1 : index
    %c10_266 = arith.constant 10 : index
    %722 = memref.load %arg3[%c1_265, %c10_266] : memref<2x12xf32, #tpu.memory_space<smem>>
    %723 = vector.extract_strided_slice %660 {offsets = [0, 384], sizes = [16, 128], strides = [1, 1]} : vector<16x512xf32> to vector<16x128xf32>
    %724 = vector.broadcast %722 : f32 to vector<16x128xf32>
    %725 = arith.mulf %724, %723 : vector<16x128xf32>
    %726 = arith.addf %721, %725 : vector<16x128xf32>
    %c1_267 = arith.constant 1 : index
    %c11_268 = arith.constant 11 : index
    %727 = memref.load %arg3[%c1_267, %c11_268] : memref<2x12xf32, #tpu.memory_space<smem>>
    %728 = vector.extract_strided_slice %670 {offsets = [0, 384], sizes = [16, 128], strides = [1, 1]} : vector<16x512xf32> to vector<16x128xf32>
    %729 = vector.broadcast %727 : f32 to vector<16x128xf32>
    %730 = arith.mulf %729, %728 : vector<16x128xf32>
    %731 = arith.addf %726, %730 : vector<16x128xf32>
    %c1_269 = arith.constant 1 : index
    %732 = memref.load %arg2[%c1_269] : memref<2xf32, #tpu.memory_space<smem>>
    %733 = vector.broadcast %732 : f32 to vector<16x128xf32>
    %734 = arith.addf %731, %733 : vector<16x128xf32>
    %cst_270 = arith.constant 0.000000e+00 : f32
    %735 = vector.broadcast %cst_270 : f32 to vector<16x128xf32>
    %736 = arith.cmpf oge, %734, %735 : vector<16x128xf32>
    %737 = vector.broadcast %527 : f32 to vector<16x128xf32>
    %738 = arith.mulf %737, %734 : vector<16x128xf32>
    %739 = arith.select %736, %734, %738 : vector<16x128xi1>, vector<16x128xf32>
    %740 = vector.shape_cast %739 : vector<16x128xf32> to vector<1x16x128xf32>
    %cst_271 = arith.constant dense<0.000000e+00> : vector<1xf32>
    %741 = vector.multi_reduction <add>, %740, %cst_271 [1, 2] : vector<1x16x128xf32> to vector<1xf32>
    %742 = vector.shape_cast %741 : vector<1xf32> to vector<1x1x1xf32>
    %743 = vector.extract %742[0, 0, 0] : f32 from vector<1x1x1xf32>
    %cst_272 = arith.constant 2.048000e+03 : f32
    %744 = arith.divf %743, %cst_272 : f32
    %745 = vector.broadcast %744 : f32 to vector<16x128xf32>
    %746 = arith.subf %739, %745 : vector<16x128xf32>
    %747 = arith.mulf %746, %746 : vector<16x128xf32>
    %748 = vector.shape_cast %747 : vector<16x128xf32> to vector<1x16x128xf32>
    %cst_273 = arith.constant dense<0.000000e+00> : vector<1xf32>
    %749 = vector.multi_reduction <add>, %748, %cst_273 [1, 2] : vector<1x16x128xf32> to vector<1xf32>
    %750 = vector.shape_cast %749 : vector<1xf32> to vector<1x1x1xf32>
    %751 = vector.extract %750[0, 0, 0] : f32 from vector<1x1x1xf32>
    %cst_274 = arith.constant 2.048000e+03 : f32
    %752 = arith.divf %751, %cst_274 : f32
    %cst_275 = arith.constant 9.99999993E-9 : f32
    %753 = arith.addf %752, %cst_275 : f32
    %754 = math.rsqrt %753 : f32
    %755 = vector.broadcast %754 : f32 to vector<16x128xf32>
    %756 = arith.mulf %746, %755 : vector<16x128xf32>
    %757 = vector.broadcast %534 : vector<16x1xf32> to vector<16x128xf32>
    %758 = arith.mulf %756, %757 : vector<16x128xf32>
    %759 = vector.broadcast %536 : vector<16x1xf32> to vector<16x128xf32>
    %760 = arith.addf %758, %759 : vector<16x128xf32>
    %c2_i32 = arith.constant 2 : i32
    %761 = vector.broadcast %c2_i32 : i32 to vector<16x128xi32>
    %762 = arith.cmpi sge, %5, %761 : vector<16x128xi32>
    %c2_i32_276 = arith.constant 2 : i32
    %763 = tpu.dynamic_rotate %760 by %c2_i32_276 dim 1 : vector<16x128xf32>, i32 -> vector<16x128xf32>
    %cst_277 = arith.constant 0.000000e+00 : f32
    %764 = vector.broadcast %cst_277 : f32 to vector<16x128xf32>
    %765 = arith.select %762, %763, %764 : vector<16x128xi1>, vector<16x128xf32>
    %c126_i32 = arith.constant 126 : i32
    %766 = vector.broadcast %c126_i32 : i32 to vector<16x128xi32>
    %767 = arith.cmpi slt, %5, %766 : vector<16x128xi32>
    %c126_i32_278 = arith.constant 126 : i32
    %768 = tpu.dynamic_rotate %760 by %c126_i32_278 dim 1 : vector<16x128xf32>, i32 -> vector<16x128xf32>
    %cst_279 = arith.constant 0.000000e+00 : f32
    %769 = vector.broadcast %cst_279 : f32 to vector<16x128xf32>
    %770 = arith.select %767, %768, %769 : vector<16x128xi1>, vector<16x128xf32>
    %771 = vector.extract_strided_slice %538 {offsets = [0, 0], sizes = [16, 1], strides = [1, 1]} : vector<16x3xf32> to vector<16x1xf32>
    %772 = vector.broadcast %771 : vector<16x1xf32> to vector<16x128xf32>
    %773 = arith.mulf %772, %765 : vector<16x128xf32>
    %774 = vector.extract_strided_slice %538 {offsets = [0, 1], sizes = [16, 1], strides = [1, 1]} : vector<16x3xf32> to vector<16x1xf32>
    %775 = vector.broadcast %774 : vector<16x1xf32> to vector<16x128xf32>
    %776 = arith.mulf %775, %760 : vector<16x128xf32>
    %777 = arith.addf %773, %776 : vector<16x128xf32>
    %778 = vector.extract_strided_slice %538 {offsets = [0, 2], sizes = [16, 1], strides = [1, 1]} : vector<16x3xf32> to vector<16x1xf32>
    %779 = vector.broadcast %778 : vector<16x1xf32> to vector<16x128xf32>
    %780 = arith.mulf %779, %770 : vector<16x128xf32>
    %781 = arith.addf %777, %780 : vector<16x128xf32>
    %782 = vector.broadcast %540 : vector<16x1xf32> to vector<16x128xf32>
    %783 = arith.addf %781, %782 : vector<16x128xf32>
    %cst_280 = arith.constant 0.000000e+00 : f32
    %784 = vector.broadcast %cst_280 : f32 to vector<16x128xf32>
    %785 = arith.cmpf oge, %783, %784 : vector<16x128xf32>
    %786 = vector.broadcast %528 : f32 to vector<16x128xf32>
    %787 = arith.mulf %786, %783 : vector<16x128xf32>
    %788 = arith.select %785, %783, %787 : vector<16x128xi1>, vector<16x128xf32>
    %789 = vector.shape_cast %788 : vector<16x128xf32> to vector<1x16x128xf32>
    %cst_281 = arith.constant dense<0.000000e+00> : vector<1xf32>
    %790 = vector.multi_reduction <add>, %789, %cst_281 [1, 2] : vector<1x16x128xf32> to vector<1xf32>
    %791 = vector.shape_cast %790 : vector<1xf32> to vector<1x1x1xf32>
    %792 = vector.extract %791[0, 0, 0] : f32 from vector<1x1x1xf32>
    %cst_282 = arith.constant 2.048000e+03 : f32
    %793 = arith.divf %792, %cst_282 : f32
    %794 = vector.broadcast %793 : f32 to vector<16x128xf32>
    %795 = arith.subf %788, %794 : vector<16x128xf32>
    %796 = arith.mulf %795, %795 : vector<16x128xf32>
    %797 = vector.shape_cast %796 : vector<16x128xf32> to vector<1x16x128xf32>
    %cst_283 = arith.constant dense<0.000000e+00> : vector<1xf32>
    %798 = vector.multi_reduction <add>, %797, %cst_283 [1, 2] : vector<1x16x128xf32> to vector<1xf32>
    %799 = vector.shape_cast %798 : vector<1xf32> to vector<1x1x1xf32>
    %800 = vector.extract %799[0, 0, 0] : f32 from vector<1x1x1xf32>
    %cst_284 = arith.constant 2.048000e+03 : f32
    %801 = arith.divf %800, %cst_284 : f32
    %cst_285 = arith.constant 9.99999993E-9 : f32
    %802 = arith.addf %801, %cst_285 : f32
    %803 = math.rsqrt %802 : f32
    %804 = vector.broadcast %803 : f32 to vector<16x128xf32>
    %805 = arith.mulf %795, %804 : vector<16x128xf32>
    %806 = vector.broadcast %542 : vector<16x1xf32> to vector<16x128xf32>
    %807 = arith.mulf %805, %806 : vector<16x128xf32>
    %808 = vector.broadcast %544 : vector<16x1xf32> to vector<16x128xf32>
    %809 = arith.addf %807, %808 : vector<16x128xf32>
    %c1_286 = arith.constant 1 : index
    %c0_287 = arith.constant 0 : index
    %810 = memref.load %arg4[%c1_286, %c0_287] : memref<2x4xf32, #tpu.memory_space<smem>>
    %811 = vector.broadcast %810 : f32 to vector<16x128xf32>
    %812 = arith.mulf %811, %809 : vector<16x128xf32>
    %c1_288 = arith.constant 1 : index
    %c0_289 = arith.constant 0 : index
    %813 = memref.load %arg5[%c1_288, %c0_289] : memref<2x4xf32, #tpu.memory_space<smem>>
    %814 = vector.broadcast %813 : f32 to vector<16x128xf32>
    %815 = arith.addf %812, %814 : vector<16x128xf32>
    %cst_290 = arith.constant 0.000000e+00 : f32
    %816 = vector.broadcast %cst_290 : f32 to vector<16x128xf32>
    %817 = arith.cmpf oge, %815, %816 : vector<16x128xf32>
    %818 = vector.broadcast %527 : f32 to vector<16x128xf32>
    %819 = arith.mulf %818, %815 : vector<16x128xf32>
    %820 = arith.select %817, %815, %819 : vector<16x128xi1>, vector<16x128xf32>
    %821 = vector.shape_cast %820 : vector<16x128xf32> to vector<1x16x128xf32>
    %cst_291 = arith.constant dense<0.000000e+00> : vector<1xf32>
    %822 = vector.multi_reduction <add>, %821, %cst_291 [1, 2] : vector<1x16x128xf32> to vector<1xf32>
    %823 = vector.shape_cast %822 : vector<1xf32> to vector<1x1x1xf32>
    %824 = vector.extract %823[0, 0, 0] : f32 from vector<1x1x1xf32>
    %cst_292 = arith.constant 2.048000e+03 : f32
    %825 = arith.divf %824, %cst_292 : f32
    %826 = vector.broadcast %825 : f32 to vector<16x128xf32>
    %827 = arith.subf %820, %826 : vector<16x128xf32>
    %828 = arith.mulf %827, %827 : vector<16x128xf32>
    %829 = vector.shape_cast %828 : vector<16x128xf32> to vector<1x16x128xf32>
    %cst_293 = arith.constant dense<0.000000e+00> : vector<1xf32>
    %830 = vector.multi_reduction <add>, %829, %cst_293 [1, 2] : vector<1x16x128xf32> to vector<1xf32>
    %831 = vector.shape_cast %830 : vector<1xf32> to vector<1x1x1xf32>
    %832 = vector.extract %831[0, 0, 0] : f32 from vector<1x1x1xf32>
    %cst_294 = arith.constant 2.048000e+03 : f32
    %833 = arith.divf %832, %cst_294 : f32
    %cst_295 = arith.constant 9.99999993E-9 : f32
    %834 = arith.addf %833, %cst_295 : f32
    %835 = math.rsqrt %834 : f32
    %836 = vector.broadcast %835 : f32 to vector<16x128xf32>
    %837 = arith.mulf %827, %836 : vector<16x128xf32>
    %838 = vector.broadcast %534 : vector<16x1xf32> to vector<16x128xf32>
    %839 = arith.mulf %837, %838 : vector<16x128xf32>
    %840 = vector.broadcast %536 : vector<16x1xf32> to vector<16x128xf32>
    %841 = arith.addf %839, %840 : vector<16x128xf32>
    %c1_296 = arith.constant 1 : index
    %c1_297 = arith.constant 1 : index
    %842 = memref.load %arg4[%c1_296, %c1_297] : memref<2x4xf32, #tpu.memory_space<smem>>
    %843 = vector.broadcast %842 : f32 to vector<16x128xf32>
    %844 = arith.mulf %843, %809 : vector<16x128xf32>
    %c1_298 = arith.constant 1 : index
    %c1_299 = arith.constant 1 : index
    %845 = memref.load %arg5[%c1_298, %c1_299] : memref<2x4xf32, #tpu.memory_space<smem>>
    %846 = vector.broadcast %845 : f32 to vector<16x128xf32>
    %847 = arith.addf %844, %846 : vector<16x128xf32>
    %cst_300 = arith.constant 0.000000e+00 : f32
    %848 = vector.broadcast %cst_300 : f32 to vector<16x128xf32>
    %849 = arith.cmpf oge, %847, %848 : vector<16x128xf32>
    %850 = vector.broadcast %527 : f32 to vector<16x128xf32>
    %851 = arith.mulf %850, %847 : vector<16x128xf32>
    %852 = arith.select %849, %847, %851 : vector<16x128xi1>, vector<16x128xf32>
    %853 = vector.shape_cast %852 : vector<16x128xf32> to vector<1x16x128xf32>
    %cst_301 = arith.constant dense<0.000000e+00> : vector<1xf32>
    %854 = vector.multi_reduction <add>, %853, %cst_301 [1, 2] : vector<1x16x128xf32> to vector<1xf32>
    %855 = vector.shape_cast %854 : vector<1xf32> to vector<1x1x1xf32>
    %856 = vector.extract %855[0, 0, 0] : f32 from vector<1x1x1xf32>
    %cst_302 = arith.constant 2.048000e+03 : f32
    %857 = arith.divf %856, %cst_302 : f32
    %858 = vector.broadcast %857 : f32 to vector<16x128xf32>
    %859 = arith.subf %852, %858 : vector<16x128xf32>
    %860 = arith.mulf %859, %859 : vector<16x128xf32>
    %861 = vector.shape_cast %860 : vector<16x128xf32> to vector<1x16x128xf32>
    %cst_303 = arith.constant dense<0.000000e+00> : vector<1xf32>
    %862 = vector.multi_reduction <add>, %861, %cst_303 [1, 2] : vector<1x16x128xf32> to vector<1xf32>
    %863 = vector.shape_cast %862 : vector<1xf32> to vector<1x1x1xf32>
    %864 = vector.extract %863[0, 0, 0] : f32 from vector<1x1x1xf32>
    %cst_304 = arith.constant 2.048000e+03 : f32
    %865 = arith.divf %864, %cst_304 : f32
    %cst_305 = arith.constant 9.99999993E-9 : f32
    %866 = arith.addf %865, %cst_305 : f32
    %867 = math.rsqrt %866 : f32
    %868 = vector.broadcast %867 : f32 to vector<16x128xf32>
    %869 = arith.mulf %859, %868 : vector<16x128xf32>
    %870 = vector.broadcast %534 : vector<16x1xf32> to vector<16x128xf32>
    %871 = arith.mulf %869, %870 : vector<16x128xf32>
    %872 = vector.broadcast %536 : vector<16x1xf32> to vector<16x128xf32>
    %873 = arith.addf %871, %872 : vector<16x128xf32>
    %c1_306 = arith.constant 1 : index
    %c2_307 = arith.constant 2 : index
    %874 = memref.load %arg4[%c1_306, %c2_307] : memref<2x4xf32, #tpu.memory_space<smem>>
    %875 = vector.broadcast %874 : f32 to vector<16x128xf32>
    %876 = arith.mulf %875, %809 : vector<16x128xf32>
    %c1_308 = arith.constant 1 : index
    %c2_309 = arith.constant 2 : index
    %877 = memref.load %arg5[%c1_308, %c2_309] : memref<2x4xf32, #tpu.memory_space<smem>>
    %878 = vector.broadcast %877 : f32 to vector<16x128xf32>
    %879 = arith.addf %876, %878 : vector<16x128xf32>
    %cst_310 = arith.constant 0.000000e+00 : f32
    %880 = vector.broadcast %cst_310 : f32 to vector<16x128xf32>
    %881 = arith.cmpf oge, %879, %880 : vector<16x128xf32>
    %882 = vector.broadcast %527 : f32 to vector<16x128xf32>
    %883 = arith.mulf %882, %879 : vector<16x128xf32>
    %884 = arith.select %881, %879, %883 : vector<16x128xi1>, vector<16x128xf32>
    %885 = vector.shape_cast %884 : vector<16x128xf32> to vector<1x16x128xf32>
    %cst_311 = arith.constant dense<0.000000e+00> : vector<1xf32>
    %886 = vector.multi_reduction <add>, %885, %cst_311 [1, 2] : vector<1x16x128xf32> to vector<1xf32>
    %887 = vector.shape_cast %886 : vector<1xf32> to vector<1x1x1xf32>
    %888 = vector.extract %887[0, 0, 0] : f32 from vector<1x1x1xf32>
    %cst_312 = arith.constant 2.048000e+03 : f32
    %889 = arith.divf %888, %cst_312 : f32
    %890 = vector.broadcast %889 : f32 to vector<16x128xf32>
    %891 = arith.subf %884, %890 : vector<16x128xf32>
    %892 = arith.mulf %891, %891 : vector<16x128xf32>
    %893 = vector.shape_cast %892 : vector<16x128xf32> to vector<1x16x128xf32>
    %cst_313 = arith.constant dense<0.000000e+00> : vector<1xf32>
    %894 = vector.multi_reduction <add>, %893, %cst_313 [1, 2] : vector<1x16x128xf32> to vector<1xf32>
    %895 = vector.shape_cast %894 : vector<1xf32> to vector<1x1x1xf32>
    %896 = vector.extract %895[0, 0, 0] : f32 from vector<1x1x1xf32>
    %cst_314 = arith.constant 2.048000e+03 : f32
    %897 = arith.divf %896, %cst_314 : f32
    %cst_315 = arith.constant 9.99999993E-9 : f32
    %898 = arith.addf %897, %cst_315 : f32
    %899 = math.rsqrt %898 : f32
    %900 = vector.broadcast %899 : f32 to vector<16x128xf32>
    %901 = arith.mulf %891, %900 : vector<16x128xf32>
    %902 = vector.broadcast %534 : vector<16x1xf32> to vector<16x128xf32>
    %903 = arith.mulf %901, %902 : vector<16x128xf32>
    %904 = vector.broadcast %536 : vector<16x1xf32> to vector<16x128xf32>
    %905 = arith.addf %903, %904 : vector<16x128xf32>
    %c1_316 = arith.constant 1 : index
    %c3_317 = arith.constant 3 : index
    %906 = memref.load %arg4[%c1_316, %c3_317] : memref<2x4xf32, #tpu.memory_space<smem>>
    %907 = vector.broadcast %906 : f32 to vector<16x128xf32>
    %908 = arith.mulf %907, %809 : vector<16x128xf32>
    %c1_318 = arith.constant 1 : index
    %c3_319 = arith.constant 3 : index
    %909 = memref.load %arg5[%c1_318, %c3_319] : memref<2x4xf32, #tpu.memory_space<smem>>
    %910 = vector.broadcast %909 : f32 to vector<16x128xf32>
    %911 = arith.addf %908, %910 : vector<16x128xf32>
    %cst_320 = arith.constant 0.000000e+00 : f32
    %912 = vector.broadcast %cst_320 : f32 to vector<16x128xf32>
    %913 = arith.cmpf oge, %911, %912 : vector<16x128xf32>
    %914 = vector.broadcast %527 : f32 to vector<16x128xf32>
    %915 = arith.mulf %914, %911 : vector<16x128xf32>
    %916 = arith.select %913, %911, %915 : vector<16x128xi1>, vector<16x128xf32>
    %917 = vector.shape_cast %916 : vector<16x128xf32> to vector<1x16x128xf32>
    %cst_321 = arith.constant dense<0.000000e+00> : vector<1xf32>
    %918 = vector.multi_reduction <add>, %917, %cst_321 [1, 2] : vector<1x16x128xf32> to vector<1xf32>
    %919 = vector.shape_cast %918 : vector<1xf32> to vector<1x1x1xf32>
    %920 = vector.extract %919[0, 0, 0] : f32 from vector<1x1x1xf32>
    %cst_322 = arith.constant 2.048000e+03 : f32
    %921 = arith.divf %920, %cst_322 : f32
    %922 = vector.broadcast %921 : f32 to vector<16x128xf32>
    %923 = arith.subf %916, %922 : vector<16x128xf32>
    %924 = arith.mulf %923, %923 : vector<16x128xf32>
    %925 = vector.shape_cast %924 : vector<16x128xf32> to vector<1x16x128xf32>
    %cst_323 = arith.constant dense<0.000000e+00> : vector<1xf32>
    %926 = vector.multi_reduction <add>, %925, %cst_323 [1, 2] : vector<1x16x128xf32> to vector<1xf32>
    %927 = vector.shape_cast %926 : vector<1xf32> to vector<1x1x1xf32>
    %928 = vector.extract %927[0, 0, 0] : f32 from vector<1x1x1xf32>
    %cst_324 = arith.constant 2.048000e+03 : f32
    %929 = arith.divf %928, %cst_324 : f32
    %cst_325 = arith.constant 9.99999993E-9 : f32
    %930 = arith.addf %929, %cst_325 : f32
    %931 = math.rsqrt %930 : f32
    %932 = vector.broadcast %931 : f32 to vector<16x128xf32>
    %933 = arith.mulf %923, %932 : vector<16x128xf32>
    %934 = vector.broadcast %534 : vector<16x1xf32> to vector<16x128xf32>
    %935 = arith.mulf %933, %934 : vector<16x128xf32>
    %936 = vector.broadcast %536 : vector<16x1xf32> to vector<16x128xf32>
    %937 = arith.addf %935, %936 : vector<16x128xf32>
    %938 = tpu.concatenate %841, %873, %905, %937 in 1 : vector<16x128xf32>, vector<16x128xf32>, vector<16x128xf32>, vector<16x128xf32> -> vector<16x512xf32>
    %cst_326 = arith.constant dense<0.000000e+00> : vector<8x512xf32>
    %939 = tpu.matmul %546, %938, %cst_326 {dimension_numbers = #tpu.dot_dimension_numbers<[1], [0], [0], [1], [0, 0, 1, 1], [], []>} : vector<8x16xf32>, vector<16x512xf32>, vector<8x512xf32> -> vector<8x512xf32>
    %940 = arith.addf %526, %939 : vector<8x512xf32>
    %941 = vector.broadcast %548 : vector<8x1xf32> to vector<8x512xf32>
    %942 = arith.addf %940, %941 : vector<8x512xf32>
    %c0_327 = arith.constant 0 : index
    %c0_328 = arith.constant 0 : index
    %943 = vector.load %arg24[%c0_327, %c0_328] : memref<8x8xf32, #tpu.memory_space<vmem>>, vector<8x8xf32>
    %c0_329 = arith.constant 0 : index
    %c0_330 = arith.constant 0 : index
    %944 = vector.load %arg25[%c0_329, %c0_330] : memref<8x1xf32, #tpu.memory_space<vmem>>, vector<8x1xf32>
    %c0_331 = arith.constant 0 : index
    %945 = memref.load %arg6[%c0_331] : memref<1xf32, #tpu.memory_space<smem>>
    %cst_332 = arith.constant 0.000000e+00 : f32
    %946 = vector.broadcast %cst_332 : f32 to vector<8x512xf32>
    %947 = arith.cmpf oge, %942, %946 : vector<8x512xf32>
    %948 = vector.broadcast %945 : f32 to vector<8x512xf32>
    %949 = arith.mulf %948, %942 : vector<8x512xf32>
    %950 = arith.select %947, %942, %949 : vector<8x512xi1>, vector<8x512xf32>
    %cst_333 = arith.constant dense<0.000000e+00> : vector<8x512xf32>
    %951 = tpu.matmul %943, %950, %cst_333 {dimension_numbers = #tpu.dot_dimension_numbers<[1], [0], [0], [1], [0, 0, 1, 1], [], []>} : vector<8x8xf32>, vector<8x512xf32>, vector<8x512xf32> -> vector<8x512xf32>
    %952 = vector.broadcast %944 : vector<8x1xf32> to vector<8x512xf32>
    %953 = arith.addf %951, %952 : vector<8x512xf32>
    %954 = vector.extract_strided_slice %953 {offsets = [0, 0], sizes = [8, 128], strides = [1, 1]} : vector<8x512xf32> to vector<8x128xf32>
    %c0_334 = arith.constant 0 : index
    %c0_335 = arith.constant 0 : index
    %c0_336 = arith.constant 0 : index
    %955 = vector.load %arg26[%c0_334, %c0_335, %c0_336] : memref<4x8x128xf32, #tpu.memory_space<vmem>>, vector<1x8x128xf32>
    %956 = vector.shape_cast %955 : vector<1x8x128xf32> to vector<8x128xf32>
    %957 = vector.shape_cast %954 : vector<8x128xf32> to vector<1x8x128xf32>
    tpu.vector_store %arg26[%c0_334, %c0_335, %c0_336], %957 {strides = array<i32>} : memref<4x8x128xf32, #tpu.memory_space<vmem>>, vector<1x8x128xf32>,
    %958 = vector.extract_strided_slice %953 {offsets = [0, 128], sizes = [8, 128], strides = [1, 1]} : vector<8x512xf32> to vector<8x128xf32>
    %c1_337 = arith.constant 1 : index
    %c0_338 = arith.constant 0 : index
    %c0_339 = arith.constant 0 : index
    %959 = vector.load %arg26[%c1_337, %c0_338, %c0_339] : memref<4x8x128xf32, #tpu.memory_space<vmem>>, vector<1x8x128xf32>
    %960 = vector.shape_cast %959 : vector<1x8x128xf32> to vector<8x128xf32>
    %961 = vector.shape_cast %958 : vector<8x128xf32> to vector<1x8x128xf32>
    tpu.vector_store %arg26[%c1_337, %c0_338, %c0_339], %961 {strides = array<i32>} : memref<4x8x128xf32, #tpu.memory_space<vmem>>, vector<1x8x128xf32>,
    %962 = vector.extract_strided_slice %953 {offsets = [0, 256], sizes = [8, 128], strides = [1, 1]} : vector<8x512xf32> to vector<8x128xf32>
    %c2_340 = arith.constant 2 : index
    %c0_341 = arith.constant 0 : index
    %c0_342 = arith.constant 0 : index
    %963 = vector.load %arg26[%c2_340, %c0_341, %c0_342] : memref<4x8x128xf32, #tpu.memory_space<vmem>>, vector<1x8x128xf32>
    %964 = vector.shape_cast %963 : vector<1x8x128xf32> to vector<8x128xf32>
    %965 = vector.shape_cast %962 : vector<8x128xf32> to vector<1x8x128xf32>
    tpu.vector_store %arg26[%c2_340, %c0_341, %c0_342], %965 {strides = array<i32>} : memref<4x8x128xf32, #tpu.memory_space<vmem>>, vector<1x8x128xf32>,
    %966 = vector.extract_strided_slice %953 {offsets = [0, 384], sizes = [8, 128], strides = [1, 1]} : vector<8x512xf32> to vector<8x128xf32>
    %c3_343 = arith.constant 3 : index
    %c0_344 = arith.constant 0 : index
    %c0_345 = arith.constant 0 : index
    %967 = vector.load %arg26[%c3_343, %c0_344, %c0_345] : memref<4x8x128xf32, #tpu.memory_space<vmem>>, vector<1x8x128xf32>
    %968 = vector.shape_cast %967 : vector<1x8x128xf32> to vector<8x128xf32>
    %969 = vector.shape_cast %966 : vector<8x128xf32> to vector<1x8x128xf32>
    tpu.vector_store %arg26[%c3_343, %c0_344, %c0_345], %969 {strides = array<i32>} : memref<4x8x128xf32, #tpu.memory_space<vmem>>, vector<1x8x128xf32>,
    return
  }
}

</mosaic_0001>

<bundles_post_ra>
// kernel: _lambda_.1
= control target key start
LH: loop header
LB: loop body
LE: loop exit
PB: predicated region body
PF: predicated region fallthrough
CT: control target
= control target key end

     0   :  { %s4532_s0 = inlined_call_operand.vmem [shape: f32[2], index: 0, kind: input, shape index: {}]   ;;  %s4533_s1 = inlined_call_operand.vmem [shape: f32[2], index: 1, kind: input, shape index: {}]   ;;  %s4534_s2 = inlined_call_operand.vmem [shape: f32[2], index: 2, kind: input, shape index: {}]   ;;  %s4535_s3 = inlined_call_operand.vmem [shape: f32[2,12], index: 3, kind: input, shape index: {}]   ;;  %s4536_s4 = inlined_call_operand.vmem [shape: f32[2,4], index: 4, kind: input, shape index: {}]   ;;  %s4537_s5 = inlined_call_operand.vmem [shape: f32[2,4], index: 5, kind: input, shape index: {}]   ;;  %s4538_s6 = inlined_call_operand.<no memory space> [shape: f32[1], index: 6, kind: input, shape index: {}]   ;;  %s4539_s7 = inlined_call_operand.vmem [shape: f32[4,16,128], index: 7, kind: input, shape index: {}]   ;;  %s4540_s8 = inlined_call_operand.vmem [shape: f32[16,1], index: 8, kind: input, shape index: {}]   ;;  %s4541_s9 = inlined_call_operand.vmem [shape: f32[16,1], index: 9, kind: input, shape index: {}]   ;;  %s4542_s10 = inlined_call_operand.vmem [shape: f32[8,16], index: 10, kind: input, shape index: {}]   ;;  %s4543_s11 = inlined_call_operand.vmem [shape: f32[8,1], index: 11, kind: input, shape index: {}]   ;;  %s4544_s12 = inlined_call_operand.vmem [shape: f32[2,16,8], index: 12, kind: input, shape index: {}]   ;;  %s4545_s13 = inlined_call_operand.vmem [shape: f32[2,16,1], index: 13, kind: input, shape index: {}]   ;;  %s4546_s14 = inlined_call_operand.vmem [shape: f32[2,16,1], index: 14, kind: input, shape index: {}]   ;;  %s4547_s15 = inlined_call_operand.vmem [shape: f32[2,16,1], index: 15, kind: input, shape index: {}]   ;;  %s4548_s16 = inlined_call_operand.vmem [shape: f32[2,16,3], index: 16, kind: input, shape index: {}]   ;;  %s4549_s17 = inlined_call_operand.vmem [shape: f32[2,16,1], index: 17, kind: input, shape index: {}]   ;;  %s4550_s18 = inlined_call_operand.vmem [shape: f32[2,16,1], index: 18, kind: input, shape index: {}]   ;;  %s4551_s19 = inlined_call_operand.vmem [shape: f32[2,16,1], index: 19, kind: input, shape index: {}]   ;;  %s4552_s20 = inlined_call_operand.vmem [shape: f32[2,8,16], index: 20, kind: input, shape index: {}]   ;;  %s4553_s21 = inlined_call_operand.vmem [shape: f32[2,8,1], index: 21, kind: input, shape index: {}]   ;;  %s4554_s22 = inlined_call_operand.vmem [shape: f32[2,8,16], index: 22, kind: input, shape index: {}]   ;;  %s4555_s23 = inlined_call_operand.vmem [shape: f32[2,8,1], index: 23, kind: input, shape index: {}]   ;;  %s4556_s24 = inlined_call_operand.vmem [shape: f32[8,8], index: 24, kind: input, shape index: {}]   ;;  %s4557_s25 = inlined_call_operand.vmem [shape: f32[8,1], index: 25, kind: input, shape index: {}]   ;;  %s4558_s26 = inlined_call_operand.hbm [shape: f32[4,8,128], index: 26, kind: output, shape index: {}]  }
   0x1   :  { %4562 = sst [smem:[#allocation20_spill]] %s4532_s0 }
   0x2   :  { %4563 = sst [smem:[#allocation21_spill]] %s4533_s1 }
   0x3   :  { %4564 = sst [smem:[#allocation22_spill]] %s4534_s2 }
   0x4   :  { %4565 = sst [smem:[#allocation23_spill]] %s4535_s3 }
   0x5   :  { %4566 = sst [smem:[#allocation24_spill]] %s4536_s4 }
   0x6   :  { %4567 = sst [smem:[#allocation25_spill]] %s4537_s5 }
   0x7   :  { %4568 = sst [smem:[#allocation26_spill]] %s4538_s6 }
   0x8   :  { %4569 = sst [smem:[#allocation27_spill]] %s4539_s7 }
   0x9   :  { %4570 = sst [smem:[#allocation28_spill]] %s4540_s8 }
   0xa   :  { %4571 = sst [smem:[#allocation29_spill]] %s4541_s9 }
   0xb   :  { %4572 = sst [smem:[#allocation30_spill]] %s4542_s10 }
   0xc   :  { %32 = vsyncpa [#allocation5], 0 }
   0xd   :  { %33 = vsyncpa [#allocation7], 0 }
   0xe   :  { %34 = vsyncpa [#allocation10], 0 }
   0xf   :  { %35 = vsyncpa [#allocation13], 0  ;;  %s4573_s7 = sld [smem:[#allocation21_spill]] }
  0x15   :  { %s53_s28 = sshll.u32 %s4573_s7, 4  ;;  %s54_s28 = int_to_ptr.vmem [resolvable:$true] %s53_s28 }
  0x16   :  { %36 = vsyncpa [#allocation4], 0  ;;  %s4574_s29 = sld [smem:[#allocation23_spill]]  ;;  %s3360_s9 = scalar_lea.vmem %s54_s28, 16 }
  0x17   :  { %p3361_p0 = scmp.ne.s32.totalorder %s54_s28, %s3360_s9  ;;  %p3365_p1 = scmp.lt.s32.totalorder %s54_s28, %s54_s28 }
  0x18   :  { %p3366_p2 = scmp.lt.s32.totalorder %s3360_s9, %s3360_s9 }
  0x1a   :  { %p3367_p3 = por %p3366_p2, %p3365_p1 }
  0x1c   :  { %s73_s0 = sshll.u32 %s4574_s29, 4  ;;  %p3368_p4 = pnand %p3367_p3, %p3361_p0  ;;  %s74_s0 = int_to_ptr.vmem [resolvable:$true] %s73_s0 }
  0x1e   :  { %3371 = shalt.err (!%p3368_p4)
}
  0x1f   :  { %s3462_s30 = smov [#allocation6]   ;;  %s3372_s2 = scalar_lea.vmem %s74_s0, 32 }
  0x20   :  { %56 = dma.vmem_to_smem %s54_s28, 16, %s3462_s30, [#allocation7]  }
  0x21   :  { %p3373_p5 = scmp.ne.s32.totalorder %s74_s0, %s3372_s2  ;;  %p3377_p6 = scmp.lt.s32.totalorder %s74_s0, %s74_s0 }
  0x22   :  { %p3378_p7 = scmp.lt.s32.totalorder %s3372_s2, %s3372_s2 }
  0x24   :  { %p3379_p8 = por %p3378_p7, %p3377_p6 }
  0x26   :  { %p3380_p9 = pnand %p3379_p8, %p3373_p5 }
  0x28   :  { %3383 = shalt.err (!%p3380_p9)
}
  0x29   :  { %s3463_s5 = smov [#allocation9]   ;;  %s4575_s1 = sld [smem:[#allocation20_spill]] }
  0x2a   :  { %76 = dma.vmem_to_smem %s74_s0, 32, %s3463_s5, [#allocation10]  }
  0x2b   :  { %s4576_s8 = sld [smem:[#allocation22_spill]] }
  0x2f   :  { %s43_s27 = sshll.u32 %s4575_s1, 4  ;;  %s44_s27 = int_to_ptr.vmem [resolvable:$true] %s43_s27 }
  0x30   :  { %s3384_s28 = scalar_lea.vmem %s44_s27, 16  ;;  %p3389_p11 = scmp.lt.s32.totalorder %s44_s27, %s44_s27 }
  0x31   :  { %s63_s4 = sshll.u32 %s4576_s8, 4  ;;  %p3385_p10 = scmp.ne.s32.totalorder %s44_s27, %s3384_s28  ;;  %s64_s4 = int_to_ptr.vmem [resolvable:$true] %s63_s4 }
  0x32   :  { %p3390_p12 = scmp.lt.s32.totalorder %s3384_s28, %s3384_s28 }
  0x34   :  { %p3391_p13 = por %p3390_p12, %p3389_p11 }
  0x36   :  { %p3392_p0 = pnand %p3391_p13, %p3385_p10 }
  0x38   :  { %3395 = shalt.err (!%p3392_p0)
}
  0x39   :  { %s3464_s29 = smov [#allocation3]   ;;  %s3396_s0 = scalar_lea.vmem %s64_s4, 16 }
  0x3a   :  { %46 = dma.vmem_to_smem %s44_s27, 16, %s3464_s29, [#allocation5]  }
  0x3b   :  { %p3397_p1 = scmp.ne.s32.totalorder %s64_s4, %s3396_s0  ;;  %p3401_p2 = scmp.lt.s32.totalorder %s64_s4, %s64_s4 }
  0x3c   :  { %p3402_p3 = scmp.lt.s32.totalorder %s3396_s0, %s3396_s0 }
  0x3e   :  { %p3403_p4 = por %p3402_p3, %p3401_p2 }
  0x40   :  { %p3404_p5 = pnand %p3403_p4, %p3397_p1 }
  0x42   :  { %3407 = shalt.err (!%p3404_p5)
}
  0x43   :  { %s3465_s9 = smov [#allocation8]   ;;  %s4577_s5 = sld [smem:[#allocation24_spill]] }
  0x44   :  { %66 = dma.vmem_to_smem %s64_s4, 16, %s3465_s9, [#allocation7]  }
  0x45   :  { %s4578_s3 = sld [smem:[#allocation25_spill]] }
  0x49   :  { %s83_s10 = sshll.u32 %s4577_s5, 4  ;;  %s84_s10 = int_to_ptr.vmem [resolvable:$true] %s83_s10 }
  0x4a   :  { %s3408_s27 = scalar_lea.vmem %s84_s10, 32  ;;  %p3413_p7 = scmp.lt.s32.totalorder %s84_s10, %s84_s10 }
  0x4b   :  { %s93_s7 = sshll.u32 %s4578_s3, 4  ;;  %p3409_p6 = scmp.ne.s32.totalorder %s84_s10, %s3408_s27  ;;  %s94_s7 = int_to_ptr.vmem [resolvable:$true] %s93_s7 }
  0x4c   :  { %p3414_p8 = scmp.lt.s32.totalorder %s3408_s27, %s3408_s27 }
  0x4e   :  { %p3415_p9 = por %p3414_p8, %p3413_p7 }
  0x50   :  { %p3416_p10 = pnand %p3415_p9, %p3409_p6 }
  0x52   :  { %3419 = shalt.err (!%p3416_p10)
}
  0x53   :  { %s3466_s8 = smov [#allocation11]   ;;  %s3420_s4 = scalar_lea.vmem %s94_s7, 32 }
  0x54   :  { %86 = dma.vmem_to_smem %s84_s10, 32, %s3466_s8, [#allocation10]  }
  0x55   :  { %p3421_p11 = scmp.ne.s32.totalorder %s94_s7, %s3420_s4  ;;  %p3425_p12 = scmp.lt.s32.totalorder %s94_s7, %s94_s7 }
  0x56   :  { %p3426_p13 = scmp.lt.s32.totalorder %s3420_s4, %s3420_s4 }
  0x58   :  { %p3427_p0 = por %p3426_p13, %p3425_p12 }
  0x5a   :  { %p3428_p1 = pnand %p3427_p0, %p3421_p11 }
  0x5c   :  { %3431 = shalt.err (!%p3428_p1)
}
  0x5d   :  { %s3467_s28 = smov [#allocation12]  }
  0x5e   :  { %96 = dma.vmem_to_smem %s94_s7, 32, %s3467_s28, [#allocation13]  }
  0x5f   :  { %3452 = dma.done.wait [#allocation5], 16  }
  0x60   :  { %3453 = vsyncadd [#allocation5], 4294967280 }
  0x61   :  { %3454 = dma.done.wait [#allocation7], 32  }
  0x62   :  { %3455 = vsyncadd [#allocation7], 4294967264 }
  0x63   :  { %3456 = dma.done.wait [#allocation10], 64  }
  0x64   :  { %3457 = vsyncadd [#allocation10], 4294967232 }
  0x65   :  { %3458 = dma.done.wait [#allocation13], 32  }
  0x66   :  { %3459 = vsyncadd [#allocation13], 4294967264 }
  0x67   :  { %155 = sfence }
  0x68   :  { %s4579_s9 = sld [smem:[#allocation27_spill]]  ;;  %v3468_v22 = vmov 0   ;;  %v521_v50 = vld [vmem:[%s4545_s13] sm:$0xff]  ;;  %v522_v52 = vld [vmem:[%s4545_s13 + $0x8] sm:$0xff]  ;;  %v3469_v61 = vmov 0.0   ;;  %vm371_vm0 = vcmask 130048  }
  0x69   :  { %3299 = vset.pattern.permute.xlu0 %v3468_v22  ;;  %3298 = vset.pattern.permute.xlu1 %v3468_v22  ;;  %s4580_s30 = sld [smem:[#allocation28_spill]]  ;;  %vm549_vm1 = vcmask 64512  }
  0x6a   :  { %s4581_s10 = sld [smem:[#allocation29_spill]]  ;;  %439 = vmatprep.mubr.f32.mxu0 %v3469_v61  ;;  %510 = vmatprep.mubr.f32.mxu1 %v3469_v61 }
  0x6b   :  { %s4582_s2 = sld [smem:[#allocation30_spill]] }
  0x6e   :  { %v167_v0 = vld [vmem:[%s4579_s9] sm:$0xff]  ;;  %v168_v1 = vld [vmem:[%s4579_s9 + $0x8] sm:$0xff]  ;;  %v3055_v3 = vld [vmem:[%s4579_s9 + $0x10] sm:$0xff] }
  0x6f   :  { %v169_v2 = vadd.f32 %v168_v1, %v167_v0  ;;  %v3056_v4 = vld [vmem:[%s4579_s9 + $0x18] sm:$0xff]  ;;  %v3655_v18 = vld [vmem:[%s4579_s9 + $0x20] sm:$0xff]  ;;  %v3660_v19 = vld [vmem:[%s4579_s9 + $0x28] sm:$0xff] }
  0x70   :  { %v234_v5 = vadd.f32 %v3056_v4, %v3055_v3  ;;  %v279_v21 = vadd.f32 %v3660_v19, %v3655_v18  ;;  %v156_v23 = vld [vmem:[%s4580_s30] sm:$0xff]  ;;  %v3672_v31 = vld [vmem:[%s4579_s9 + $0x30] sm:$0xff]  ;;  %v3677_v32 = vld [vmem:[%s4579_s9 + $0x38] sm:$0xff] }
  0x71   :  { %170 = vadd.xlane.f32.xlu0 %v169_v2  ;;  %v324_v33 = vadd.f32 %v3677_v32, %v3672_v31  ;;  %v157_v49 = vld [vmem:[%s4580_s30 + $0x8] sm:$0xff]  ;;  %v158_v53 = vld [vmem:[%s4581_s10] sm:$0xff] }
  0x72   :  { %235 = vadd.xlane.f32.xlu1 %v234_v5  ;;  %v159_v51 = vld [vmem:[%s4581_s10 + $0x8] sm:$0xff] }
  0xfa   :  { %v171_v6 = vpop.xlane.xlu0 %170 }
  0xfb   :  { %v172_v7 = vrot.slane %v171_v6, 4  ;;  %v236_v34 = vpop.xlane.xlu1 %235 }
  0xfc   :  { %v237_v35 = vrot.slane %v236_v34, 4 }
  0xfd   :  { %v173_v8 = vadd.f32 %v172_v7, %v171_v6 }
  0xfe   :  { %v238_v36 = vadd.f32 %v237_v35, %v236_v34  ;;  %v3732_v34 = vld [vmem:[%s4582_s2] sm:$0xff] }
  0xff   :  { %v174_v9 = vrot.slane %v173_v8, 2  ;;  %v161_v35 = vld [vmem:[%s4543_s11] sm:$0xff] }
 0x100   :  { %v239_v38 = vrot.slane %v238_v36, 2 }
 0x101   :  { %v175_v10 = vadd.f32 %v174_v9, %v173_v8 }
 0x102   :  { %v240_v39 = vadd.f32 %v239_v38, %v238_v36 }
 0x103   :  { %v176_v11 = vrot.slane %v175_v10, 1 }
 0x104   :  { %v241_v40 = vrot.slane %v240_v39, 1 }
 0x105   :  { %v177_v12 = vadd.f32 %v176_v11, %v175_v10 }
 0x106   :  { %v242_v42 = vadd.f32 %v241_v40, %v240_v39 }
 0x107   :  { %3137 = vpush %v177_v12 }
 0x138   :  { %s3138_s3 = spop %3137 }
 0x139   :  { %s181_s7 = smul.f32 0.00048828125, %s3138_s3 }
 0x13b   :  { %v182_v13 = vstv %s181_s7 }
 0x13c   :  { %v3644_v14 = vsub.f32 %v167_v0, %v182_v13  ;;  %v3646_v15 = vsub.f32 %v168_v1, %v182_v13 }
 0x13e   :  { %v185_v16 = vmul.f32 %v3644_v14, %v3644_v14  ;;  %v186_v17 = vmul.f32 %v3646_v15, %v3646_v15 }
 0x140   :  { %v187_v20 = vadd.f32 %v186_v17, %v185_v16 }
 0x142   :  { %188 = vadd.xlane.f32.xlu0 %v187_v20 }
 0x146   :  { %280 = vadd.xlane.f32.xlu0 %v279_v21 }
 0x15c   :  { %209 = vperm.xlu0 %3299, %v156_v23  }
 0x17b   :  { %325 = vadd.xlane.f32.xlu0 %v324_v33 }
 0x191   :  { %541 = vperm.xlu0 %3299, %v521_v50  }
 0x195   :  { %546 = vperm.xlu0 %3299, %v522_v52  }
 0x1cb   :  { %v189_v24 = vpop.xlane.xlu0 %188 }
 0x1cc   :  { %v190_v25 = vrot.slane %v189_v24, 4 }
 0x1ce   :  { %v191_v26 = vadd.f32 %v190_v25, %v189_v24 }
 0x1cf   :  { %v281_v62 = vpop.xlane.xlu0 %280 }
 0x1d0   :  { %v192_v27 = vrot.slane %v191_v26, 2  ;;  %v282_v63 = vrot.slane %v281_v62, 4 }
 0x1d2   :  { %v193_v28 = vadd.f32 %v192_v27, %v191_v26  ;;  %v283_v0 = vadd.f32 %v282_v63, %v281_v62 }
 0x1d4   :  { %v194_v29 = vrot.slane %v193_v28, 1  ;;  %v284_v2 = vrot.slane %v283_v0, 2 }
 0x1d6   :  { %v195_v30 = vadd.f32 %v194_v29, %v193_v28 }
 0x1d7   :  { %v3707_v17 = vpop.permute.xlu0 %209 }
 0x1d8   :  { %3139 = vpush %v195_v30 }
 0x209   :  { %s3140_s1 = spop %3139 }
 0x20a   :  { %s199_s3 = smul.f32 0.00048828125, %s3140_s1 }
 0x20c   :  { %s200_s7 = sadd.f32 1e-08, %s199_s3 }
 0x20e   :  { %v201_v37 = vstv %s200_s7 }
 0x20f   :  { %3312 = vrsqrt.f32 %v201_v37 }
 0x21c   :  { %v3313_v41 = vpop.eup %3312 }
 0x21d   :  { %3141 = vpush %v3313_v41 }
 0x21e   :  { %3143 = vpush %v242_v42 }
 0x24e   :  { %s3681_s9 = spop %3141 }
 0x24f   :  { %s3144_s27 = spop %3143  ;;  %v204_v8 = vstv %s3681_s9 }
 0x250   :  { %s246_s8 = smul.f32 0.00048828125, %s3144_s27  ;;  %v205_v13 = vmul.f32 %v204_v8, %v3644_v14  ;;  %v206_v16 = vmul.f32 %v204_v8, %v3646_v15 }
 0x252   :  { %v247_v43 = vstv %s246_s8  ;;  %v217_v15 = vmul.f32 %v3707_v17, %v205_v13 }
 0x253   :  { %v248_v44 = vsub.f32 %v3055_v3, %v247_v43  ;;  %v249_v45 = vsub.f32 %v3056_v4, %v247_v43  ;;  %v285_v3 = vadd.f32 %v284_v2, %v283_v0 }
 0x255   :  { %v250_v46 = vmul.f32 %v248_v44, %v248_v44  ;;  %v251_v47 = vmul.f32 %v249_v45, %v249_v45  ;;  %v286_v4 = vrot.slane %v285_v3, 1 }
 0x257   :  { %v252_v48 = vadd.f32 %v251_v47, %v250_v46  ;;  %v287_v6 = vadd.f32 %v286_v4, %v285_v3  ;;  %v326_v47 = vpop.xlane.xlu0 %325 }
 0x258   :  { %v327_v50 = vrot.slane %v326_v47, 4 }
 0x259   :  { %253 = vadd.xlane.f32.xlu1 %v252_v48 }
 0x25a   :  { %v328_v52 = vadd.f32 %v327_v50, %v326_v47 }
 0x25b   :  { %v3770_v2 = vpop.permute.xlu0 %541 }
 0x25f   :  { %v3775_v8 = vpop.permute.xlu0 %546 }
 0x26a   :  { %214 = vperm.xlu1 %3298, %v157_v49   ;;  %v3751_v49 = vld [vmem:[%s4544_s12] sm:$0xff] }
 0x26e   :  { %226 = vperm.xlu1 %3298, %v159_v51   ;;  %v3761_v51 = vld [vmem:[%s4544_s12 + $0x8] sm:$0xff] }
 0x272   :  { %221 = vperm.xlu1 %3298, %v158_v53  }
 0x2e2   :  { %v254_v54 = vpop.xlane.xlu1 %253 }
 0x2e3   :  { %v255_v55 = vrot.slane %v254_v54, 4 }
 0x2e5   :  { %v256_v56 = vadd.f32 %v255_v55, %v254_v54  ;;  %v329_v54 = vrot.slane %v328_v52, 2 }
 0x2e6   :  { %v3700_v7 = vpop.permute.xlu1 %214 }
 0x2e7   :  { %v257_v57 = vrot.slane %v256_v56, 2  ;;  %v218_v26 = vmul.f32 %v3700_v7, %v206_v16  ;;  %v330_v55 = vadd.f32 %v329_v54, %v328_v52 }
 0x2e9   :  { %v258_v58 = vadd.f32 %v257_v57, %v256_v56  ;;  %v331_v56 = vrot.slane %v330_v55, 1 }
 0x2ea   :  { %v3703_v9 = vpop.permute.xlu1 %226 }
 0x2eb   :  { %v259_v59 = vrot.slane %v258_v58, 1  ;;  %v230_v28 = vadd.f32 %v3703_v9, %v218_v26 }
 0x2ed   :  { %v260_v60 = vadd.f32 %v259_v59, %v258_v58  ;;  %v332_v58 = vadd.f32 %v331_v56, %v330_v55 }
 0x2ee   :  { %v3718_v27 = vpop.permute.xlu1 %221 }
 0x2ef   :  { %3145 = vpush %v260_v60  ;;  %v229_v33 = vadd.f32 %v3718_v27, %v217_v15 }
 0x320   :  { %s3146_s30 = spop %3145 }
 0x321   :  { %s264_s27 = smul.f32 0.00048828125, %s3146_s30 }
 0x323   :  { %s265_s8 = sadd.f32 1e-08, %s264_s27 }
 0x325   :  { %v266_v1 = vstv %s265_s8 }
 0x326   :  { %3314 = vrsqrt.f32 %v266_v1 }
 0x333   :  { %v3315_v5 = vpop.eup %3314 }
 0x334   :  { %3147 = vpush %v3315_v5 }
 0x335   :  { %3149 = vpush %v287_v6 }
 0x365   :  { %s3148_s4 = spop %3147 }
 0x366   :  { %v269_v10 = vstv %s3148_s4  ;;  %s3150_s28 = spop %3149 }
 0x367   :  { %v270_v11 = vmul.f32 %v269_v10, %v248_v44  ;;  %v271_v12 = vmul.f32 %v269_v10, %v249_v45  ;;  %s291_s29 = smul.f32 0.00048828125, %s3150_s28 }
 0x369   :  { %v272_v20 = vmul.f32 %v270_v11, %v3707_v17  ;;  %v292_v21 = vstv %s291_s29  ;;  %v273_v23 = vmul.f32 %v271_v12, %v3700_v7  ;;  %s517_s29 = sld [smem:[#allocation3]] }
 0x36a   :  { %v3712_v24 = vsub.f32 %v3655_v18, %v292_v21  ;;  %v3715_v25 = vsub.f32 %v3660_v19, %v292_v21 }
 0x36b   :  { %v275_v14 = vadd.f32 %v273_v23, %v3703_v9  ;;  %v274_v19 = vadd.f32 %v272_v20, %v3718_v27 }
 0x36c   :  { %v295_v29 = vmul.f32 %v3712_v24, %v3712_v24  ;;  %v296_v18 = vmul.f32 %v3715_v25, %v3715_v25 }
 0x36d   :  { %403 = vmatprep.subr.mxu0 %v275_v14 }
 0x36e   :  { %404 = vmatpush1.msra.mxu0 %v230_v28  ;;  %v297_v30 = vadd.f32 %v296_v18, %v295_v29 }
 0x36f   :  { %405 = vmatprep.subr.mxu0 %v274_v19  ;;  %v3773_v5 = vstv %s517_s29 }
 0x370   :  { %298 = vadd.xlane.f32.xlu1 %v297_v30  ;;  %406 = vmatpush1.msra.mxu0 %v229_v33 }
 0x371   :  { %3061 = vmatmul.mubr.msk.f32.vlgmr.msra.gmra.mxu0 %vm371_vm0, %v3732_v34 }
 0x372   :  { %620 = vmatprep.mubr.f32.mxu0 %v3469_v61 }
 0x381   :  { %368 = vperm.xlu1 %3298, %v161_v35  }
 0x3f9   :  { %v299_v36 = vpop.xlane.xlu1 %298 }
 0x3fa   :  { %v300_v37 = vrot.slane %v299_v36, 4 }
 0x3fc   :  { %v301_v38 = vadd.f32 %v300_v37, %v299_v36 }
 0x3fd   :  { %v3740_v44 = vpop.permute.xlu1 %368 }
 0x3fe   :  { %v302_v39 = vrot.slane %v301_v38, 2 }
 0x400   :  { %v303_v40 = vadd.f32 %v302_v39, %v301_v38 }
 0x402   :  { %v304_v41 = vrot.slane %v303_v40, 1 }
 0x404   :  { %v305_v42 = vadd.f32 %v304_v41, %v303_v40 }
 0x406   :  { %3151 = vpush %v305_v42 }
 0x431   :  { %v441_v43 = vpop.f32.mrf.mxu0 }
 0x432   :  { %v3746_v48 = vadd.f32 %v441_v43, %v3740_v44 }
 0x433   :  { %v443_v45 = vpop.f32.mrf.mxu0 }
 0x434   :  { %v3743_v46 = vadd.f32 %v443_v45, %v3740_v44 }
 0x436   :  { %586 = vmatprep.subr.mxu0 %v3743_v46 }
 0x437   :  { %s3152_s1 = spop %3151  ;;  %587 = vmatpush1.msra.mxu0 %v3746_v48 }
 0x438   :  { %s309_s3 = smul.f32 0.00048828125, %s3152_s1  ;;  %3063 = vmatmul.mubr.msk.f32.vlgmr.msra.gmra.mxu0 %vm549_vm1, %v3751_v49 }
 0x439   :  { %626 = vmatprep.mubr.f32.mxu0 %v3469_v61 }
 0x43a   :  { %s310_s27 = sadd.f32 1e-08, %s309_s3 }
 0x43c   :  { %v311_v53 = vstv %s310_s27  ;;  %3064 = vmatmul.mubr.msk.f32.gmra.mxu0 %vm549_vm1, %v3761_v51 }
 0x43d   :  { %3316 = vrsqrt.f32 %v311_v53  ;;  %1523 = vmatprep.mubr.f32.mxu0 %v3469_v61 }
 0x44a   :  { %v3317_v57 = vpop.eup %3316 }
 0x44b   :  { %3153 = vpush %v3317_v57 }
 0x44c   :  { %3155 = vpush %v332_v58 }
 0x47c   :  { %s3766_s8 = spop %3153 }
 0x47d   :  { %s3156_s4 = spop %3155  ;;  %v314_v33 = vstv %s3766_s8 }
 0x47e   :  { %s336_s28 = smul.f32 0.00048828125, %s3156_s4  ;;  %v316_v36 = vmul.f32 %v314_v33, %v3715_v25  ;;  %v315_v38 = vmul.f32 %v314_v33, %v3712_v24 }
 0x480   :  { %v337_v59 = vstv %s336_s28  ;;  %v318_v43 = vmul.f32 %v316_v36, %v3700_v7  ;;  %v317_v52 = vmul.f32 %v315_v38, %v3707_v17 }
 0x481   :  { %v338_v60 = vsub.f32 %v3672_v31, %v337_v59  ;;  %v339_v62 = vsub.f32 %v3677_v32, %v337_v59 }
 0x482   :  { %v320_v54 = vadd.f32 %v318_v43, %v3703_v9  ;;  %v319_v55 = vadd.f32 %v317_v52, %v3718_v27 }
 0x483   :  { %v340_v63 = vmul.f32 %v338_v60, %v338_v60  ;;  %v341_v0 = vmul.f32 %v339_v62, %v339_v62 }
 0x485   :  { %v342_v1 = vadd.f32 %v341_v0, %v340_v63 }
 0x487   :  { %343 = vadd.xlane.f32.xlu1 %v342_v1 }
 0x4f8   :  { %v622_v3 = vpop.f32.mrf.mxu0 }
 0x4f9   :  { %v623_v4 = vadd.f32 %v622_v3, %v3770_v2 }
 0x4fa   :  { %v624_v6 = vpop.f32.mrf.mxu0 }
 0x4fb   :  { %v713_v31 = vmul.f32 %v3773_v5, %v623_v4  ;;  %vm710_vm2 = vcmp.ge.f32.partialorder %v623_v4, 0.0 }
 0x4fc   :  { %v628_v10 = vpop.f32.mrf.mxu0 }
 0x4fd   :  { %v629_v32 = vadd.f32 %v628_v10, %v3775_v8  ;;  %v715_v12 = vsel %vm710_vm2, %v623_v4, %v713_v31 }
 0x4ff   :  { %v714_v11 = vmul.f32 %v3773_v5, %v629_v32  ;;  %vm711_vm3 = vcmp.ge.f32.partialorder %v629_v32, 0.0 }
 0x501   :  { %v716_v13 = vsel %vm711_vm3, %v629_v32, %v714_v11 }
 0x502   :  { %v717_v16 = vadd.f32 %v716_v13, %v715_v12 }
 0x504   :  { %718 = vadd.xlane.f32.xlu0 %v717_v16 }
 0x510   :  { %v344_v20 = vpop.xlane.xlu1 %343 }
 0x511   :  { %v345_v21 = vrot.slane %v344_v20, 4 }
 0x513   :  { %v346_v23 = vadd.f32 %v345_v21, %v344_v20 }
 0x515   :  { %v347_v26 = vrot.slane %v346_v23, 2 }
 0x517   :  { %v348_v14 = vadd.f32 %v347_v26, %v346_v23 }
 0x519   :  { %v349_v15 = vrot.slane %v348_v14, 1 }
 0x51b   :  { %v350_v28 = vadd.f32 %v349_v15, %v348_v14 }
 0x51d   :  { %3157 = vpush %v350_v28 }
 0x54e   :  { %s3158_s9 = spop %3157 }
 0x54f   :  { %s354_s0 = smul.f32 0.00048828125, %s3158_s9 }
 0x551   :  { %s355_s2 = sadd.f32 1e-08, %s354_s0 }
 0x553   :  { %v356_v29 = vstv %s355_s2  ;;  %s3875_s2 = sld [smem:[#allocation9 + $0x1]] }
 0x554   :  { %3318 = vrsqrt.f32 %v356_v29 }
 0x561   :  { %v3319_v18 = vpop.eup %3318 }
 0x562   :  { %3159 = vpush %v3319_v18 }
 0x58d   :  { %v719_v19 = vpop.xlane.xlu0 %718 }
 0x58e   :  { %v720_v30 = vrot.slane %v719_v19, 4 }
 0x590   :  { %v721_v35 = vadd.f32 %v720_v30, %v719_v19 }
 0x592   :  { %v722_v37 = vrot.slane %v721_v35, 2 }
 0x593   :  { %s3160_s5 = spop %3159 }
 0x594   :  { %v359_v39 = vstv %s3160_s5  ;;  %v723_v40 = vadd.f32 %v722_v37, %v721_v35  ;;  %s3906_s5 = sld [smem:[#allocation9 + $0x3]] }
 0x595   :  { %v360_v41 = vmul.f32 %v359_v39, %v338_v60  ;;  %v361_v42 = vmul.f32 %v359_v39, %v339_v62 }
 0x596   :  { %v724_v45 = vrot.slane %v723_v40, 1 }
 0x597   :  { %v362_v47 = vmul.f32 %v360_v41, %v3707_v17  ;;  %v363_v50 = vmul.f32 %v361_v42, %v3700_v7  ;;  %v630_v7 = vpop.f32.mrf.mxu0 }
 0x598   :  { %v725_v53 = vadd.f32 %v724_v45, %v723_v40  ;;  %v631_v17 = vadd.f32 %v630_v7, %v3775_v8 }
 0x599   :  { %v365_v25 = vadd.f32 %v363_v50, %v3703_v9  ;;  %v364_v24 = vadd.f32 %v362_v47, %v3718_v27  ;;  %v625_v9 = vadd.f32 %v624_v6, %v3770_v2 }
 0x59a   :  { %3161 = vpush %v725_v53  ;;  %v782_v27 = vmul.f32 %v3773_v5, %v631_v17  ;;  %vm780_vm4 = vcmp.ge.f32.partialorder %v631_v17, 0.0 }
 0x59b   :  { %474 = vmatprep.subr.mxu1 %v365_v25  ;;  %v781_v60 = vmul.f32 %v3773_v5, %v625_v9  ;;  %vm779_vm5 = vcmp.ge.f32.partialorder %v625_v9, 0.0 }
 0x59c   :  { %475 = vmatpush1.msra.mxu1 %v320_v54  ;;  %v784_v63 = vsel %vm780_vm4, %v631_v17, %v782_v27 }
 0x59d   :  { %476 = vmatprep.subr.mxu1 %v364_v24  ;;  %v783_v0 = vsel %vm779_vm5, %v625_v9, %v781_v60 }
 0x59e   :  { %477 = vmatpush1.msra.mxu1 %v319_v55  ;;  %v785_v1 = vadd.f32 %v784_v63, %v783_v0 }
 0x59f   :  { %3062 = vmatmul.mubr.msk.f32.vlgmr.msra.gmra.mxu1 %vm371_vm0, %v3732_v34 }
 0x5a0   :  { %697 = vmatprep.mubr.f32.mxu1 %v3469_v61 }
 0x5cb   :  { %s3162_s10 = spop %3161 }
 0x5cc   :  { %s729_s11 = smul.f32 0.00048828125, %s3162_s10  ;;  %s3919_s10 = sld [smem:[#allocation9 + $0x4]] }
 0x5ce   :  { %v730_v56 = vstv %s729_s11  ;;  %s3926_s11 = sld [smem:[#allocation9 + $0x5]] }
 0x5cf   :  { %v3796_v57 = vsub.f32 %v715_v12, %v730_v56  ;;  %v3798_v58 = vsub.f32 %v716_v13, %v730_v56 }
 0x5d1   :  { %v733_v59 = vmul.f32 %v3796_v57, %v3796_v57  ;;  %v734_v34 = vmul.f32 %v3798_v58, %v3798_v58 }
 0x5d3   :  { %v735_v62 = vadd.f32 %v734_v34, %v733_v59 }
 0x5d5   :  { %736 = vadd.xlane.f32.xlu1 %v735_v62 }
 0x5d9   :  { %786 = vadd.xlane.f32.xlu1 %v785_v1 }
 0x65e   :  { %v737_v3 = vpop.xlane.xlu1 %736 }
 0x65f   :  { %v512_v4 = vpop.f32.mrf.mxu1  ;;  %v738_v6 = vrot.slane %v737_v3, 4 }
 0x660   :  { %v3810_v11 = vadd.f32 %v512_v4, %v3740_v44 }
 0x661   :  { %v739_v10 = vadd.f32 %v738_v6, %v737_v3  ;;  %v514_v31 = vpop.f32.mrf.mxu1 }
 0x662   :  { %v3807_v32 = vadd.f32 %v514_v31, %v3740_v44  ;;  %v787_v44 = vpop.xlane.xlu1 %786 }
 0x663   :  { %v740_v12 = vrot.slane %v739_v10, 2  ;;  %v788_v21 = vrot.slane %v787_v44, 4 }
 0x664   :  { %663 = vmatprep.subr.mxu1 %v3807_v32 }
 0x665   :  { %664 = vmatpush1.msra.mxu1 %v3810_v11  ;;  %v741_v13 = vadd.f32 %v740_v12, %v739_v10  ;;  %v789_v23 = vadd.f32 %v788_v21, %v787_v44  ;;  %v523_v44 = vld [vmem:[%s4546_s14] sm:$0xff] }
 0x666   :  { %3065 = vmatmul.mubr.msk.f32.vlgmr.msra.gmra.mxu1 %vm549_vm1, %v3751_v49  ;;  %v525_v21 = vld [vmem:[%s4547_s15] sm:$0xff] }
 0x667   :  { %703 = vmatprep.mubr.f32.mxu1 %v3469_v61  ;;  %v742_v16 = vrot.slane %v741_v13, 1  ;;  %v790_v14 = vrot.slane %v789_v23, 2 }
 0x669   :  { %v743_v20 = vadd.f32 %v742_v16, %v741_v13  ;;  %v791_v49 = vadd.f32 %v790_v14, %v789_v23  ;;  %v526_v23 = vld [vmem:[%s4547_s15 + $0x8] sm:$0xff] }
 0x66a   :  { %3066 = vmatmul.mubr.msk.f32.gmra.mxu1 %vm549_vm1, %v3761_v51 }
 0x66b   :  { %3163 = vpush %v743_v20  ;;  %1594 = vmatprep.mubr.f32.mxu1 %v3469_v61  ;;  %v792_v15 = vrot.slane %v791_v49, 1 }
 0x66d   :  { %v793_v29 = vadd.f32 %v792_v15, %v791_v49 }
 0x69c   :  { %s3164_s6 = spop %3163 }
 0x69d   :  { %s747_s1 = smul.f32 0.00048828125, %s3164_s6  ;;  %s3943_s6 = sld [smem:[#allocation9 + $0x6]] }
 0x69f   :  { %s748_s3 = sadd.f32 1e-08, %s747_s1 }
 0x6a0   :  { %s3949_s1 = sld [smem:[#allocation9 + $0x7]] }
 0x6a1   :  { %v749_v26 = vstv %s748_s3 }
 0x6a2   :  { %3320 = vrsqrt.f32 %v749_v26 }
 0x6af   :  { %v3321_v28 = vpop.eup %3320 }
 0x6b0   :  { %3165 = vpush %v3321_v28 }
 0x6b1   :  { %3167 = vpush %v793_v29 }
 0x6e1   :  { %s3820_s7 = spop %3165 }
 0x6e2   :  { %s3168_s30 = spop %3167 }
 0x6e3   :  { %s797_s27 = smul.f32 0.00048828125, %s3168_s30 }
 0x6e5   :  { %v798_v51 = vstv %s797_s27 }
 0x6e6   :  { %v3822_v18 = vsub.f32 %v783_v0, %v798_v51  ;;  %v3824_v19 = vsub.f32 %v784_v63, %v798_v51 }
 0x6e8   :  { %v801_v30 = vmul.f32 %v3822_v18, %v3822_v18  ;;  %v802_v33 = vmul.f32 %v3824_v19, %v3824_v19 }
 0x6ea   :  { %v803_v35 = vadd.f32 %v802_v33, %v801_v30 }
 0x6ec   :  { %804 = vadd.xlane.f32.xlu1 %v803_v35 }
 0x726   :  { %v699_v36 = vpop.f32.mrf.mxu1 }
 0x727   :  { %v700_v37 = vadd.f32 %v699_v36, %v3770_v2 }
 0x728   :  { %v701_v38 = vpop.f32.mrf.mxu1 }
 0x729   :  { %v829_v40 = vmul.f32 %v3773_v5, %v700_v37  ;;  %vm827_vm6 = vcmp.ge.f32.partialorder %v700_v37, 0.0  ;;  %v702_v1 = vadd.f32 %v701_v38, %v3770_v2 }
 0x72a   :  { %v705_v39 = vpop.f32.mrf.mxu1 }
 0x72b   :  { %v706_v41 = vadd.f32 %v705_v39, %v3775_v8  ;;  %v831_v43 = vsel %vm827_vm6, %v700_v37, %v829_v40  ;;  %v877_v13 = vmul.f32 %v3773_v5, %v702_v1  ;;  %vm875_vm9 = vcmp.ge.f32.partialorder %v702_v1, 0.0 }
 0x72c   :  { %v707_v63 = vpop.f32.mrf.mxu1 }
 0x72d   :  { %v830_v42 = vmul.f32 %v3773_v5, %v706_v41  ;;  %vm828_vm7 = vcmp.ge.f32.partialorder %v706_v41, 0.0  ;;  %v708_v0 = vadd.f32 %v707_v63, %v3775_v8  ;;  %v879_v2 = vsel %vm875_vm9, %v702_v1, %v877_v13 }
 0x72f   :  { %v832_v45 = vsel %vm828_vm7, %v706_v41, %v830_v42  ;;  %v878_v10 = vmul.f32 %v3773_v5, %v708_v0  ;;  %vm876_vm8 = vcmp.ge.f32.partialorder %v708_v0, 0.0 }
 0x730   :  { %v833_v47 = vadd.f32 %v832_v45, %v831_v43 }
 0x731   :  { %v880_v16 = vsel %vm876_vm8, %v708_v0, %v878_v10 }
 0x732   :  { %834 = vadd.xlane.f32.xlu1 %v833_v47  ;;  %v881_v20 = vadd.f32 %v880_v16, %v879_v2 }
 0x775   :  { %v805_v50 = vpop.xlane.xlu1 %804 }
 0x776   :  { %v806_v52 = vrot.slane %v805_v50, 4 }
 0x778   :  { %v807_v53 = vadd.f32 %v806_v52, %v805_v50 }
 0x77a   :  { %v808_v25 = vrot.slane %v807_v53, 2 }
 0x77c   :  { %v809_v54 = vadd.f32 %v808_v25, %v807_v53  ;;  %v524_v53 = vld [vmem:[%s4546_s14 + $0x8] sm:$0xff] }
 0x77e   :  { %v810_v24 = vrot.slane %v809_v54, 1 }
 0x780   :  { %v811_v55 = vadd.f32 %v810_v24, %v809_v54  ;;  %v752_v24 = vstv %s3820_s7  ;;  %s3886_s7 = sld [smem:[#allocation9]] }
 0x781   :  { %v754_v0 = vmul.f32 %v752_v24, %v3798_v58 }
 0x782   :  { %3169 = vpush %v811_v55 }
 0x7b3   :  { %s3170_s8 = spop %3169 }
 0x7b4   :  { %s815_s4 = smul.f32 0.00048828125, %s3170_s8 }
 0x7b6   :  { %s816_s28 = sadd.f32 1e-08, %s815_s4 }
 0x7b8   :  { %v817_v7 = vstv %s816_s28 }
 0x7b9   :  { %3322 = vrsqrt.f32 %v817_v7 }
 0x7bb   :  { %v835_v17 = vpop.xlane.xlu1 %834 }
 0x7bc   :  { %v836_v9 = vrot.slane %v835_v17, 4 }
 0x7be   :  { %v837_v56 = vadd.f32 %v836_v9, %v835_v17 }
 0x7c0   :  { %v838_v27 = vrot.slane %v837_v56, 2 }
 0x7c2   :  { %v839_v59 = vadd.f32 %v838_v27, %v837_v56  ;;  %v753_v56 = vmul.f32 %v752_v24, %v3796_v57  ;;  %v996_v24 = vstv %s3906_s5  ;;  %s3080_s5 = sld [smem:[#allocation11 + $0x2]] }
 0x7c4   :  { %v840_v34 = vrot.slane %v839_v59, 1 }
 0x7c6   :  { %v3323_v60 = vpop.eup %3322  ;;  %v841_v62 = vadd.f32 %v840_v34, %v839_v59  ;;  %v162_v34 = vlaneseq }
 0x7c7   :  { %3171 = vpush %v3323_v60 }
 0x7c8   :  { %3173 = vpush %v841_v62 }
 0x7f8   :  { %s3834_s29 = spop %3171 }
 0x7f9   :  { %s3174_s9 = spop %3173  ;;  %v820_v17 = vstv %s3834_s29  ;;  %s3898_s29 = sld [smem:[#allocation9 + $0x2]] }
 0x7fa   :  { %s845_s0 = smul.f32 0.00048828125, %s3174_s9  ;;  %v821_v60 = vmul.f32 %v820_v17, %v3822_v18  ;;  %v822_v1 = vmul.f32 %v820_v17, %v3824_v19  ;;  %s3076_s9 = sld [smem:[#allocation9 + $0xa]] }
 0x7fc   :  { %v846_v3 = vstv %s845_s0  ;;  %s3077_s0 = sld [smem:[#allocation9 + $0xb]] }
 0x7fd   :  { %v3838_v4 = vsub.f32 %v831_v43, %v846_v3  ;;  %v3840_v6 = vsub.f32 %v832_v45, %v846_v3 }
 0x7ff   :  { %v849_v31 = vmul.f32 %v3838_v4, %v3838_v4  ;;  %v850_v12 = vmul.f32 %v3840_v6, %v3840_v6 }
 0x801   :  { %v851_v8 = vadd.f32 %v850_v12, %v849_v31  ;;  %v3894_v12 = vshrl.u32 %v162_v34, 7 }
 0x803   :  { %852 = vadd.xlane.f32.xlu1 %v851_v8  ;;  %vm933_vm10 = vcmp.lt.s32.totalorder %v3894_v12, 1  ;;  %vm923_vm11 = vcmp.ge.s32.totalorder %v3894_v12, 1  ;;  %vm960_vm12 = vcmp.lt.s32.totalorder %v3894_v12, 7 }
 0x807   :  { %882 = vadd.xlane.f32.xlu1 %v881_v20 }
 0x818   :  { %757 = vperm.xlu1 %3298, %v523_v44  }
 0x81c   :  { %769 = vperm.xlu1 %3298, %v525_v21  }
 0x820   :  { %774 = vperm.xlu1 %3298, %v526_v23  }
 0x88c   :  { %v853_v26 = vpop.xlane.xlu1 %852 }
 0x88d   :  { %v854_v14 = vrot.slane %v853_v26, 4 }
 0x88f   :  { %v855_v49 = vadd.f32 %v854_v14, %v853_v26  ;;  %v3916_v14 = vadd.s32 8, %v3894_v12 }
 0x890   :  { %v883_v30 = vpop.xlane.xlu1 %882 }
 0x891   :  { %v856_v15 = vrot.slane %v855_v49, 2  ;;  %v884_v33 = vrot.slane %v883_v30, 4  ;;  %vm951_vm13 = vcmp.lt.s32.totalorder %v3916_v14, 15 }
 0x893   :  { %v857_v28 = vadd.f32 %v856_v15, %v855_v49  ;;  %v885_v35 = vadd.f32 %v884_v33, %v883_v30 }
 0x894   :  { %v3870_v25 = vpop.permute.xlu1 %757 }
 0x895   :  { %v858_v29 = vrot.slane %v857_v28, 1  ;;  %v886_v37 = vrot.slane %v885_v35, 2  ;;  %v765_v63 = vmul.f32 %v3870_v25, %v753_v56  ;;  %v823_v3 = vmul.f32 %v821_v60, %v3870_v25 }
 0x897   :  { %v859_v51 = vadd.f32 %v858_v29, %v857_v28  ;;  %v887_v38 = vadd.f32 %v886_v37, %v885_v35  ;;  %v978_v37 = vstv %s3886_s7 }
 0x898   :  { %v3878_v27 = vpop.permute.xlu1 %769 }
 0x899   :  { %3175 = vpush %v859_v51  ;;  %v888_v39 = vrot.slane %v887_v38, 1  ;;  %v777_v57 = vadd.f32 %v3878_v27, %v765_v63  ;;  %v3901_v8 = vadd.f32 %v823_v3, %v3878_v27 }
 0x89b   :  { %v889_v41 = vadd.f32 %v888_v39, %v887_v38  ;;  %v925_v23 = vrot.slane %v777_v57, 7  ;;  %v926_v29 = vrot.slane %v3901_v8, 7  ;;  %v952_v51 = vrot.slane %v777_v57, 1 }
 0x8ca   :  { %s3176_s3 = spop %3175 }
 0x8cb   :  { %s863_s30 = smul.f32 0.00048828125, %s3176_s3  ;;  %s3960_s3 = sld [smem:[#allocation9 + $0x8]] }
 0x8cd   :  { %s864_s27 = sadd.f32 1e-08, %s863_s30 }
 0x8cf   :  { %v865_v36 = vstv %s864_s27 }
 0x8d0   :  { %3324 = vrsqrt.f32 %v865_v36  ;;  %v953_v36 = vrot.slane %v3901_v8, 1 }
 0x8dd   :  { %v3325_v40 = vpop.eup %3324 }
 0x8de   :  { %3177 = vpush %v3325_v40 }
 0x8df   :  { %3179 = vpush %v889_v41 }
 0x90f   :  { %s3857_s8 = spop %3177 }
 0x910   :  { %s3180_s4 = spop %3179  ;;  %v868_v55 = vstv %s3857_s8 }
 0x911   :  { %s893_s28 = smul.f32 0.00048828125, %s3180_s4  ;;  %v869_v59 = vmul.f32 %v868_v55, %v3838_v4  ;;  %v870_v4 = vmul.f32 %v868_v55, %v3840_v6  ;;  %s3075_s4 = sld [smem:[#allocation9 + $0x9]] }
 0x913   :  { %v894_v42 = vstv %s893_s28  ;;  %v871_v31 = vmul.f32 %v869_v59, %v3870_v25 }
 0x914   :  { %v3859_v43 = vsub.f32 %v879_v2, %v894_v42  ;;  %v3861_v45 = vsub.f32 %v880_v16, %v894_v42  ;;  %v3903_v16 = vpop.permute.xlu1 %774  ;;  %v984_v2 = vstv %s3875_s2  ;;  %s1049_s2 = sld [smem:[#allocation8]] }
 0x915   :  { %v3912_v26 = vadd.f32 %v871_v31, %v3878_v27  ;;  %v985_v33 = vmul.f32 %v984_v2, %v777_v57 }
 0x916   :  { %v897_v47 = vmul.f32 %v3859_v43, %v3859_v43  ;;  %v898_v50 = vmul.f32 %v3861_v45, %v3861_v45 }
 0x917   :  { %v927_v41 = vrot.slane %v3912_v26, 7 }
 0x918   :  { %v899_v52 = vadd.f32 %v898_v50, %v897_v47  ;;  %v990_v50 = vstv %s3898_s29 }
 0x91a   :  { %900 = vadd.xlane.f32.xlu0 %v899_v52 }
 0x930   :  { %762 = vperm.xlu0 %3299, %v524_v53  }
 0x9a3   :  { %v901_v54 = vpop.xlane.xlu0 %900 }
 0x9a4   :  { %v902_v7 = vrot.slane %v901_v54, 4 }
 0x9a6   :  { %v903_v9 = vadd.f32 %v902_v7, %v901_v54 }
 0x9a8   :  { %v904_v62 = vrot.slane %v903_v9, 2 }
 0x9aa   :  { %v905_v10 = vadd.f32 %v904_v62, %v903_v9 }
 0x9ab   :  { %v3891_v18 = vpop.permute.xlu0 %762 }
 0x9ac   :  { %v766_v58 = vmul.f32 %v3891_v18, %v754_v0  ;;  %v824_v19 = vmul.f32 %v822_v1, %v3891_v18  ;;  %v906_v13 = vrot.slane %v905_v10, 1  ;;  %v872_v6 = vmul.f32 %v870_v4, %v3891_v18 }
 0x9ad   :  { %v1002_v1 = vstv %s3919_s10  ;;  %v1008_v4 = vstv %s3926_s11  ;;  %s3079_s10 = sld [smem:[#allocation12 + $0x1]] }
 0x9ae   :  { %v778_v20 = vadd.f32 %v3903_v16, %v766_v58  ;;  %v826_v44 = vadd.f32 %v824_v19, %v3903_v16  ;;  %v907_v21 = vadd.f32 %v906_v13, %v905_v10  ;;  %v3924_v30 = vadd.f32 %v872_v6, %v3903_v16  ;;  %s3082_s11 = sld [smem:[#allocation11 + $0x3]] }
 0x9af   :  { %v954_v6 = vrot.slane %v3912_v26, 1 }
 0x9b0   :  { %v929_v49 = vrot.slane %v778_v20, 7  ;;  %v930_v15 = vrot.slane %v826_v44, 7  ;;  %v956_v28 = vrot.slane %v778_v20, 1  ;;  %3181 = vpush %v907_v21  ;;  %v957_v42 = vrot.slane %v826_v44, 1 }
 0x9b1   :  { %v931_v52 = vrot.slane %v3924_v30, 7  ;;  %v986_v9 = vmul.f32 %v984_v2, %v778_v20  ;;  %v958_v31 = vrot.slane %v3924_v30, 1  ;;  %v1003_v21 = vmul.f32 %v1002_v1, %v3901_v8 }
 0x9b2   :  { %v938_v35 = vsel %vm933_vm10, %v929_v49, %v925_v23  ;;  %v934_v38 = vsel %vm933_vm10, %v925_v23, %v929_v49  ;;  %v939_v39 = vsel %vm933_vm10, %v930_v15, %v926_v29  ;;  %v961_v47 = vsel %vm960_vm12, %v952_v51, %v956_v28 }
 0x9b3   :  { %v942_v40 = vsel %vm923_vm11, %v938_v35, 0.0  ;;  %v965_v53 = vsel %vm960_vm12, %v956_v28, %v952_v51  ;;  %v943_v55 = vsel %vm923_vm11, %v939_v39, 0.0  ;;  %v980_v17 = vmul.f32 %v978_v37, %v934_v38 }
 0x9b4   :  { %v979_v54 = vmul.f32 %v978_v37, %v942_v40  ;;  %v973_v7 = vsel %vm951_vm13, %v965_v53, 0.0  ;;  %v935_v56 = vsel %vm933_vm10, %v926_v29, %v930_v15  ;;  %v991_v60 = vmul.f32 %v990_v50, %v961_v47 }
 0x9b5   :  { %v992_v62 = vmul.f32 %v990_v50, %v973_v7  ;;  %v966_v63 = vsel %vm960_vm12, %v957_v42, %v953_v36  ;;  %v988_v0 = vadd.f32 %v986_v9, %v980_v17  ;;  %v940_v3 = vsel %vm933_vm10, %v931_v52, %v927_v41 }
 0x9b6   :  { %v987_v59 = vadd.f32 %v985_v33, %v979_v54  ;;  %v997_v57 = vmul.f32 %v996_v24, %v943_v55  ;;  %v962_v58 = vsel %vm960_vm12, %v953_v36, %v957_v42  ;;  %v998_v13 = vmul.f32 %v996_v24, %v935_v56 }
 0x9b7   :  { %v994_v19 = vadd.f32 %v992_v62, %v988_v0  ;;  %v974_v2 = vsel %vm951_vm13, %v966_v63, 0.0  ;;  %v944_v23 = vsel %vm923_vm11, %v940_v3, 0.0  ;;  %v1004_v15 = vmul.f32 %v1002_v1, %v826_v44 }
 0x9b8   :  { %v993_v10 = vadd.f32 %v991_v60, %v987_v59  ;;  %v1014_v28 = vstv %s3943_s6  ;;  %v936_v29 = vsel %vm933_vm10, %v927_v41, %v931_v52  ;;  %v1009_v33 = vmul.f32 %v1008_v4, %v962_v58 }
 0x9b9   :  { %v1000_v49 = vadd.f32 %v998_v13, %v994_v19  ;;  %v1020_v35 = vstv %s3949_s1  ;;  %v967_v36 = vsel %vm960_vm12, %v958_v31, %v954_v6  ;;  %v1010_v38 = vmul.f32 %v1008_v4, %v974_v2 }
 0x9ba   :  { %v999_v20 = vadd.f32 %v997_v57, %v993_v10  ;;  %v1015_v8 = vmul.f32 %v1014_v28, %v944_v23  ;;  %v963_v40 = vsel %vm960_vm12, %v954_v6, %v958_v31  ;;  %v1016_v47 = vmul.f32 %v1014_v28, %v936_v29 }
 0x9bb   :  { %v1006_v37 = vadd.f32 %v1004_v15, %v1000_v49  ;;  %v1026_v44 = vstv %s3960_s3  ;;  %v1021_v50 = vmul.f32 %v1020_v35, %v3912_v26  ;;  %v975_v41 = vsel %vm951_vm13, %v967_v36, 0.0 }
 0x9bc   :  { %v1005_v51 = vadd.f32 %v1003_v21, %v999_v20  ;;  %v1022_v54 = vmul.f32 %v1020_v35, %v3924_v30  ;;  %v1027_v55 = vmul.f32 %v1026_v44, %v963_v40  ;;  %v1028_v17 = vmul.f32 %v1026_v44, %v975_v41 }
 0x9bd   :  { %v1012_v42 = vadd.f32 %v1010_v38, %v1006_v37  ;;  %v1032_v10 = vstv %s3075_s4  ;;  %v1038_v19 = vstv %s3076_s9  ;;  %v1044_v23 = vstv %s3077_s0  ;;  %s3473_s4 = smov 1   ;;  %s1232_s0 = sld [smem:[#allocation11]] }
 0x9be   :  { %v1011_v39 = vadd.f32 %v1009_v33, %v1005_v51  ;;  %v1050_v38 = vstv %s1049_s2  ;;  %s1236_s2 = sld [smem:[#allocation12]] }
 0x9bf   :  { %v1018_v53 = vadd.f32 %v1016_v47, %v1012_v42 }
 0x9c0   :  { %v1017_v52 = vadd.f32 %v1015_v8, %v1011_v39 }
 0x9c1   :  { %v1024_v7 = vadd.f32 %v1022_v54, %v1018_v53 }
 0x9c2   :  { %v1023_v24 = vadd.f32 %v1021_v50, %v1017_v52 }
 0x9c3   :  { %v1030_v56 = vadd.f32 %v1028_v17, %v1024_v7 }
 0x9c4   :  { %v1029_v9 = vadd.f32 %v1027_v55, %v1023_v24 }
 0x9e1   :  { %s3182_s30 = spop %3181 }
 0x9e2   :  { %s911_s27 = smul.f32 0.00048828125, %s3182_s30 }
 0x9e4   :  { %s912_s8 = sadd.f32 1e-08, %s911_s27 }
 0x9e6   :  { %v913_v59 = vstv %s912_s8  ;;  %s3472_s8 = smov 127  }
 0x9e7   :  { %3326 = vrsqrt.f32 %v913_v59 }
 0x9f4   :  { %v3327_v60 = vpop.eup %3326 }
 0x9f5   :  { %3183 = vpush %v3327_v60 }
 0xa26   :  { %s3184_s28 = spop %3183 }
 0xa27   :  { %v916_v26 = vstv %s3184_s28 }
 0xa28   :  { %v917_v62 = vmul.f32 %v916_v26, %v3859_v43  ;;  %v918_v30 = vmul.f32 %v916_v26, %v3861_v45 }
 0xa2a   :  { %v919_v63 = vmul.f32 %v917_v62, %v3870_v25  ;;  %v920_v0 = vmul.f32 %v918_v30, %v3891_v18 }
 0xa2c   :  { %v921_v1 = vadd.f32 %v919_v63, %v3878_v27  ;;  %v922_v3 = vadd.f32 %v920_v0, %v3903_v16  ;;  %v528_v63 = vld [vmem:[%s4548_s16 + $0x8] sm:$0xff]  ;;  %v527_v0 = vld [vmem:[%s4548_s16] sm:$0xff] }
 0xa2e   :  { %v928_v57 = vrot.slane %v921_v1, 7  ;;  %v932_v4 = vrot.slane %v922_v3, 7  ;;  %v955_v31 = vrot.slane %v921_v1, 1  ;;  %v959_v58 = vrot.slane %v922_v3, 1 }
 0xa2f   :  { %v1040_v49 = vmul.f32 %v1038_v19, %v922_v3  ;;  %v1039_v29 = vmul.f32 %v1038_v19, %v921_v1  ;;  %v3470_v1 = vmov 1   ;;  %v3471_v3 = vmov 2  }
 0xa30   :  { %v937_v43 = vsel %vm933_vm10, %v928_v57, %v932_v4  ;;  %v941_v45 = vsel %vm933_vm10, %v932_v4, %v928_v57  ;;  %v968_v13 = vsel %vm960_vm12, %v959_v58, %v955_v31  ;;  %v964_v15 = vsel %vm960_vm12, %v955_v31, %v959_v58  ;;  %3300 = vset.pattern.permute.xlu0 %v3470_v1 }
 0xa31   :  { %v945_v6 = vsel %vm923_vm11, %v941_v45, 0.0  ;;  %v1034_v2 = vmul.f32 %v1032_v10, %v937_v43  ;;  %v976_v20 = vsel %vm951_vm13, %v968_v13, 0.0  ;;  %v1045_v37 = vmul.f32 %v1044_v23, %v964_v15  ;;  %v529_v15 = vld [vmem:[%s4549_s17] sm:$0xff] }
 0xa32   :  { %v1033_v21 = vmul.f32 %v1032_v10, %v945_v6  ;;  %v1046_v35 = vmul.f32 %v1044_v23, %v976_v20 }
 0xa33   :  { %v1036_v28 = vadd.f32 %v1034_v2, %v1030_v56 }
 0xa34   :  { %v1035_v51 = vadd.f32 %v1033_v21, %v1029_v9 }
 0xa35   :  { %v1042_v33 = vadd.f32 %v1040_v49, %v1036_v28 }
 0xa36   :  { %v1041_v36 = vadd.f32 %v1039_v29, %v1035_v51  ;;  %v530_v29 = vld [vmem:[%s4549_s17 + $0x8] sm:$0xff] }
 0xa37   :  { %v1048_v39 = vadd.f32 %v1046_v35, %v1042_v33 }
 0xa38   :  { %v1047_v8 = vadd.f32 %v1045_v37, %v1041_v36 }
 0xa39   :  { %v1052_v40 = vadd.f32 %v1050_v38, %v1048_v39 }
 0xa3a   :  { %v1051_v42 = vadd.f32 %v1050_v38, %v1047_v8  ;;  %v4030_v38 = vand.u32 127, %v162_v34 }
 0xa3b   :  { %vm1054_vm14 = vcmp.ge.f32.partialorder %v1052_v40, 0.0  ;;  %v1056_v47 = vmul.f32 %v1052_v40, %v3773_v5 }
 0xa3c   :  { %vm1053_vm15 = vcmp.ge.f32.partialorder %v1051_v42, 0.0  ;;  %v1055_v44 = vmul.f32 %v1051_v42, %v3773_v5  ;;  %vm1101_vm2 = vcmp.ge.s32.totalorder %v4030_v38, 1  ;;  %vm1108_vm3 = vcmp.lt.s32.totalorder %v4030_v38, 127 }
 0xa3d   :  { %v1058_v50 = vsel %vm1054_vm14, %v1052_v40, %v1056_v47 }
 0xa3e   :  { %v1057_v41 = vsel %vm1053_vm15, %v1051_v42, %v1055_v44 }
 0xa3f   :  { %v1059_v52 = vadd.f32 %v1058_v50, %v1057_v41 }
 0xa41   :  { %1060 = vadd.xlane.f32.xlu0 %v1059_v52 }
 0xa57   :  { %1128 = vperm.xlu0 %3300, %v527_v0  }
 0xa5b   :  { %3303 = vset.pattern.permute.xlu0 %v3471_v3 }
 0xa5c   :  { %1144 = vperm.xlu0 %3303, %v528_v63  }
 0xa60   :  { %3304 = vset.pattern.permute.xlu0 %v3468_v22 }
 0xa61   :  { %1117 = vperm.xlu0 %3304, %v527_v0  }
 0xaca   :  { %v1061_v53 = vpop.xlane.xlu0 %1060 }
 0xacb   :  { %v1062_v54 = vrot.slane %v1061_v53, 4 }
 0xacd   :  { %v1063_v24 = vadd.f32 %v1062_v54, %v1061_v53 }
 0xacf   :  { %v1064_v55 = vrot.slane %v1063_v24, 2 }
 0xad1   :  { %v1065_v7 = vadd.f32 %v1064_v55, %v1063_v24 }
 0xad2   :  { %v1129_v35 = vpop.permute.xlu0 %1128 }
 0xad3   :  { %v1066_v17 = vrot.slane %v1065_v7, 1 }
 0xad5   :  { %v1067_v9 = vadd.f32 %v1066_v17, %v1065_v7 }
 0xad7   :  { %3185 = vpush %v1067_v9  ;;  %v1145_v37 = vpop.permute.xlu0 %1144 }
 0xadc   :  { %v1118_v8 = vpop.permute.xlu0 %1117 }
 0xb08   :  { %s3186_s7 = spop %3185 }
 0xb09   :  { %s1071_s29 = smul.f32 0.00048828125, %s3186_s7  ;;  %s518_s7 = sld [smem:[#allocation6]] }
 0xb0b   :  { %v1072_v56 = vstv %s1071_s29  ;;  %s3078_s29 = sld [smem:[#allocation11 + $0x1]] }
 0xb0c   :  { %v1073_v59 = vsub.f32 %v1057_v41, %v1072_v56  ;;  %v1074_v60 = vsub.f32 %v1058_v50, %v1072_v56 }
 0xb0e   :  { %v1075_v26 = vmul.f32 %v1073_v59, %v1073_v59  ;;  %v1076_v62 = vmul.f32 %v1074_v60, %v1074_v60 }
 0xb10   :  { %v1077_v30 = vadd.f32 %v1076_v62, %v1075_v26  ;;  %v1165_v26 = vstv %s518_s7 }
 0xb12   :  { %1078 = vadd.xlane.f32.xlu1 %v1077_v30 }
 0xb23   :  { %1122 = vperm.xlu1 %3298, %v528_v63  }
 0xb27   :  { %3301 = vset.pattern.permute.xlu1 %v3470_v1 }
 0xb28   :  { %1132 = vperm.xlu1 %3301, %v528_v63  }
 0xb2c   :  { %3302 = vset.pattern.permute.xlu1 %v3471_v3 }
 0xb2d   :  { %1140 = vperm.xlu1 %3302, %v527_v0  }
 0xb31   :  { %3305 = vset.pattern.permute.xlu1 %v3468_v22 }
 0xb9b   :  { %v1079_v10 = vpop.xlane.xlu1 %1078 }
 0xb9c   :  { %v1080_v57 = vrot.slane %v1079_v10, 4 }
 0xb9e   :  { %v1081_v4 = vadd.f32 %v1080_v57, %v1079_v10 }
 0xb9f   :  { %v1123_v51 = vpop.permute.xlu1 %1122 }
 0xba0   :  { %v1082_v31 = vrot.slane %v1081_v4, 2 }
 0xba2   :  { %v1083_v58 = vadd.f32 %v1082_v31, %v1081_v4 }
 0xba3   :  { %v1133_v33 = vpop.permute.xlu1 %1132 }
 0xba4   :  { %v1084_v43 = vrot.slane %v1083_v58, 1 }
 0xba6   :  { %v1085_v45 = vadd.f32 %v1084_v43, %v1083_v58  ;;  %v532_v58 = vld [vmem:[%s4550_s18 + $0x8] sm:$0xff]  ;;  %v533_v43 = vld [vmem:[%s4551_s19] sm:$0xff] }
 0xba8   :  { %3187 = vpush %v1085_v45  ;;  %v1141_v36 = vpop.permute.xlu1 %1140 }
 0xbd9   :  { %s3188_s1 = spop %3187 }
 0xbda   :  { %s1089_s3 = smul.f32 0.00048828125, %s3188_s1 }
 0xbdc   :  { %s1090_s30 = sadd.f32 1e-08, %s1089_s3 }
 0xbde   :  { %v1091_v19 = vstv %s1090_s30 }
 0xbdf   :  { %3328 = vrsqrt.f32 %v1091_v19 }
 0xbec   :  { %v3329_v13 = vpop.eup %3328 }
 0xbed   :  { %3189 = vpush %v3329_v13 }
 0xc1e   :  { %s3190_s27 = spop %3189 }
 0xc1f   :  { %v1094_v6 = vstv %s3190_s27 }
 0xc20   :  { %v1095_v2 = vmul.f32 %v1094_v6, %v1073_v59  ;;  %v1096_v20 = vmul.f32 %v1094_v6, %v1074_v60 }
 0xc22   :  { %v1097_v21 = vmul.f32 %v1095_v2, %v3870_v25  ;;  %v1098_v23 = vmul.f32 %v1096_v20, %v3891_v18 }
 0xc24   :  { %v1099_v49 = vadd.f32 %v1097_v21, %v3878_v27  ;;  %v1100_v28 = vadd.f32 %v1098_v23, %v3903_v16 }
 0xc26   :  { %1109 = vrot.lane.b32.xlu0 %v1099_v49, %s3472_s8  ;;  %1102 = vrot.lane.b32.xlu1 %v1099_v49, %s3473_s4  ;;  %v1135_v50 = vmul.f32 %v1129_v35, %v1099_v49  ;;  %v1136_v17 = vmul.f32 %v1133_v33, %v1100_v28  ;;  %v531_v33 = vld [vmem:[%s4550_s18] sm:$0xff]  ;;  %v534_v35 = vld [vmem:[%s4551_s19 + $0x8] sm:$0xff] }
 0xc2a   :  { %1153 = vperm.xlu0 %3304, %v529_v15   ;;  %1104 = vrot.lane.b32.xlu1 %v1100_v28, %s3473_s4 }
 0xc2e   :  { %1111 = vrot.lane.b32.xlu1 %v1100_v28, %s3472_s8 }
 0xc32   :  { %1158 = vperm.xlu1 %3305, %v530_v29  }
 0xc98   :  { %v1103_v39 = vpop.permute.xlu1 %1102  ;;  %v1110_v44 = vpop.permute.xlu0 %1109 }
 0xc99   :  { %v1106_v42 = vsel %vm1101_vm2, %v1103_v39, 0.0  ;;  %v1113_v52 = vsel %vm1108_vm3, %v1110_v44, 0.0 }
 0xc9a   :  { %v1125_v47 = vmul.f32 %v1118_v8, %v1106_v42  ;;  %v1147_v55 = vmul.f32 %v1141_v36, %v1113_v52 }
 0xc9c   :  { %v1105_v40 = vpop.permute.xlu1 %1104  ;;  %v1137_v54 = vadd.f32 %v1135_v50, %v1125_v47 }
 0xc9d   :  { %v1107_v53 = vsel %vm1101_vm2, %v1105_v40, 0.0 }
 0xc9e   :  { %v1126_v34 = vmul.f32 %v1123_v51, %v1107_v53  ;;  %v1149_v56 = vadd.f32 %v1147_v55, %v1137_v54 }
 0xca0   :  { %v1112_v41 = vpop.permute.xlu1 %1111  ;;  %v1138_v59 = vadd.f32 %v1136_v17, %v1126_v34 }
 0xca1   :  { %v1114_v24 = vsel %vm1108_vm3, %v1112_v41, 0.0 }
 0xca2   :  { %v1148_v9 = vmul.f32 %v1145_v37, %v1114_v24 }
 0xca4   :  { %v1150_v62 = vadd.f32 %v1148_v9, %v1138_v59  ;;  %v1233_v9 = vstv %s1232_s0 }
 0xca5   :  { %v1154_v7 = vpop.permute.xlu0 %1153 }
 0xca6   :  { %v1161_v60 = vadd.f32 %v1154_v7, %v1149_v56 }
 0xca8   :  { %v1166_v63 = vmul.f32 %v1165_v26, %v1161_v60  ;;  %vm1163_vm4 = vcmp.ge.f32.partialorder %v1161_v60, 0.0 }
 0xcaa   :  { %v1168_v57 = vsel %vm1163_vm4, %v1161_v60, %v1166_v63  ;;  %v1237_v60 = vstv %s1236_s2 }
 0xcad   :  { %v1159_v30 = vpop.permute.xlu1 %1158 }
 0xcae   :  { %v1162_v0 = vadd.f32 %v1159_v30, %v1150_v62 }
 0xcb0   :  { %v1167_v10 = vmul.f32 %v1165_v26, %v1162_v0  ;;  %vm1164_vm5 = vcmp.ge.f32.partialorder %v1162_v0, 0.0 }
 0xcb2   :  { %v1169_v4 = vsel %vm1164_vm5, %v1162_v0, %v1167_v10 }
 0xcb3   :  { %v1170_v31 = vadd.f32 %v1169_v4, %v1168_v57 }
 0xcb5   :  { %1171 = vadd.xlane.f32.xlu1 %v1170_v31 }
 0xcc6   :  { %1215 = vperm.xlu1 %3305, %v532_v58  }
 0xcca   :  { %1222 = vperm.xlu1 %3305, %v533_v43  }
 0xd3e   :  { %v1172_v45 = vpop.xlane.xlu1 %1171 }
 0xd3f   :  { %v1173_v19 = vrot.slane %v1172_v45, 4 }
 0xd41   :  { %v1174_v13 = vadd.f32 %v1173_v19, %v1172_v45 }
 0xd42   :  { %v1216_v41 = vpop.permute.xlu1 %1215 }
 0xd43   :  { %v1175_v6 = vrot.slane %v1174_v13, 2 }
 0xd45   :  { %v1176_v2 = vadd.f32 %v1175_v6, %v1174_v13 }
 0xd46   :  { %v1223_v7 = vpop.permute.xlu1 %1222 }
 0xd47   :  { %v1177_v20 = vrot.slane %v1176_v2, 1 }
 0xd49   :  { %v1178_v21 = vadd.f32 %v1177_v20, %v1176_v2  ;;  %v1289_v20 = vstv %s3078_s29 }
 0xd4b   :  { %3191 = vpush %v1178_v21 }
 0xd7c   :  { %s3192_s6 = spop %3191 }
 0xd7d   :  { %s1182_s1 = smul.f32 0.00048828125, %s3192_s6  ;;  %s3081_s6 = sld [smem:[#allocation12 + $0x2]] }
 0xd7f   :  { %v1183_v23 = vstv %s1182_s1  ;;  %s3083_s1 = sld [smem:[#allocation12 + $0x3]] }
 0xd80   :  { %v1184_v49 = vsub.f32 %v1168_v57, %v1183_v23  ;;  %v1185_v15 = vsub.f32 %v1169_v4, %v1183_v23 }
 0xd82   :  { %v1186_v28 = vmul.f32 %v1184_v49, %v1184_v49  ;;  %v1187_v29 = vmul.f32 %v1185_v15, %v1185_v15 }
 0xd84   :  { %v1188_v51 = vadd.f32 %v1187_v29, %v1186_v28  ;;  %v1401_v28 = vstv %s3082_s11 }
 0xd86   :  { %1189 = vadd.xlane.f32.xlu0 %v1188_v51 }
 0xd9c   :  { %1210 = vperm.xlu0 %3304, %v531_v33  }
 0xda0   :  { %1227 = vperm.xlu0 %3304, %v534_v35  }
 0xe0f   :  { %v1190_v36 = vpop.xlane.xlu0 %1189 }
 0xe10   :  { %v1191_v37 = vrot.slane %v1190_v36, 4 }
 0xe12   :  { %v1192_v39 = vadd.f32 %v1191_v37, %v1190_v36  ;;  %v1349_v36 = vstv %s3081_s6 }
 0xe14   :  { %v1193_v8 = vrot.slane %v1192_v39, 2 }
 0xe16   :  { %v1194_v40 = vadd.f32 %v1193_v8, %v1192_v39  ;;  %v1405_v39 = vstv %s3083_s1  ;;  %s3088_s1 = sld [smem:[#allocation3 + $0x1]] }
 0xe17   :  { %v1211_v52 = vpop.permute.xlu0 %1210 }
 0xe18   :  { %v1195_v42 = vrot.slane %v1194_v40, 1 }
 0xe1a   :  { %v1196_v47 = vadd.f32 %v1195_v42, %v1194_v40 }
 0xe1b   :  { %v1228_v17 = vpop.permute.xlu0 %1227 }
 0xe1c   :  { %3193 = vpush %v1196_v47 }
 0xe4d   :  { %s3194_s4 = spop %3193 }
 0xe4e   :  { %s1200_s28 = smul.f32 0.00048828125, %s3194_s4 }
 0xe50   :  { %s1201_s9 = sadd.f32 1e-08, %s1200_s28 }
 0xe52   :  { %v1202_v44 = vstv %s1201_s9 }
 0xe53   :  { %3330 = vrsqrt.f32 %v1202_v44 }
 0xe60   :  { %v3331_v50 = vpop.eup %3330 }
 0xe61   :  { %3195 = vpush %v3331_v50 }
 0xe92   :  { %s3196_s7 = spop %3195 }
 0xe93   :  { %v1205_v53 = vstv %s3196_s7 }
 0xe94   :  { %v1206_v54 = vmul.f32 %v1205_v53, %v1184_v49  ;;  %v1207_v24 = vmul.f32 %v1205_v53, %v1185_v15  ;;  %v1293_v49 = vstv %s3079_s10  ;;  %v1345_v15 = vstv %s3080_s5 }
 0xe96   :  { %v1218_v55 = vmul.f32 %v1211_v52, %v1206_v54  ;;  %v1219_v34 = vmul.f32 %v1216_v41, %v1207_v24 }
 0xe98   :  { %v1230_v56 = vadd.f32 %v1223_v7, %v1218_v55  ;;  %v1231_v59 = vadd.f32 %v1228_v17, %v1219_v34 }
 0xe9a   :  { %v1234_v26 = vmul.f32 %v1233_v9, %v1230_v56  ;;  %v1235_v62 = vmul.f32 %v1233_v9, %v1231_v59  ;;  %v1290_v21 = vmul.f32 %v1289_v20, %v1230_v56  ;;  %v1291_v23 = vmul.f32 %v1289_v20, %v1231_v59 }
 0xe9b   :  { %v1346_v33 = vmul.f32 %v1345_v15, %v1230_v56  ;;  %v1347_v35 = vmul.f32 %v1345_v15, %v1231_v59  ;;  %v1402_v42 = vmul.f32 %v1401_v28, %v1230_v56  ;;  %v1403_v47 = vmul.f32 %v1401_v28, %v1231_v59 }
 0xe9c   :  { %v1238_v30 = vadd.f32 %v1237_v60, %v1234_v26  ;;  %v1239_v63 = vadd.f32 %v1237_v60, %v1235_v62  ;;  %v1294_v29 = vadd.f32 %v1293_v49, %v1290_v21  ;;  %v1295_v51 = vadd.f32 %v1293_v49, %v1291_v23 }
 0xe9d   :  { %v1350_v41 = vadd.f32 %v1349_v36, %v1346_v33  ;;  %v1351_v52 = vadd.f32 %v1349_v36, %v1347_v35  ;;  %v1406_v55 = vadd.f32 %v1405_v39, %v1402_v42  ;;  %v1407_v34 = vadd.f32 %v1405_v39, %v1403_v47 }
 0xe9e   :  { %vm1240_vm6 = vcmp.ge.f32.partialorder %v1238_v30, 0.0  ;;  %vm1241_vm7 = vcmp.ge.f32.partialorder %v1239_v63, 0.0  ;;  %v1242_v0 = vmul.f32 %v1238_v30, %v3773_v5  ;;  %v1243_v10 = vmul.f32 %v1239_v63, %v3773_v5 }
 0xe9f   :  { %v1298_v44 = vmul.f32 %v1294_v29, %v3773_v5  ;;  %v1299_v50 = vmul.f32 %v1295_v51, %v3773_v5  ;;  %vm1296_vm8 = vcmp.ge.f32.partialorder %v1294_v29, 0.0  ;;  %vm1297_vm9 = vcmp.ge.f32.partialorder %v1295_v51, 0.0 }
 0xea0   :  { %v1244_v57 = vsel %vm1240_vm6, %v1238_v30, %v1242_v0  ;;  %v1245_v4 = vsel %vm1241_vm7, %v1239_v63, %v1243_v10  ;;  %v1354_v9 = vmul.f32 %v1350_v41, %v3773_v5  ;;  %v1355_v56 = vmul.f32 %v1351_v52, %v3773_v5 }
 0xea1   :  { %v1246_v31 = vadd.f32 %v1245_v4, %v1244_v57  ;;  %v1300_v7 = vsel %vm1296_vm8, %v1294_v29, %v1298_v44  ;;  %v1301_v17 = vsel %vm1297_vm9, %v1295_v51, %v1299_v50  ;;  %vm1352_vm14 = vcmp.ge.f32.partialorder %v1350_v41, 0.0 }
 0xea2   :  { %vm1353_vm15 = vcmp.ge.f32.partialorder %v1351_v52, 0.0  ;;  %v1302_v59 = vadd.f32 %v1301_v17, %v1300_v7  ;;  %v4060_v60 = vsel %vm1352_vm14, %v1350_v41, %v1354_v9  ;;  %v1410_v62 = vmul.f32 %v1406_v55, %v3773_v5 }
 0xea3   :  { %1247 = vadd.xlane.f32.xlu1 %v1246_v31  ;;  %v4062_v26 = vsel %vm1353_vm15, %v1351_v52, %v1355_v56  ;;  %v1411_v30 = vmul.f32 %v1407_v34, %v3773_v5  ;;  %vm1408_vm2 = vcmp.ge.f32.partialorder %v1406_v55, 0.0  ;;  %vm1409_vm3 = vcmp.ge.f32.partialorder %v1407_v34, 0.0 }
 0xea4   :  { %v1358_v63 = vadd.f32 %v4062_v26, %v4060_v60  ;;  %v4068_v0 = vsel %vm1408_vm2, %v1406_v55, %v1410_v62 }
 0xea5   :  { %v4070_v10 = vsel %vm1409_vm3, %v1407_v34, %v1411_v30 }
 0xf2c   :  { %v1248_v58 = vpop.xlane.xlu1 %1247 }
 0xf2d   :  { %v1249_v43 = vrot.slane %v1248_v58, 4 }
 0xf2f   :  { %v1250_v45 = vadd.f32 %v1249_v43, %v1248_v58 }
 0xf31   :  { %v1251_v19 = vrot.slane %v1250_v45, 2 }
 0xf33   :  { %v1252_v13 = vadd.f32 %v1251_v19, %v1250_v45 }
 0xf35   :  { %v1253_v6 = vrot.slane %v1252_v13, 1 }
 0xf37   :  { %v1254_v2 = vadd.f32 %v1253_v6, %v1252_v13 }
 0xf39   :  { %3197 = vpush %v1254_v2 }
 0xf6a   :  { %s3198_s3 = spop %3197 }
 0xf6b   :  { %s1258_s30 = smul.f32 0.00048828125, %s3198_s3 }
 0xf6d   :  { %v1259_v37 = vstv %s1258_s30 }
 0xf6e   :  { %v4048_v8 = vsub.f32 %v1244_v57, %v1259_v37  ;;  %v4050_v40 = vsub.f32 %v1245_v4, %v1259_v37  ;;  %v1414_v57 = vadd.f32 %v4070_v10, %v4068_v0 }
 0xf70   :  { %v1262_v53 = vmul.f32 %v4048_v8, %v4048_v8  ;;  %v1263_v54 = vmul.f32 %v4050_v40, %v4050_v40 }
 0xf72   :  { %v1264_v24 = vadd.f32 %v1263_v54, %v1262_v53 }
 0xf74   :  { %1265 = vadd.xlane.f32.xlu0 %v1264_v24 }
 0xf78   :  { %1303 = vadd.xlane.f32.xlu0 %v1302_v59 }
 0xf7c   :  { %1359 = vadd.xlane.f32.xlu0 %v1358_v63 }
 0xf80   :  { %1415 = vadd.xlane.f32.xlu0 %v1414_v57 }
 0xffd   :  { %v1266_v4 = vpop.xlane.xlu0 %1265 }
 0xffe   :  { %v1267_v31 = vrot.slane %v1266_v4, 4 }
0x1000   :  { %v1268_v58 = vadd.f32 %v1267_v31, %v1266_v4 }
0x1001   :  { %v1304_v13 = vpop.xlane.xlu0 %1303 }
0x1002   :  { %v1269_v43 = vrot.slane %v1268_v58, 2  ;;  %v1305_v6 = vrot.slane %v1304_v13, 4 }
0x1004   :  { %v1270_v5 = vadd.f32 %v1269_v43, %v1268_v58  ;;  %v1306_v2 = vadd.f32 %v1305_v6, %v1304_v13 }
0x1005   :  { %v1360_v53 = vpop.xlane.xlu0 %1359 }
0x1006   :  { %v1271_v45 = vrot.slane %v1270_v5, 1  ;;  %v1307_v21 = vrot.slane %v1306_v2, 2  ;;  %v1361_v54 = vrot.slane %v1360_v53, 4 }
0x1008   :  { %v1272_v19 = vadd.f32 %v1271_v45, %v1270_v5  ;;  %v1308_v23 = vadd.f32 %v1307_v21, %v1306_v2  ;;  %v1362_v24 = vadd.f32 %v1361_v54, %v1360_v53 }
0x100a   :  { %3199 = vpush %v1272_v19  ;;  %v1309_v49 = vrot.slane %v1308_v23, 1  ;;  %v1363_v34 = vrot.slane %v1362_v24, 2 }
0x100c   :  { %v1310_v28 = vadd.f32 %v1309_v49, %v1308_v23  ;;  %v536_v23 = vld [vmem:[%s4553_s21] sm:$0xff]  ;;  %v3093_v49 = vld [vmem:[%s4545_s13 + $0x18] sm:$0xff] }
0x103b   :  { %s3200_s27 = spop %3199 }
0x103c   :  { %s1276_s8 = smul.f32 0.00048828125, %s3200_s27 }
0x103e   :  { %s1277_s4 = sadd.f32 1e-08, %s1276_s8 }
0x1040   :  { %v1278_v20 = vstv %s1277_s4 }
0x1041   :  { %3332 = vrsqrt.f32 %v1278_v20 }
0x104e   :  { %v3333_v15 = vpop.eup %3332 }
0x104f   :  { %3201 = vpush %v3333_v15  ;;  %v4114_v15 = vld [vmem:[%s4554_s22] sm:$0xff] }
0x1050   :  { %3203 = vpush %v1310_v28 }
0x1080   :  { %s4074_s28 = spop %3201 }
0x1081   :  { %s3204_s9 = spop %3203  ;;  %v1281_v59 = vstv %s4074_s28 }
0x1082   :  { %s1314_s0 = smul.f32 0.00048828125, %s3204_s9  ;;  %v1283_v62 = vmul.f32 %v1281_v59, %v4050_v40  ;;  %v1282_v30 = vmul.f32 %v1281_v59, %v4048_v8 }
0x1084   :  { %v1315_v29 = vstv %s1314_s0  ;;  %v1285_v31 = vmul.f32 %v1283_v62, %v3891_v18  ;;  %v1284_v45 = vmul.f32 %v1282_v30, %v3870_v25 }
0x1085   :  { %v1316_v51 = vsub.f32 %v1300_v7, %v1315_v29  ;;  %v1317_v33 = vsub.f32 %v1301_v17, %v1315_v29  ;;  %v1364_v7 = vadd.f32 %v1363_v34, %v1362_v24  ;;  %v4128_v24 = vld [vmem:[%s4544_s12 + $0x10] sm:$0xff] }
0x1086   :  { %v1287_v13 = vadd.f32 %v1285_v31, %v3903_v16  ;;  %v1286_v21 = vadd.f32 %v1284_v45, %v3878_v27  ;;  %v3092_v31 = vld [vmem:[%s4545_s13 + $0x10] sm:$0xff] }
0x1087   :  { %v1318_v35 = vmul.f32 %v1316_v51, %v1316_v51  ;;  %v1319_v36 = vmul.f32 %v1317_v33, %v1317_v33  ;;  %v1365_v17 = vrot.slane %v1364_v7, 1 }
0x1089   :  { %v1320_v37 = vadd.f32 %v1319_v36, %v1318_v35  ;;  %v1366_v56 = vadd.f32 %v1365_v17, %v1364_v7 }
0x108b   :  { %1321 = vadd.xlane.f32.xlu1 %v1320_v37 }
0x1114   :  { %v1322_v39 = vpop.xlane.xlu1 %1321 }
0x1115   :  { %v1323_v42 = vrot.slane %v1322_v39, 4 }
0x1117   :  { %v1324_v47 = vadd.f32 %v1323_v42, %v1322_v39  ;;  %v1416_v42 = vpop.xlane.xlu0 %1415 }
0x1119   :  { %v1325_v44 = vrot.slane %v1324_v47, 2 }
0x111b   :  { %v1326_v50 = vadd.f32 %v1325_v44, %v1324_v47 }
0x111d   :  { %v1327_v41 = vrot.slane %v1326_v50, 1 }
0x111f   :  { %v1328_v52 = vadd.f32 %v1327_v41, %v1326_v50 }
0x1121   :  { %3205 = vpush %v1328_v52  ;;  %v1417_v52 = vrot.slane %v1416_v42, 4 }
0x1152   :  { %s3206_s2 = spop %3205 }
0x1153   :  { %s1332_s7 = smul.f32 0.00048828125, %s3206_s2 }
0x1155   :  { %s1333_s29 = sadd.f32 1e-08, %s1332_s7 }
0x1156   :  { %s4271_s7 = sld [smem:[#allocation9 + $0x81]] }
0x1157   :  { %v1334_v55 = vstv %s1333_s29  ;;  %s4293_s29 = sld [smem:[#allocation9 + $0x83]] }
0x1158   :  { %3334 = vrsqrt.f32 %v1334_v55 }
0x1165   :  { %v3335_v9 = vpop.eup %3334 }
0x1166   :  { %3207 = vpush %v3335_v9 }
0x1167   :  { %3209 = vpush %v1366_v56 }
0x1197   :  { %s3208_s5 = spop %3207 }
0x1198   :  { %v1337_v63 = vstv %s3208_s5  ;;  %s3210_s10 = spop %3209 }
0x1199   :  { %v1338_v57 = vmul.f32 %v1337_v63, %v1316_v51  ;;  %v1339_v4 = vmul.f32 %v1337_v63, %v1317_v33  ;;  %s1370_s11 = smul.f32 0.00048828125, %s3210_s10 }
0x119b   :  { %v1340_v58 = vmul.f32 %v1338_v57, %v3870_v25  ;;  %v1341_v43 = vmul.f32 %v1339_v4, %v3891_v18  ;;  %v1371_v5 = vstv %s1370_s11 }
0x119c   :  { %v4084_v19 = vsub.f32 %v4060_v60, %v1371_v5  ;;  %v4087_v40 = vsub.f32 %v4062_v26, %v1371_v5  ;;  %v4100_v26 = vld [vmem:[%s4552_s20] sm:$0xff] }
0x119d   :  { %v1343_v8 = vadd.f32 %v1341_v43, %v3903_v16  ;;  %v1342_v20 = vadd.f32 %v1340_v58, %v3878_v27 }
0x119e   :  { %v1374_v6 = vmul.f32 %v4084_v19, %v4084_v19  ;;  %v1375_v2 = vmul.f32 %v4087_v40, %v4087_v40 }
0x119f   :  { %1487 = vmatprep.subr.mxu0 %v1343_v8 }
0x11a0   :  { %1488 = vmatpush1.msra.mxu0 %v1287_v13  ;;  %v1376_v60 = vadd.f32 %v1375_v2, %v1374_v6 }
0x11a1   :  { %1489 = vmatprep.subr.mxu0 %v1342_v20 }
0x11a2   :  { %1377 = vadd.xlane.f32.xlu1 %v1376_v60  ;;  %1490 = vmatpush1.msra.mxu0 %v1286_v21 }
0x11a3   :  { %3084 = vmatmul.mubr.msk.f32.vlgmr.msra.gmra.mxu0 %vm371_vm0, %v4100_v26  ;;  %1650 = vmatprep.subr.mxu0 %v1343_v8 }
0x11a4   :  { %1651 = vmatpush1.msra.mxu0 %v1287_v13  ;;  %1686 = vmatprep.mubr.f32.mxu0 %v3469_v61 }
0x11a5   :  { %1652 = vmatprep.subr.mxu0 %v1342_v20  ;;  %v4155_v20 = vstv %s3088_s1 }
0x11a6   :  { %1653 = vmatpush1.msra.mxu0 %v1286_v21 }
0x11a7   :  { %3086 = vmatmul.mubr.msk.f32.vlgmr.msra.gmra.mxu0 %vm371_vm0, %v4114_v15 }
0x11a8   :  { %1874 = vmatprep.mubr.f32.mxu0 %v3469_v61 }
0x11b3   :  { %1607 = vperm.xlu1 %3305, %v536_v23  }
0x11b7   :  { %1801 = vperm.xlu1 %3305, %v3093_v49  }
0x122b   :  { %v1378_v28 = vpop.xlane.xlu1 %1377 }
0x122c   :  { %v1379_v29 = vrot.slane %v1378_v28, 4 }
0x122e   :  { %v1380_v51 = vadd.f32 %v1379_v29, %v1378_v28 }
0x122f   :  { %v4121_v41 = vpop.permute.xlu1 %1607 }
0x1230   :  { %v1381_v33 = vrot.slane %v1380_v51, 2 }
0x1232   :  { %v1382_v35 = vadd.f32 %v1381_v33, %v1380_v51 }
0x1234   :  { %v1383_v36 = vrot.slane %v1382_v35, 1 }
0x1236   :  { %v1384_v37 = vadd.f32 %v1383_v36, %v1382_v35 }
0x1238   :  { %3211 = vpush %v1384_v37 }
0x1263   :  { %v1525_v39 = vpop.f32.mrf.mxu0 }
0x1264   :  { %v1601_v47 = vadd.f32 %v1525_v39, %v3746_v48  ;;  %v1418_v48 = vadd.f32 %v1417_v52, %v1416_v42 }
0x1265   :  { %v1527_v44 = vpop.f32.mrf.mxu0 }
0x1266   :  { %v1602_v50 = vadd.f32 %v1527_v44, %v3743_v46  ;;  %v1610_v54 = vadd.f32 %v4121_v41, %v1601_v47  ;;  %v4136_v46 = vld [vmem:[%s4544_s12 + $0x18] sm:$0xff]  ;;  %v1419_v34 = vrot.slane %v1418_v48, 2  ;;  %s4327_s12 = sld [smem:[#allocation9 + $0x87]] }
0x1267   :  { %v4148_v58 = vpop.f32.mrf.mxu0 }
0x1268   :  { %v1611_v53 = vadd.f32 %v4121_v41, %v1602_v50  ;;  %v1420_v7 = vadd.f32 %v1419_v34, %v1418_v48 }
0x1269   :  { %s3212_s21 = spop %3211  ;;  %v4150_v43 = vpop.f32.mrf.mxu0 }
0x126a   :  { %s1388_s0 = smul.f32 0.00048828125, %s3212_s21  ;;  %1840 = vmatprep.subr.mxu0 %v1611_v53  ;;  %v1421_v17 = vrot.slane %v1420_v7, 1 }
0x126b   :  { %1841 = vmatpush1.msra.mxu0 %v1610_v54 }
0x126c   :  { %s1389_s2 = sadd.f32 1e-08, %s1388_s0  ;;  %3108 = vmatmul.mubr.msk.f32.vlgmr.msra.gmra.mxu0 %vm549_vm1, %v4128_v24  ;;  %v1422_v56 = vadd.f32 %v1421_v17, %v1420_v7 }
0x126d   :  { %1880 = vmatprep.mubr.f32.mxu0 %v3469_v61 }
0x126e   :  { %v1390_v55 = vstv %s1389_s2 }
0x126f   :  { %3336 = vrsqrt.f32 %v1390_v55 }
0x1270   :  { %3109 = vmatmul.mubr.msk.f32.gmra.mxu0 %vm549_vm1, %v4136_v46 }
0x1271   :  { %2771 = vmatprep.mubr.f32.mxu0 %v3469_v61 }
0x127c   :  { %v3337_v9 = vpop.eup %3336 }
0x127d   :  { %3213 = vpush %v3337_v9 }
0x127e   :  { %3215 = vpush %v1422_v56 }
0x12ae   :  { %s4141_s5 = spop %3213 }
0x12af   :  { %s3216_s10 = spop %3215  ;;  %v1393_v34 = vstv %s4141_s5  ;;  %s4298_s5 = sld [smem:[#allocation9 + $0x84]] }
0x12b0   :  { %s1426_s11 = smul.f32 0.00048828125, %s3216_s10  ;;  %v1395_v7 = vmul.f32 %v1393_v34, %v4087_v40  ;;  %v1394_v17 = vmul.f32 %v1393_v34, %v4084_v19  ;;  %s4306_s10 = sld [smem:[#allocation9 + $0x85]] }
0x12b2   :  { %v1427_v59 = vstv %s1426_s11  ;;  %s4321_s11 = sld [smem:[#allocation9 + $0x86]] }
0x12b3   :  { %v1428_v62 = vsub.f32 %v4068_v0, %v1427_v59  ;;  %v1429_v30 = vsub.f32 %v4070_v10, %v1427_v59  ;;  %v4152_v10 = vpop.permute.xlu1 %1801 }
0x12b5   :  { %v1430_v63 = vmul.f32 %v1428_v62, %v1428_v62  ;;  %v1431_v57 = vmul.f32 %v1429_v30, %v1429_v30 }
0x12b7   :  { %v1432_v4 = vadd.f32 %v1431_v57, %v1430_v63  ;;  %v1397_v63 = vmul.f32 %v1395_v7, %v3891_v18 }
0x12b9   :  { %1433 = vadd.xlane.f32.xlu0 %v1432_v4 }
0x12cf   :  { %1796 = vperm.xlu0 %3304, %v3092_v31   ;;  %v1396_v31 = vmul.f32 %v1394_v17, %v3870_v25 }
0x12d1   :  { %v1398_v19 = vadd.f32 %v1396_v31, %v3878_v27 }
0x132c   :  { %v1876_v5 = vpop.f32.mrf.mxu0 }
0x132e   :  { %v1878_v45 = vpop.f32.mrf.mxu0 }
0x1330   :  { %v1882_v0 = vpop.f32.mrf.mxu0 }
0x1331   :  { %v1883_v2 = vadd.f32 %v1882_v0, %v4152_v10 }
0x1332   :  { %v1884_v60 = vpop.f32.mrf.mxu0 }
0x1333   :  { %v1968_v49 = vmul.f32 %v4155_v20, %v1883_v2  ;;  %v1885_v29 = vadd.f32 %v1884_v60, %v4152_v10  ;;  %vm1965_vm4 = vcmp.ge.f32.partialorder %v1883_v2, 0.0 }
0x1335   :  { %v2036_v42 = vmul.f32 %v4155_v20, %v1885_v29  ;;  %v1970_v44 = vsel %vm1965_vm4, %v1883_v2, %v1968_v49  ;;  %vm2034_vm7 = vcmp.ge.f32.partialorder %v1885_v29, 0.0 }
0x1337   :  { %v4168_v53 = vsel %vm2034_vm7, %v1885_v29, %v2036_v42 }
0x1342   :  { %v1434_v8 = vpop.xlane.xlu0 %1433 }
0x1343   :  { %v1435_v13 = vrot.slane %v1434_v8, 4 }
0x1345   :  { %v1436_v6 = vadd.f32 %v1435_v13, %v1434_v8 }
0x1347   :  { %v1437_v21 = vrot.slane %v1436_v6, 2 }
0x1349   :  { %v1438_v23 = vadd.f32 %v1437_v21, %v1436_v6 }
0x134a   :  { %v4158_v28 = vpop.permute.xlu0 %1796 }
0x134b   :  { %v1877_v51 = vadd.f32 %v1876_v5, %v4158_v28  ;;  %v1879_v33 = vadd.f32 %v1878_v45, %v4158_v28  ;;  %v1439_v35 = vrot.slane %v1438_v23, 1  ;;  %v1399_v45 = vadd.f32 %v1397_v63, %v3903_v16 }
0x134d   :  { %v1440_v36 = vadd.f32 %v1439_v35, %v1438_v23  ;;  %vm1964_vm5 = vcmp.ge.f32.partialorder %v1877_v51, 0.0  ;;  %v1967_v37 = vmul.f32 %v4155_v20, %v1877_v51  ;;  %vm2033_vm6 = vcmp.ge.f32.partialorder %v1879_v33, 0.0 }
0x134e   :  { %v2035_v39 = vmul.f32 %v4155_v20, %v1879_v33 }
0x134f   :  { %3217 = vpush %v1440_v36  ;;  %v1969_v47 = vsel %vm1964_vm5, %v1877_v51, %v1967_v37 }
0x1350   :  { %v1971_v50 = vadd.f32 %v1970_v44, %v1969_v47  ;;  %v4166_v52 = vsel %vm2033_vm6, %v1879_v33, %v2035_v39 }
0x1351   :  { %v2039_v54 = vadd.f32 %v4168_v53, %v4166_v52 }
0x1352   :  { %1972 = vadd.xlane.f32.xlu1 %v1971_v50 }
0x1356   :  { %2040 = vadd.xlane.f32.xlu1 %v2039_v54 }
0x1380   :  { %s3218_s13 = spop %3217 }
0x1381   :  { %s1444_s3 = smul.f32 0.00048828125, %s3218_s13 }
0x1383   :  { %s1445_s30 = sadd.f32 1e-08, %s1444_s3 }
0x1385   :  { %v1446_v48 = vstv %s1445_s30 }
0x1386   :  { %3338 = vrsqrt.f32 %v1446_v48 }
0x1393   :  { %v3339_v55 = vpop.eup %3338 }
0x1394   :  { %3219 = vpush %v3339_v55 }
0x13c5   :  { %s3220_s27 = spop %3219 }
0x13c6   :  { %v1449_v9 = vstv %s3220_s27 }
0x13c7   :  { %v1450_v56 = vmul.f32 %v1449_v9, %v1428_v62  ;;  %v1451_v59 = vmul.f32 %v1449_v9, %v1429_v30 }
0x13c9   :  { %v1452_v57 = vmul.f32 %v1450_v56, %v3870_v25  ;;  %v1453_v4 = vmul.f32 %v1451_v59, %v3891_v18 }
0x13cb   :  { %v1455_v5 = vadd.f32 %v1453_v4, %v3903_v16  ;;  %v1454_v40 = vadd.f32 %v1452_v57, %v3878_v27 }
0x13cd   :  { %1558 = vmatprep.subr.mxu1 %v1455_v5 }
0x13ce   :  { %1559 = vmatpush1.msra.mxu1 %v1399_v45 }
0x13cf   :  { %1560 = vmatprep.subr.mxu1 %v1454_v40 }
0x13d0   :  { %1561 = vmatpush1.msra.mxu1 %v1398_v19 }
0x13d1   :  { %3085 = vmatmul.mubr.msk.f32.vlgmr.msra.gmra.mxu1 %vm371_vm0, %v4100_v26  ;;  %1721 = vmatprep.subr.mxu1 %v1455_v5 }
0x13d2   :  { %1722 = vmatpush1.msra.mxu1 %v1399_v45  ;;  %1757 = vmatprep.mubr.f32.mxu1 %v3469_v61 }
0x13d3   :  { %1723 = vmatprep.subr.mxu1 %v1454_v40 }
0x13d4   :  { %1724 = vmatpush1.msra.mxu1 %v1398_v19 }
0x13d5   :  { %3087 = vmatmul.mubr.msk.f32.vlgmr.msra.gmra.mxu1 %vm371_vm0, %v4114_v15 }
0x13d6   :  { %1951 = vmatprep.mubr.f32.mxu1 %v3469_v61 }
0x13db   :  { %v1973_v25 = vpop.xlane.xlu1 %1972 }
0x13dc   :  { %v1974_v18 = vrot.slane %v1973_v25, 4 }
0x13de   :  { %v1975_v27 = vadd.f32 %v1974_v18, %v1973_v25 }
0x13e0   :  { %v1976_v16 = vrot.slane %v1975_v27, 2 }
0x13e2   :  { %v1977_v62 = vadd.f32 %v1976_v16, %v1975_v27 }
0x13e4   :  { %v1978_v30 = vrot.slane %v1977_v62, 1 }
0x13e6   :  { %v1979_v8 = vadd.f32 %v1978_v30, %v1977_v62 }
0x13e8   :  { %3221 = vpush %v1979_v8 }
0x1419   :  { %s3222_s20 = spop %3221 }
0x141a   :  { %s1983_s8 = smul.f32 0.00048828125, %s3222_s20 }
0x141c   :  { %v1984_v26 = vstv %s1983_s8 }
0x141d   :  { %v4189_v0 = vsub.f32 %v1969_v47, %v1984_v26  ;;  %v4191_v13 = vsub.f32 %v1970_v44, %v1984_v26 }
0x141f   :  { %v1987_v15 = vmul.f32 %v4189_v0, %v4189_v0  ;;  %v1988_v6 = vmul.f32 %v4191_v13, %v4191_v13 }
0x1421   :  { %v1989_v2 = vadd.f32 %v1988_v6, %v1987_v15  ;;  %v3096_v15 = vld [vmem:[%s4547_s15 + $0x10] sm:$0xff]  ;;  %v3097_v6 = vld [vmem:[%s4547_s15 + $0x18] sm:$0xff] }
0x1423   :  { %1990 = vadd.xlane.f32.xlu0 %v1989_v2 }
0x1491   :  { %v1596_v21 = vpop.f32.mrf.mxu1 }
0x1492   :  { %v1603_v60 = vadd.f32 %v1596_v21, %v3810_v11 }
0x1493   :  { %v1598_v23 = vpop.f32.mrf.mxu1 }
0x1494   :  { %v1604_v49 = vadd.f32 %v1598_v23, %v3807_v32  ;;  %v1612_v51 = vadd.f32 %v4121_v41, %v1603_v60 }
0x1495   :  { %v4219_v59 = vpop.f32.mrf.mxu1 }
0x1496   :  { %v1613_v29 = vadd.f32 %v4121_v41, %v1604_v49  ;;  %v2041_v41 = vpop.xlane.xlu1 %2040 }
0x1497   :  { %v2042_v42 = vrot.slane %v2041_v41, 4  ;;  %v4221_v63 = vpop.f32.mrf.mxu1 }
0x1498   :  { %1917 = vmatprep.subr.mxu1 %v1613_v29 }
0x1499   :  { %1918 = vmatpush1.msra.mxu1 %v1612_v51 }
0x149a   :  { %3110 = vmatmul.mubr.msk.f32.vlgmr.msra.gmra.mxu1 %vm549_vm1, %v4128_v24  ;;  %v2043_v24 = vadd.f32 %v2042_v42, %v2041_v41 }
0x149b   :  { %1957 = vmatprep.mubr.f32.mxu1 %v3469_v61 }
0x149c   :  { %v2044_v44 = vrot.slane %v2043_v24, 2 }
0x149e   :  { %3111 = vmatmul.mubr.msk.f32.gmra.mxu1 %vm549_vm1, %v4136_v46  ;;  %v2045_v46 = vadd.f32 %v2044_v44, %v2043_v24 }
0x149f   :  { %2842 = vmatprep.mubr.f32.mxu1 %v3469_v61 }
0x14a0   :  { %v2046_v50 = vrot.slane %v2045_v46, 1 }
0x14a2   :  { %v2047_v48 = vadd.f32 %v2046_v50, %v2045_v46 }
0x14ac   :  { %v1991_v11 = vpop.xlane.xlu0 %1990 }
0x14ad   :  { %v1992_v33 = vrot.slane %v1991_v11, 4 }
0x14af   :  { %v1993_v35 = vadd.f32 %v1992_v33, %v1991_v11 }
0x14b1   :  { %v1994_v32 = vrot.slane %v1993_v35, 2 }
0x14b3   :  { %v1995_v36 = vadd.f32 %v1994_v32, %v1993_v35 }
0x14b5   :  { %v1996_v37 = vrot.slane %v1995_v36, 1 }
0x14b7   :  { %v1997_v39 = vadd.f32 %v1996_v37, %v1995_v36 }
0x14b9   :  { %3223 = vpush %v1997_v39 }
0x14ea   :  { %s3224_s4 = spop %3223 }
0x14eb   :  { %s2001_s21 = smul.f32 0.00048828125, %s3224_s4 }
0x14ed   :  { %s2002_s28 = sadd.f32 1e-08, %s2001_s21 }
0x14ef   :  { %v2003_v47 = vstv %s2002_s28 }
0x14f0   :  { %3340 = vrsqrt.f32 %v2003_v47 }
0x14fd   :  { %v3341_v54 = vpop.eup %3340 }
0x14fe   :  { %3225 = vpush %v3341_v54 }
0x14ff   :  { %3227 = vpush %v2047_v48 }
0x152f   :  { %s4207_s9 = spop %3225 }
0x1530   :  { %s3228_s0 = spop %3227 }
0x1531   :  { %s2051_s2 = smul.f32 0.00048828125, %s3228_s0 }
0x1533   :  { %v2052_v55 = vstv %s2051_s2 }
0x1534   :  { %v4210_v34 = vsub.f32 %v4166_v52, %v2052_v55  ;;  %v4213_v7 = vsub.f32 %v4168_v53, %v2052_v55 }
0x1536   :  { %v2055_v17 = vmul.f32 %v4210_v34, %v4210_v34  ;;  %v2056_v9 = vmul.f32 %v4213_v7, %v4213_v7 }
0x1538   :  { %v2057_v56 = vadd.f32 %v2056_v9, %v2055_v17 }
0x153a   :  { %2058 = vadd.xlane.f32.xlu0 %v2057_v56 }
0x155a   :  { %v1953_v57 = vpop.f32.mrf.mxu1 }
0x155b   :  { %v1954_v4 = vadd.f32 %v1953_v57, %v4158_v28 }
0x155c   :  { %v1955_v52 = vpop.f32.mrf.mxu1 }
0x155d   :  { %v1956_v31 = vadd.f32 %v1955_v52, %v4158_v28  ;;  %v2083_v5 = vmul.f32 %v4155_v20, %v1954_v4  ;;  %vm2081_vm8 = vcmp.ge.f32.partialorder %v1954_v4, 0.0 }
0x155e   :  { %v1959_v53 = vpop.f32.mrf.mxu1 }
0x155f   :  { %v1960_v45 = vadd.f32 %v1959_v53, %v4152_v10  ;;  %v2131_v18 = vmul.f32 %v4155_v20, %v1956_v31  ;;  %v2085_v16 = vsel %vm2081_vm8, %v1954_v4, %v2083_v5  ;;  %vm2129_vm15 = vcmp.ge.f32.partialorder %v1956_v31, 0.0 }
0x1560   :  { %v1961_v40 = vpop.f32.mrf.mxu1 }
0x1561   :  { %v2084_v19 = vmul.f32 %v4155_v20, %v1960_v45  ;;  %v1962_v25 = vadd.f32 %v1961_v40, %v4152_v10  ;;  %vm2082_vm9 = vcmp.ge.f32.partialorder %v1960_v45, 0.0  ;;  %v4233_v8 = vsel %vm2129_vm15, %v1956_v31, %v2131_v18  ;;  %v3094_v10 = vld [vmem:[%s4546_s14 + $0x10] sm:$0xff] }
0x1563   :  { %v2132_v27 = vmul.f32 %v4155_v20, %v1962_v25  ;;  %v2086_v62 = vsel %vm2082_vm9, %v1960_v45, %v2084_v19  ;;  %vm2130_vm14 = vcmp.ge.f32.partialorder %v1962_v25, 0.0 }
0x1564   :  { %v2087_v28 = vadd.f32 %v2086_v62, %v2085_v16 }
0x1565   :  { %v4231_v30 = vsel %vm2130_vm14, %v1962_v25, %v2132_v27 }
0x1566   :  { %2088 = vadd.xlane.f32.xlu1 %v2087_v28  ;;  %v2135_v26 = vadd.f32 %v4231_v30, %v4233_v8 }
0x156a   :  { %2136 = vadd.xlane.f32.xlu1 %v2135_v26 }
0x157b   :  { %2011 = vperm.xlu1 %3305, %v3094_v10  }
0x157f   :  { %2023 = vperm.xlu1 %3305, %v3096_v15   ;;  %v3095_v15 = vld [vmem:[%s4546_s14 + $0x18] sm:$0xff]  ;;  %s4279_s14 = sld [smem:[#allocation9 + $0x80]] }
0x1583   :  { %2028 = vperm.xlu1 %3305, %v3097_v6  }
0x15c3   :  { %v2059_v2 = vpop.xlane.xlu0 %2058 }
0x15c4   :  { %v2060_v21 = vrot.slane %v2059_v2, 4 }
0x15c6   :  { %v2061_v60 = vadd.f32 %v2060_v21, %v2059_v2  ;;  %v2006_v2 = vstv %s4207_s9  ;;  %s4287_s9 = sld [smem:[#allocation9 + $0x82]] }
0x15c8   :  { %v2062_v23 = vrot.slane %v2061_v60, 2 }
0x15ca   :  { %v2063_v49 = vadd.f32 %v2062_v23, %v2061_v60 }
0x15cc   :  { %v2064_v29 = vrot.slane %v2063_v49, 1 }
0x15ce   :  { %v2065_v51 = vadd.f32 %v2064_v29, %v2063_v49  ;;  %v2007_v29 = vmul.f32 %v2006_v2, %v4189_v0 }
0x15d0   :  { %3229 = vpush %v2065_v51 }
0x15ef   :  { %v2089_v11 = vpop.xlane.xlu1 %2088 }
0x15f0   :  { %v2090_v33 = vrot.slane %v2089_v11, 4 }
0x15f2   :  { %v2091_v35 = vadd.f32 %v2090_v33, %v2089_v11 }
0x15f3   :  { %v2137_v52 = vpop.xlane.xlu1 %2136 }
0x15f4   :  { %v2092_v36 = vrot.slane %v2091_v35, 2  ;;  %v2138_v31 = vrot.slane %v2137_v52, 4 }
0x15f6   :  { %v2093_v37 = vadd.f32 %v2092_v36, %v2091_v35  ;;  %v2139_v53 = vadd.f32 %v2138_v31, %v2137_v52  ;;  %v2008_v36 = vmul.f32 %v2006_v2, %v4191_v13 }
0x15f8   :  { %v2094_v39 = vrot.slane %v2093_v37, 1  ;;  %v2140_v45 = vrot.slane %v2139_v53, 2 }
0x15fa   :  { %v2095_v42 = vadd.f32 %v2094_v39, %v2093_v37  ;;  %v2141_v40 = vadd.f32 %v2140_v45, %v2139_v53 }
0x15fc   :  { %v2142_v19 = vrot.slane %v2141_v40, 1 }
0x15fe   :  { %v2143_v18 = vadd.f32 %v2142_v19, %v2141_v40  ;;  %v2226_v40 = vstv %s4279_s14 }
0x1601   :  { %s3230_s6 = spop %3229 }
0x1602   :  { %s2069_s1 = smul.f32 0.00048828125, %s3230_s6  ;;  %s4338_s6 = sld [smem:[#allocation9 + $0x88]] }
0x1604   :  { %s2070_s13 = sadd.f32 1e-08, %s2069_s1 }
0x1606   :  { %v2071_v32 = vstv %s2070_s13 }
0x1607   :  { %3342 = vrsqrt.f32 %v2071_v32 }
0x1614   :  { %v3343_v41 = vpop.eup %3342 }
0x1615   :  { %3231 = vpush %v3343_v41 }
0x1616   :  { %3233 = vpush %v2095_v42 }
0x1646   :  { %s4246_s15 = spop %3231 }
0x1647   :  { %s3234_s3 = spop %3233  ;;  %v2074_v6 = vstv %s4246_s15 }
0x1648   :  { %s2099_s30 = smul.f32 0.00048828125, %s3234_s3  ;;  %v2075_v60 = vmul.f32 %v2074_v6, %v4210_v34  ;;  %v2076_v37 = vmul.f32 %v2074_v6, %v4213_v7  ;;  %s3121_s3 = sld [smem:[#allocation9 + $0x89]] }
0x164a   :  { %v2100_v24 = vstv %s2099_s30 }
0x164b   :  { %v2101_v47 = vsub.f32 %v2085_v16, %v2100_v24  ;;  %v2102_v44 = vsub.f32 %v2086_v62, %v2100_v24 }
0x164d   :  { %v2103_v46 = vmul.f32 %v2101_v47, %v2101_v47  ;;  %v2104_v50 = vmul.f32 %v2102_v44, %v2102_v44 }
0x164f   :  { %v2105_v54 = vadd.f32 %v2104_v50, %v2103_v46 }
0x1651   :  { %2106 = vadd.xlane.f32.xlu0 %v2105_v54 }
0x16da   :  { %v2107_v48 = vpop.xlane.xlu0 %2106 }
0x16db   :  { %v2108_v55 = vrot.slane %v2107_v48, 4 }
0x16dd   :  { %v2109_v17 = vadd.f32 %v2108_v55, %v2107_v48  ;;  %v2232_v55 = vstv %s4271_s7 }
0x16df   :  { %v2110_v9 = vrot.slane %v2109_v17, 2 }
0x16e1   :  { %v2111_v56 = vadd.f32 %v2110_v9, %v2109_v17 }
0x16e3   :  { %v2112_v57 = vrot.slane %v2111_v56, 1 }
0x16e5   :  { %v2113_v4 = vadd.f32 %v2112_v57, %v2111_v56 }
0x16e7   :  { %3235 = vpush %v2113_v4 }
0x1718   :  { %s3236_s27 = spop %3235 }
0x1719   :  { %s2117_s20 = smul.f32 0.00048828125, %s3236_s27  ;;  %s3122_s27 = sld [smem:[#allocation9 + $0x8a]] }
0x171b   :  { %s2118_s8 = sadd.f32 1e-08, %s2117_s20 }
0x171c   :  { %s3123_s20 = sld [smem:[#allocation9 + $0x8b]] }
0x171d   :  { %v2119_v5 = vstv %s2118_s8  ;;  %s3124_s8 = sld [smem:[#allocation8 + $0x1]] }
0x171e   :  { %3344 = vrsqrt.f32 %v2119_v5 }
0x172b   :  { %v3345_v25 = vpop.eup %3344 }
0x172c   :  { %3237 = vpush %v3345_v25 }
0x172d   :  { %3239 = vpush %v2143_v18 }
0x175d   :  { %s4248_s4 = spop %3237 }
0x175e   :  { %s3240_s21 = spop %3239  ;;  %v2122_v23 = vstv %s4248_s4 }
0x175f   :  { %s2147_s28 = smul.f32 0.00048828125, %s3240_s21  ;;  %v2123_v11 = vmul.f32 %v2122_v23, %v2101_v47  ;;  %v2124_v34 = vmul.f32 %v2122_v23, %v2102_v44 }
0x1761   :  { %v2148_v27 = vstv %s2147_s28 }
0x1762   :  { %v4251_v16 = vsub.f32 %v4233_v8, %v2148_v27  ;;  %v4254_v62 = vsub.f32 %v4231_v30, %v2148_v27  ;;  %v4264_v8 = vpop.permute.xlu1 %2011 }
0x1763   :  { %v2019_v35 = vmul.f32 %v4264_v8, %v2007_v29  ;;  %v2077_v32 = vmul.f32 %v2075_v60, %v4264_v8  ;;  %v2125_v42 = vmul.f32 %v2123_v11, %v4264_v8 }
0x1764   :  { %v2151_v28 = vmul.f32 %v4251_v16, %v4251_v16  ;;  %v2152_v26 = vmul.f32 %v4254_v62, %v4254_v62 }
0x1766   :  { %v2153_v10 = vadd.f32 %v2152_v26, %v2151_v28  ;;  %v4273_v51 = vpop.permute.xlu1 %2023 }
0x1767   :  { %v2031_v0 = vadd.f32 %v4273_v51, %v2019_v35  ;;  %v2079_v7 = vadd.f32 %v2077_v32, %v4273_v51  ;;  %v4301_v9 = vadd.f32 %v2125_v42, %v4273_v51 }
0x1768   :  { %2154 = vadd.xlane.f32.xlu0 %v2153_v10 }
0x1769   :  { %v2177_v17 = vrot.slane %v2031_v0, 7  ;;  %v2178_v52 = vrot.slane %v2079_v7, 7  ;;  %v2201_v53 = vrot.slane %v2031_v0, 1  ;;  %v2233_v5 = vmul.f32 %v2232_v55, %v2031_v0 }
0x176a   :  { %v4289_v13 = vpop.permute.xlu1 %2028  ;;  %v2202_v19 = vrot.slane %v2079_v7, 1  ;;  %v2179_v28 = vrot.slane %v4301_v9, 7 }
0x177e   :  { %2016 = vperm.xlu0 %3304, %v3095_v15   ;;  %v2238_v15 = vstv %s4287_s9 }
0x1782   :  { %3306 = vset.pattern.permute.xlu0 %v3470_v1 }
0x17f1   :  { %v2155_v30 = vpop.xlane.xlu0 %2154 }
0x17f2   :  { %v2156_v21 = vrot.slane %v2155_v30, 4 }
0x17f4   :  { %v2157_v49 = vadd.f32 %v2156_v21, %v2155_v30  ;;  %v2244_v21 = vstv %s4293_s29 }
0x17f6   :  { %v2158_v33 = vrot.slane %v2157_v49, 2 }
0x17f8   :  { %v2159_v39 = vadd.f32 %v2158_v33, %v2157_v49 }
0x17f9   :  { %v4282_v41 = vpop.permute.xlu0 %2016 }
0x17fa   :  { %v2020_v24 = vmul.f32 %v4282_v41, %v2008_v36  ;;  %v2078_v47 = vmul.f32 %v2076_v37, %v4282_v41  ;;  %v2160_v46 = vrot.slane %v2159_v39, 1  ;;  %v2126_v50 = vmul.f32 %v2124_v34, %v4282_v41 }
0x17fb   :  { %v2250_v36 = vstv %s4298_s5  ;;  %s3474_s5 = smov 126  }
0x17fc   :  { %v2032_v44 = vadd.f32 %v4289_v13, %v2020_v24  ;;  %v2080_v54 = vadd.f32 %v2078_v47, %v4289_v13  ;;  %v2161_v48 = vadd.f32 %v2160_v46, %v2159_v39  ;;  %v4304_v31 = vadd.f32 %v2126_v50, %v4289_v13 }
0x17fd   :  { %v2256_v24 = vstv %s4306_s10  ;;  %s3475_s10 = smov 2  }
0x17fe   :  { %v2181_v56 = vrot.slane %v2032_v44, 7  ;;  %v2182_v57 = vrot.slane %v2080_v54, 7  ;;  %v2205_v4 = vrot.slane %v2032_v44, 1  ;;  %3241 = vpush %v2161_v48  ;;  %v2206_v26 = vrot.slane %v2080_v54, 1 }
0x17ff   :  { %v2183_v6 = vrot.slane %v4304_v31, 7  ;;  %v2234_v29 = vmul.f32 %v2232_v55, %v2032_v44  ;;  %v2207_v47 = vrot.slane %v4304_v31, 1  ;;  %v2251_v48 = vmul.f32 %v2250_v36, %v2079_v7 }
0x1800   :  { %v2189_v45 = vsel %vm933_vm10, %v2181_v56, %v2177_v17  ;;  %v2185_v25 = vsel %vm933_vm10, %v2177_v17, %v2181_v56  ;;  %v2190_v18 = vsel %vm933_vm10, %v2182_v57, %v2178_v52  ;;  %v2209_v10 = vsel %vm960_vm12, %v2201_v53, %v2205_v4 }
0x1801   :  { %v2193_v27 = vsel %vm923_vm11, %v2189_v45, 0.0  ;;  %v2213_v30 = vsel %vm960_vm12, %v2205_v4, %v2201_v53  ;;  %v2194_v60 = vsel %vm923_vm11, %v2190_v18, 0.0  ;;  %v2228_v49 = vmul.f32 %v2226_v40, %v2185_v25 }
0x1802   :  { %v2227_v2 = vmul.f32 %v2226_v40, %v2193_v27  ;;  %v2221_v23 = vsel %vm951_vm13, %v2213_v30, 0.0  ;;  %v2186_v11 = vsel %vm933_vm10, %v2178_v52, %v2182_v57  ;;  %v2239_v35 = vmul.f32 %v2238_v15, %v2209_v10 }
0x1803   :  { %v2240_v32 = vmul.f32 %v2238_v15, %v2221_v23  ;;  %v2214_v37 = vsel %vm960_vm12, %v2206_v26, %v2202_v19  ;;  %v2236_v39 = vadd.f32 %v2234_v29, %v2228_v49  ;;  %v2191_v0 = vsel %vm933_vm10, %v2183_v6, %v2179_v28 }
0x1804   :  { %v2235_v33 = vadd.f32 %v2233_v5, %v2227_v2  ;;  %v2245_v42 = vmul.f32 %v2244_v21, %v2194_v60  ;;  %v2210_v46 = vsel %vm960_vm12, %v2202_v19, %v2206_v26  ;;  %v2246_v44 = vmul.f32 %v2244_v21, %v2186_v11 }
0x1805   :  { %v2242_v50 = vadd.f32 %v2240_v32, %v2236_v39  ;;  %v2203_v55 = vrot.slane %v4301_v9, 1  ;;  %v2222_v17 = vsel %vm951_vm13, %v2214_v37, 0.0  ;;  %v2195_v57 = vsel %vm923_vm11, %v2191_v0, 0.0 }
0x1806   :  { %v2241_v34 = vadd.f32 %v2239_v35, %v2235_v33  ;;  %v2252_v52 = vmul.f32 %v2250_v36, %v2080_v54  ;;  %v2262_v53 = vstv %s4321_s11  ;;  %v2187_v5 = vsel %vm933_vm10, %v2179_v28, %v2183_v6  ;;  %s3132_s11 = sld [smem:[#allocation12 + $0x83]] }
0x1807   :  { %v2248_v4 = vadd.f32 %v2246_v44, %v2242_v50  ;;  %v2257_v40 = vmul.f32 %v2256_v24, %v2210_v46  ;;  %v2268_v19 = vstv %s4327_s12  ;;  %v2215_v7 = vsel %vm960_vm12, %v2207_v47, %v2203_v55 }
0x1808   :  { %v2247_v56 = vadd.f32 %v2245_v42, %v2241_v34  ;;  %v2258_v18 = vmul.f32 %v2256_v24, %v2222_v17  ;;  %v2263_v26 = vmul.f32 %v2262_v53, %v2195_v57  ;;  %v2211_v10 = vsel %vm960_vm12, %v2203_v55, %v2207_v47 }
0x1809   :  { %v2254_v25 = vadd.f32 %v2252_v52, %v2248_v4  ;;  %v2264_v30 = vmul.f32 %v2262_v53, %v2187_v5  ;;  %v2274_v54 = vstv %s4338_s6  ;;  %v2269_v2 = vmul.f32 %v2268_v19, %v4301_v9 }
0x180a   :  { %v2253_v45 = vadd.f32 %v2251_v48, %v2247_v56  ;;  %v2223_v28 = vsel %vm951_vm13, %v2215_v7, 0.0  ;;  %v2270_v60 = vmul.f32 %v2268_v19, %v4304_v31  ;;  %v2275_v49 = vmul.f32 %v2274_v54, %v2211_v10 }
0x180b   :  { %v2260_v15 = vadd.f32 %v2258_v18, %v2254_v25  ;;  %v2276_v11 = vmul.f32 %v2274_v54, %v2223_v28  ;;  %v2280_v24 = vstv %s3121_s3  ;;  %v2286_v48 = vstv %s3122_s27 }
0x180c   :  { %v2259_v27 = vadd.f32 %v2257_v40, %v2253_v45  ;;  %v2292_v52 = vstv %s3123_s20 }
0x180d   :  { %v2266_v21 = vadd.f32 %v2264_v30, %v2260_v15 }
0x180e   :  { %v2265_v6 = vadd.f32 %v2263_v26, %v2259_v27  ;;  %v2298_v26 = vstv %s3124_s8 }
0x180f   :  { %v2272_v29 = vadd.f32 %v2270_v60, %v2266_v21 }
0x1810   :  { %v2271_v23 = vadd.f32 %v2269_v2, %v2265_v6 }
0x1811   :  { %v2278_v35 = vadd.f32 %v2276_v11, %v2272_v29 }
0x1812   :  { %v2277_v33 = vadd.f32 %v2275_v49, %v2271_v23 }
0x182f   :  { %s3242_s1 = spop %3241 }
0x1830   :  { %s2165_s13 = smul.f32 0.00048828125, %s3242_s1 }
0x1832   :  { %s2166_s15 = sadd.f32 1e-08, %s2165_s13 }
0x1834   :  { %v2167_v32 = vstv %s2166_s15 }
0x1835   :  { %3346 = vrsqrt.f32 %v2167_v32 }
0x1842   :  { %v3347_v36 = vpop.eup %3346 }
0x1843   :  { %3243 = vpush %v3347_v36 }
0x1874   :  { %s3244_s30 = spop %3243 }
0x1875   :  { %v2170_v9 = vstv %s3244_s30 }
0x1876   :  { %v2171_v37 = vmul.f32 %v2170_v9, %v4251_v16  ;;  %v2172_v31 = vmul.f32 %v2170_v9, %v4254_v62 }
0x1878   :  { %v2173_v39 = vmul.f32 %v2171_v37, %v4264_v8  ;;  %v2174_v0 = vmul.f32 %v2172_v31, %v4282_v41 }
0x187a   :  { %v2175_v34 = vadd.f32 %v2173_v39, %v4273_v51  ;;  %v2176_v42 = vadd.f32 %v2174_v0, %v4289_v13  ;;  %v3099_v39 = vld [vmem:[%s4548_s16 + $0x18] sm:$0xff]  ;;  %v3098_v0 = vld [vmem:[%s4548_s16 + $0x10] sm:$0xff] }
0x187c   :  { %v2180_v47 = vrot.slane %v2175_v34, 7  ;;  %v2184_v46 = vrot.slane %v2176_v42, 7  ;;  %v2204_v50 = vrot.slane %v2175_v34, 1  ;;  %v2208_v44 = vrot.slane %v2176_v42, 1 }
0x187d   :  { %v2288_v53 = vmul.f32 %v2286_v48, %v2176_v42  ;;  %v2287_v40 = vmul.f32 %v2286_v48, %v2175_v34 }
0x187e   :  { %v2188_v16 = vsel %vm933_vm10, %v2180_v47, %v2184_v46  ;;  %v2192_v62 = vsel %vm933_vm10, %v2184_v46, %v2180_v47  ;;  %v2216_v55 = vsel %vm960_vm12, %v2208_v44, %v2204_v50  ;;  %v2212_v5 = vsel %vm960_vm12, %v2204_v50, %v2208_v44 }
0x187f   :  { %v2196_v17 = vsel %vm923_vm11, %v2192_v62, 0.0  ;;  %v2282_v56 = vmul.f32 %v2280_v24, %v2188_v16  ;;  %v2224_v57 = vsel %vm951_vm13, %v2216_v55, 0.0  ;;  %v2293_v27 = vmul.f32 %v2292_v52, %v2212_v5 }
0x1880   :  { %v2281_v4 = vmul.f32 %v2280_v24, %v2196_v17  ;;  %v2294_v25 = vmul.f32 %v2292_v52, %v2224_v57  ;;  %vm2349_vm12 = vcmp.ge.s32.totalorder %v4030_v38, 2  ;;  %vm2356_vm13 = vcmp.lt.s32.totalorder %v4030_v38, 126 }
0x1881   :  { %v2284_v45 = vadd.f32 %v2282_v56, %v2278_v35  ;;  %v3100_v56 = vld [vmem:[%s4549_s17 + $0x10] sm:$0xff] }
0x1882   :  { %v2283_v19 = vadd.f32 %v2281_v4, %v2277_v33  ;;  %v3101_v4 = vld [vmem:[%s4549_s17 + $0x18] sm:$0xff]  ;;  %s3089_s17 = sld [smem:[#allocation6 + $0x1]] }
0x1883   :  { %v2290_v7 = vadd.f32 %v2288_v53, %v2284_v45 }
0x1884   :  { %v2289_v18 = vadd.f32 %v2287_v40, %v2283_v19 }
0x1885   :  { %v2296_v10 = vadd.f32 %v2294_v25, %v2290_v7 }
0x1886   :  { %v2295_v15 = vadd.f32 %v2293_v27, %v2289_v18 }
0x1887   :  { %v2300_v30 = vadd.f32 %v2298_v26, %v2296_v10 }
0x1888   :  { %v2299_v54 = vadd.f32 %v2298_v26, %v2295_v15 }
0x1889   :  { %vm2302_vm10 = vcmp.ge.f32.partialorder %v2300_v30, 0.0  ;;  %v2304_v14 = vmul.f32 %v2300_v30, %v4155_v20 }
0x188a   :  { %vm2301_vm11 = vcmp.ge.f32.partialorder %v2299_v54, 0.0  ;;  %v2303_v2 = vmul.f32 %v2299_v54, %v4155_v20 }
0x188b   :  { %v2306_v12 = vsel %vm2302_vm10, %v2300_v30, %v2304_v14 }
0x188c   :  { %v2305_v28 = vsel %vm2301_vm11, %v2299_v54, %v2303_v2 }
0x188d   :  { %v2307_v6 = vadd.f32 %v2306_v12, %v2305_v28 }
0x188f   :  { %2308 = vadd.xlane.f32.xlu0 %v2307_v6 }
0x18a5   :  { %2376 = vperm.xlu0 %3306, %v3098_v0  }
0x18a9   :  { %3309 = vset.pattern.permute.xlu0 %v3471_v3 }
0x18aa   :  { %2392 = vperm.xlu0 %3309, %v3099_v39  }
0x18ae   :  { %3310 = vset.pattern.permute.xlu0 %v3468_v22 }
0x18af   :  { %2365 = vperm.xlu0 %3310, %v3098_v0  }
0x1918   :  { %v2309_v21 = vpop.xlane.xlu0 %2308 }
0x1919   :  { %v2310_v60 = vrot.slane %v2309_v21, 4 }
0x191b   :  { %v2311_v23 = vadd.f32 %v2310_v60, %v2309_v21 }
0x191d   :  { %v2312_v49 = vrot.slane %v2311_v23, 2 }
0x191f   :  { %v2313_v29 = vadd.f32 %v2312_v49, %v2311_v23 }
0x1920   :  { %v2377_v5 = vpop.permute.xlu0 %2376 }
0x1921   :  { %v2314_v11 = vrot.slane %v2313_v29, 1 }
0x1923   :  { %v2315_v33 = vadd.f32 %v2314_v11, %v2313_v29  ;;  %v2413_v11 = vstv %s3089_s17 }
0x1925   :  { %3245 = vpush %v2315_v33  ;;  %v2393_v40 = vpop.permute.xlu0 %2392 }
0x192a   :  { %v2366_v7 = vpop.permute.xlu0 %2365 }
0x1956   :  { %s3246_s4 = spop %3245 }
0x1957   :  { %s2319_s21 = smul.f32 0.00048828125, %s3246_s4 }
0x1959   :  { %v2320_v35 = vstv %s2319_s21 }
0x195a   :  { %v2321_v32 = vsub.f32 %v2305_v28, %v2320_v35  ;;  %v2322_v36 = vsub.f32 %v2306_v12, %v2320_v35 }
0x195c   :  { %v2323_v9 = vmul.f32 %v2321_v32, %v2321_v32  ;;  %v2324_v37 = vmul.f32 %v2322_v36, %v2322_v36 }
0x195e   :  { %v2325_v31 = vadd.f32 %v2324_v37, %v2323_v9 }
0x1960   :  { %2326 = vadd.xlane.f32.xlu1 %v2325_v31 }
0x1971   :  { %2370 = vperm.xlu1 %3305, %v3099_v39  }
0x1975   :  { %3307 = vset.pattern.permute.xlu1 %v3470_v1 }
0x1976   :  { %2380 = vperm.xlu1 %3307, %v3099_v39   ;;  %v3103_v39 = vld [vmem:[%s4550_s18 + $0x18] sm:$0xff] }
0x197a   :  { %3308 = vset.pattern.permute.xlu1 %v3471_v3 }
0x197b   :  { %2388 = vperm.xlu1 %3308, %v3098_v0   ;;  %v3104_v0 = vld [vmem:[%s4551_s19 + $0x10] sm:$0xff] }
0x197f   :  { %3311 = vset.pattern.permute.xlu1 %v3468_v22 }
0x19e9   :  { %v2327_v34 = vpop.xlane.xlu1 %2326 }
0x19ea   :  { %v2328_v42 = vrot.slane %v2327_v34, 4 }
0x19ec   :  { %v2329_v1 = vadd.f32 %v2328_v42, %v2327_v34 }
0x19ed   :  { %v2371_v52 = vpop.permute.xlu1 %2370 }
0x19ee   :  { %v2330_v24 = vrot.slane %v2329_v1, 2 }
0x19f0   :  { %v2331_v47 = vadd.f32 %v2330_v24, %v2329_v1 }
0x19f1   :  { %v2381_v53 = vpop.permute.xlu1 %2380 }
0x19f2   :  { %v2332_v46 = vrot.slane %v2331_v47, 1 }
0x19f4   :  { %v2333_v50 = vadd.f32 %v2332_v46, %v2331_v47 }
0x19f6   :  { %3247 = vpush %v2333_v50  ;;  %v2389_v45 = vpop.permute.xlu1 %2388 }
0x1a27   :  { %s3248_s16 = spop %3247 }
0x1a28   :  { %s2337_s14 = smul.f32 0.00048828125, %s3248_s16 }
0x1a2a   :  { %s2338_s9 = sadd.f32 1e-08, %s2337_s14 }
0x1a2b   :  { %s3127_s14 = sld [smem:[#allocation11 + $0x81]] }
0x1a2c   :  { %v2339_v44 = vstv %s2338_s9  ;;  %s3129_s9 = sld [smem:[#allocation11 + $0x82]] }
0x1a2d   :  { %3348 = vrsqrt.f32 %v2339_v44 }
0x1a3a   :  { %v3349_v3 = vpop.eup %3348 }
0x1a3b   :  { %3249 = vpush %v3349_v3 }
0x1a6c   :  { %s3250_s29 = spop %3249 }
0x1a6d   :  { %v2342_v16 = vstv %s3250_s29  ;;  %s3128_s29 = sld [smem:[#allocation12 + $0x81]] }
0x1a6e   :  { %v2343_v62 = vmul.f32 %v2342_v16, %v2321_v32  ;;  %v2344_v22 = vmul.f32 %v2342_v16, %v2322_v36 }
0x1a70   :  { %v2345_v48 = vmul.f32 %v2343_v62, %v4264_v8  ;;  %v2346_v55 = vmul.f32 %v2344_v22, %v4282_v41 }
0x1a72   :  { %v2347_v17 = vadd.f32 %v2345_v48, %v4273_v51  ;;  %v2348_v57 = vadd.f32 %v2346_v55, %v4289_v13  ;;  %v3102_v55 = vld [vmem:[%s4550_s18 + $0x10] sm:$0xff]  ;;  %s3125_s18 = sld [smem:[#allocation11 + $0x80]] }
0x1a74   :  { %2357 = vrot.lane.b32.xlu0 %v2347_v17, %s3474_s5  ;;  %2350 = vrot.lane.b32.xlu1 %v2347_v17, %s3475_s10  ;;  %v2383_v10 = vmul.f32 %v2377_v5, %v2347_v17  ;;  %v2384_v21 = vmul.f32 %v2381_v53, %v2348_v57  ;;  %v3105_v17 = vld [vmem:[%s4551_s19 + $0x18] sm:$0xff]  ;;  %s3126_s19 = sld [smem:[#allocation12 + $0x80]] }
0x1a78   :  { %2401 = vperm.xlu0 %3310, %v3100_v56   ;;  %2352 = vrot.lane.b32.xlu1 %v2348_v57, %s3475_s10  ;;  %s3130_s10 = sld [smem:[#allocation12 + $0x82]] }
0x1a7c   :  { %2359 = vrot.lane.b32.xlu1 %v2348_v57, %s3474_s5  ;;  %s3131_s5 = sld [smem:[#allocation11 + $0x83]] }
0x1a80   :  { %2406 = vperm.xlu1 %3311, %v3101_v4  }
0x1ae6   :  { %v2351_v19 = vpop.permute.xlu1 %2350  ;;  %v2358_v26 = vpop.permute.xlu0 %2357 }
0x1ae7   :  { %v2354_v18 = vsel %vm2349_vm12, %v2351_v19, 0.0  ;;  %v2361_v30 = vsel %vm2356_vm13, %v2358_v26, 0.0 }
0x1ae8   :  { %v2373_v27 = vmul.f32 %v2366_v7, %v2354_v18  ;;  %v2395_v12 = vmul.f32 %v2389_v45, %v2361_v30 }
0x1aea   :  { %v2353_v25 = vpop.permute.xlu1 %2352  ;;  %v2385_v14 = vadd.f32 %v2383_v10, %v2373_v27 }
0x1aeb   :  { %v2355_v54 = vsel %vm2349_vm12, %v2353_v25, 0.0 }
0x1aec   :  { %v2374_v28 = vmul.f32 %v2371_v52, %v2355_v54  ;;  %v2397_v23 = vadd.f32 %v2395_v12, %v2385_v14  ;;  %v2481_v14 = vstv %s3125_s18 }
0x1aee   :  { %v2360_v15 = vpop.permute.xlu1 %2359  ;;  %v2386_v49 = vadd.f32 %v2384_v21, %v2374_v28  ;;  %v2485_v28 = vstv %s3126_s19 }
0x1aef   :  { %v2362_v2 = vsel %vm2356_vm13, %v2360_v15, 0.0 }
0x1af0   :  { %v2396_v60 = vmul.f32 %v2393_v40, %v2362_v2 }
0x1af2   :  { %v2398_v33 = vadd.f32 %v2396_v60, %v2386_v49 }
0x1af3   :  { %v2402_v6 = vpop.permute.xlu0 %2401 }
0x1af4   :  { %v2409_v29 = vadd.f32 %v2402_v6, %v2397_v23 }
0x1af6   :  { %v2414_v38 = vmul.f32 %v2413_v11, %v2409_v29  ;;  %vm2411_vm2 = vcmp.ge.f32.partialorder %v2409_v29, 0.0 }
0x1af8   :  { %v2416_v9 = vsel %vm2411_vm2, %v2409_v29, %v2414_v38 }
0x1afb   :  { %v2407_v35 = vpop.permute.xlu1 %2406 }
0x1afc   :  { %v2410_v32 = vadd.f32 %v2407_v35, %v2398_v33 }
0x1afe   :  { %v2415_v36 = vmul.f32 %v2413_v11, %v2410_v32  ;;  %vm2412_vm3 = vcmp.ge.f32.partialorder %v2410_v32, 0.0 }
0x1b00   :  { %v2417_v37 = vsel %vm2412_vm3, %v2410_v32, %v2415_v36 }
0x1b01   :  { %v2418_v31 = vadd.f32 %v2417_v37, %v2416_v9 }
0x1b03   :  { %2419 = vadd.xlane.f32.xlu1 %v2418_v31 }
0x1b14   :  { %2463 = vperm.xlu1 %3311, %v3103_v39  }
0x1b18   :  { %2470 = vperm.xlu1 %3311, %v3104_v0   ;;  %v2537_v0 = vstv %s3127_s14 }
0x1b8c   :  { %v2420_v34 = vpop.xlane.xlu1 %2419 }
0x1b8d   :  { %v2421_v42 = vrot.slane %v2420_v34, 4 }
0x1b8f   :  { %v2422_v1 = vadd.f32 %v2421_v42, %v2420_v34 }
0x1b90   :  { %v2464_v7 = vpop.permute.xlu1 %2463 }
0x1b91   :  { %v2423_v24 = vrot.slane %v2422_v1, 2 }
0x1b93   :  { %v2424_v47 = vadd.f32 %v2423_v24, %v2422_v1  ;;  %v2541_v1 = vstv %s3128_s29  ;;  %v2593_v24 = vstv %s3129_s9 }
0x1b94   :  { %v2471_v30 = vpop.permute.xlu1 %2470 }
0x1b95   :  { %v2425_v46 = vrot.slane %v2424_v47, 1 }
0x1b97   :  { %v2426_v50 = vadd.f32 %v2425_v46, %v2424_v47  ;;  %v2649_v47 = vstv %s3131_s5 }
0x1b99   :  { %3251 = vpush %v2426_v50 }
0x1bca   :  { %s3252_s27 = spop %3251 }
0x1bcb   :  { %s2430_s20 = smul.f32 0.00048828125, %s3252_s27 }
0x1bcd   :  { %v2431_v44 = vstv %s2430_s20 }
0x1bce   :  { %v2432_v3 = vsub.f32 %v2416_v9, %v2431_v44  ;;  %v2433_v16 = vsub.f32 %v2417_v37, %v2431_v44 }
0x1bd0   :  { %v2434_v62 = vmul.f32 %v2432_v3, %v2432_v3  ;;  %v2435_v22 = vmul.f32 %v2433_v16, %v2433_v16 }
0x1bd2   :  { %v2436_v48 = vadd.f32 %v2435_v22, %v2434_v62  ;;  %v2653_v22 = vstv %s3132_s11 }
0x1bd4   :  { %2437 = vadd.xlane.f32.xlu0 %v2436_v48 }
0x1bea   :  { %2458 = vperm.xlu0 %3310, %v3102_v55  }
0x1bee   :  { %2475 = vperm.xlu0 %3310, %v3105_v17  }
0x1c5d   :  { %v2438_v56 = vpop.xlane.xlu0 %2437 }
0x1c5e   :  { %v2439_v57 = vrot.slane %v2438_v56, 4 }
0x1c60   :  { %v2440_v4 = vadd.f32 %v2439_v57, %v2438_v56 }
0x1c62   :  { %v2441_v52 = vrot.slane %v2440_v4, 2 }
0x1c64   :  { %v2442_v53 = vadd.f32 %v2441_v52, %v2440_v4 }
0x1c65   :  { %v2459_v25 = vpop.permute.xlu0 %2458 }
0x1c66   :  { %v2443_v5 = vrot.slane %v2442_v53, 1 }
0x1c68   :  { %v2444_v45 = vadd.f32 %v2443_v5, %v2442_v53 }
0x1c69   :  { %v2476_v54 = vpop.permute.xlu0 %2475 }
0x1c6a   :  { %3253 = vpush %v2444_v45 }
0x1c9b   :  { %s3254_s0 = spop %3253 }
0x1c9c   :  { %s2448_s2 = smul.f32 0.00048828125, %s3254_s0 }
0x1c9e   :  { %s2449_s7 = sadd.f32 1e-08, %s2448_s2 }
0x1ca0   :  { %v2450_v40 = vstv %s2449_s7 }
0x1ca1   :  { %3350 = vrsqrt.f32 %v2450_v40 }
0x1cae   :  { %v3351_v19 = vpop.eup %3350 }
0x1caf   :  { %3255 = vpush %v3351_v19 }
0x1ce0   :  { %s3256_s16 = spop %3255 }
0x1ce1   :  { %v2453_v18 = vstv %s3256_s16 }
0x1ce2   :  { %v2454_v27 = vmul.f32 %v2453_v18, %v2432_v3  ;;  %v2455_v26 = vmul.f32 %v2453_v18, %v2433_v16  ;;  %v2597_v16 = vstv %s3130_s10 }
0x1ce4   :  { %v2466_v10 = vmul.f32 %v2459_v25, %v2454_v27  ;;  %v2467_v15 = vmul.f32 %v2464_v7, %v2455_v26 }
0x1ce6   :  { %v2478_v2 = vadd.f32 %v2471_v30, %v2466_v10  ;;  %v2479_v12 = vadd.f32 %v2476_v54, %v2467_v15 }
0x1ce8   :  { %v2482_v6 = vmul.f32 %v2481_v14, %v2478_v2  ;;  %v2483_v21 = vmul.f32 %v2481_v14, %v2479_v12  ;;  %v2538_v34 = vmul.f32 %v2537_v0, %v2478_v2  ;;  %v2539_v42 = vmul.f32 %v2537_v0, %v2479_v12 }
0x1ce9   :  { %v2594_v44 = vmul.f32 %v2593_v24, %v2478_v2  ;;  %v2595_v3 = vmul.f32 %v2593_v24, %v2479_v12  ;;  %v2650_v17 = vmul.f32 %v2649_v47, %v2478_v2  ;;  %v2651_v56 = vmul.f32 %v2649_v47, %v2479_v12 }
0x1cea   :  { %v2486_v60 = vadd.f32 %v2485_v28, %v2482_v6  ;;  %v2487_v23 = vadd.f32 %v2485_v28, %v2483_v21  ;;  %v2542_v46 = vadd.f32 %v2541_v1, %v2538_v34  ;;  %v2543_v50 = vadd.f32 %v2541_v1, %v2539_v42  ;;  %v538_v21 = vld [vmem:[%s4555_s23] sm:$0xff] }
0x1ceb   :  { %v2598_v52 = vadd.f32 %v2597_v16, %v2594_v44  ;;  %v2599_v53 = vadd.f32 %v2597_v16, %v2595_v3  ;;  %v2654_v19 = vadd.f32 %v2653_v22, %v2650_v17  ;;  %v2655_v7 = vadd.f32 %v2653_v22, %v2651_v56 }
0x1cec   :  { %vm2488_vm4 = vcmp.ge.f32.partialorder %v2486_v60, 0.0  ;;  %vm2489_vm5 = vcmp.ge.f32.partialorder %v2487_v23, 0.0  ;;  %v2490_v49 = vmul.f32 %v2486_v60, %v4155_v20  ;;  %v2491_v29 = vmul.f32 %v2487_v23, %v4155_v20 }
0x1ced   :  { %v2546_v57 = vmul.f32 %v2542_v46, %v4155_v20  ;;  %v2547_v4 = vmul.f32 %v2543_v50, %v4155_v20  ;;  %vm2544_vm6 = vcmp.ge.f32.partialorder %v2542_v46, 0.0  ;;  %vm2545_vm7 = vcmp.ge.f32.partialorder %v2543_v50, 0.0 }
0x1cee   :  { %v2492_v11 = vsel %vm2488_vm4, %v2486_v60, %v2490_v49  ;;  %v2493_v33 = vsel %vm2489_vm5, %v2487_v23, %v2491_v29  ;;  %v2602_v27 = vmul.f32 %v2598_v52, %v4155_v20  ;;  %v2603_v26 = vmul.f32 %v2599_v53, %v4155_v20 }
0x1cef   :  { %v2494_v35 = vadd.f32 %v2493_v33, %v2492_v11  ;;  %v2548_v25 = vsel %vm2544_vm6, %v2542_v46, %v2546_v57  ;;  %v2549_v18 = vsel %vm2545_vm7, %v2543_v50, %v2547_v4  ;;  %vm2600_vm8 = vcmp.ge.f32.partialorder %v2598_v52, 0.0 }
0x1cf0   :  { %vm2601_vm9 = vcmp.ge.f32.partialorder %v2599_v53, 0.0  ;;  %v2550_v10 = vadd.f32 %v2549_v18, %v2548_v25  ;;  %v4433_v15 = vsel %vm2600_vm8, %v2598_v52, %v2602_v27  ;;  %v2658_v54 = vmul.f32 %v2654_v19, %v4155_v20 }
0x1cf1   :  { %2495 = vadd.xlane.f32.xlu1 %v2494_v35  ;;  %v4435_v30 = vsel %vm2601_vm9, %v2599_v53, %v2603_v26  ;;  %v2659_v14 = vmul.f32 %v2655_v7, %v4155_v20  ;;  %vm2656_vm14 = vcmp.ge.f32.partialorder %v2654_v19, 0.0  ;;  %vm2657_vm15 = vcmp.ge.f32.partialorder %v2655_v7, 0.0 }
0x1cf2   :  { %v2606_v2 = vadd.f32 %v4435_v30, %v4433_v15  ;;  %v4441_v12 = vsel %vm2656_vm14, %v2654_v19, %v2658_v54 }
0x1cf3   :  { %v4443_v28 = vsel %vm2657_vm15, %v2655_v7, %v2659_v14 }
0x1cf4   :  { %v2662_v6 = vadd.f32 %v4443_v28, %v4441_v12 }
0x1d7a   :  { %v2496_v38 = vpop.xlane.xlu1 %2495 }
0x1d7b   :  { %v2497_v32 = vrot.slane %v2496_v38, 4 }
0x1d7d   :  { %v2498_v36 = vadd.f32 %v2497_v32, %v2496_v38 }
0x1d7f   :  { %v2499_v9 = vrot.slane %v2498_v36, 2 }
0x1d81   :  { %v2500_v37 = vadd.f32 %v2499_v9, %v2498_v36 }
0x1d83   :  { %v2501_v31 = vrot.slane %v2500_v37, 1 }
0x1d85   :  { %v2502_v39 = vadd.f32 %v2501_v31, %v2500_v37 }
0x1d87   :  { %3257 = vpush %v2502_v39 }
0x1db8   :  { %s3258_s12 = spop %3257 }
0x1db9   :  { %s2506_s6 = smul.f32 0.00048828125, %s3258_s12 }
0x1dbb   :  { %v2507_v62 = vstv %s2506_s6 }
0x1dbc   :  { %v4421_v48 = vsub.f32 %v2492_v11, %v2507_v62  ;;  %v4423_v55 = vsub.f32 %v2493_v33, %v2507_v62 }
0x1dbe   :  { %v2510_v5 = vmul.f32 %v4421_v48, %v4421_v48  ;;  %v2511_v45 = vmul.f32 %v4423_v55, %v4423_v55 }
0x1dc0   :  { %v2512_v40 = vadd.f32 %v2511_v45, %v2510_v5 }
0x1dc2   :  { %2513 = vadd.xlane.f32.xlu0 %v2512_v40 }
0x1dc6   :  { %2551 = vadd.xlane.f32.xlu0 %v2550_v10 }
0x1dca   :  { %2607 = vadd.xlane.f32.xlu0 %v2606_v2 }
0x1dce   :  { %2663 = vadd.xlane.f32.xlu0 %v2662_v6 }
0x1de4   :  { %1616 = vperm.xlu0 %3310, %v538_v21  }
0x1e4b   :  { %v2514_v20 = vpop.xlane.xlu0 %2513 }
0x1e4c   :  { %v2515_v60 = vrot.slane %v2514_v20, 4 }
0x1e4e   :  { %v2516_v23 = vadd.f32 %v2515_v60, %v2514_v20 }
0x1e4f   :  { %v2552_v35 = vpop.xlane.xlu0 %2551 }
0x1e50   :  { %v2517_v49 = vrot.slane %v2516_v23, 2  ;;  %v2553_v38 = vrot.slane %v2552_v35, 4 }
0x1e52   :  { %v2518_v29 = vadd.f32 %v2517_v49, %v2516_v23  ;;  %v2554_v32 = vadd.f32 %v2553_v38, %v2552_v35 }
0x1e53   :  { %v2608_v56 = vpop.xlane.xlu0 %2607 }
0x1e54   :  { %v2519_v11 = vrot.slane %v2518_v29, 1  ;;  %v2555_v9 = vrot.slane %v2554_v32, 2  ;;  %v2609_v57 = vrot.slane %v2608_v56, 4 }
0x1e56   :  { %v2520_v33 = vadd.f32 %v2519_v11, %v2518_v29  ;;  %v2556_v37 = vadd.f32 %v2555_v9, %v2554_v32  ;;  %v2610_v4 = vadd.f32 %v2609_v57, %v2608_v56  ;;  %v2863_v56 = vld [vmem:[%s4557_s25] sm:$0xff]  ;;  %s4583_s25 = sld [smem:[#allocation26_spill]] }
0x1e58   :  { %3259 = vpush %v2520_v33  ;;  %v2557_v31 = vrot.slane %v2556_v37, 1  ;;  %v2611_v53 = vrot.slane %v2610_v4, 2 }
0x1e5a   :  { %v2558_v0 = vadd.f32 %v2557_v31, %v2556_v37  ;;  %v2612_v5 = vadd.f32 %v2611_v53, %v2610_v4  ;;  %v2664_v31 = vpop.xlane.xlu0 %2663 }
0x1e5c   :  { %v2613_v45 = vrot.slane %v2612_v5, 1 }
0x1e5e   :  { %v2614_v19 = vadd.f32 %v2613_v45, %v2612_v5 }
0x1e5f   :  { %v4491_v4 = vpop.permute.xlu0 %1616 }
0x1e60   :  { %v1691_v53 = vadd.f32 %v4150_v43, %v4491_v4 }
0x1e89   :  { %s3260_s13 = spop %3259 }
0x1e8a   :  { %s2524_s15 = smul.f32 0.00048828125, %s3260_s13 }
0x1e8c   :  { %s2525_s3 = sadd.f32 1e-08, %s2524_s15 }
0x1e8e   :  { %v2526_v36 = vstv %s2525_s3 }
0x1e8f   :  { %3352 = vrsqrt.f32 %v2526_v36 }
0x1e9c   :  { %v3353_v39 = vpop.eup %3352 }
0x1e9d   :  { %3261 = vpush %v3353_v39  ;;  %v2665_v39 = vrot.slane %v2664_v31, 4 }
0x1e9e   :  { %3263 = vpush %v2558_v0 }
0x1e9f   :  { %v2666_v0 = vadd.f32 %v2665_v39, %v2664_v31 }
0x1ece   :  { %s4450_s30 = spop %3261 }
0x1ecf   :  { %s3264_s27 = spop %3263  ;;  %v2529_v7 = vstv %s4450_s30 }
0x1ed0   :  { %s2562_s20 = smul.f32 0.00048828125, %s3264_s27 }
0x1ed2   :  { %v2563_v34 = vstv %s2562_s20 }
0x1ed3   :  { %v2564_v42 = vsub.f32 %v2548_v25, %v2563_v34  ;;  %v2565_v1 = vsub.f32 %v2549_v18, %v2563_v34  ;;  %v2531_v25 = vmul.f32 %v2529_v7, %v4423_v55  ;;  %v2530_v18 = vmul.f32 %v2529_v7, %v4421_v48 }
0x1ed5   :  { %v2566_v24 = vmul.f32 %v2564_v42, %v2564_v42  ;;  %v2567_v47 = vmul.f32 %v2565_v1, %v2565_v1  ;;  %v2533_v54 = vmul.f32 %v2531_v25, %v4282_v41  ;;  %v2532_v21 = vmul.f32 %v2530_v18, %v4264_v8 }
0x1ed6   :  { %v4500_v25 = vstv %s4583_s25 }
0x1ed7   :  { %v2568_v46 = vadd.f32 %v2567_v47, %v2566_v24  ;;  %v2535_v60 = vadd.f32 %v2533_v54, %v4289_v13  ;;  %v2534_v11 = vadd.f32 %v2532_v21, %v4273_v51 }
0x1ed9   :  { %2569 = vadd.xlane.f32.xlu1 %v2568_v46 }
0x1f62   :  { %v2570_v50 = vpop.xlane.xlu1 %2569 }
0x1f63   :  { %v2571_v44 = vrot.slane %v2570_v50, 4 }
0x1f65   :  { %v2572_v3 = vadd.f32 %v2571_v44, %v2570_v50 }
0x1f67   :  { %v2573_v16 = vrot.slane %v2572_v3, 2 }
0x1f69   :  { %v2574_v62 = vadd.f32 %v2573_v16, %v2572_v3 }
0x1f6b   :  { %v2575_v22 = vrot.slane %v2574_v62, 1 }
0x1f6d   :  { %v2576_v17 = vadd.f32 %v2575_v22, %v2574_v62 }
0x1f6f   :  { %3265 = vpush %v2576_v17  ;;  %v3107_v17 = vld [vmem:[%s4555_s23 + $0x8] sm:$0xff] }
0x1fa0   :  { %s3266_s8 = spop %3265 }
0x1fa1   :  { %s2580_s4 = smul.f32 0.00048828125, %s3266_s8 }
0x1fa3   :  { %s2581_s21 = sadd.f32 1e-08, %s2580_s4 }
0x1fa5   :  { %v2582_v52 = vstv %s2581_s21 }
0x1fa6   :  { %3354 = vrsqrt.f32 %v2582_v52 }
0x1fb3   :  { %v3355_v40 = vpop.eup %3354 }
0x1fb4   :  { %3267 = vpush %v3355_v40 }
0x1fb5   :  { %3269 = vpush %v2614_v19 }
0x1fe5   :  { %s3268_s28 = spop %3267 }
0x1fe6   :  { %v2585_v27 = vstv %s3268_s28  ;;  %s3270_s0 = spop %3269 }
0x1fe7   :  { %v2586_v26 = vmul.f32 %v2585_v27, %v2564_v42  ;;  %v2587_v10 = vmul.f32 %v2585_v27, %v2565_v1  ;;  %s2618_s2 = smul.f32 0.00048828125, %s3270_s0  ;;  %v2667_v42 = vrot.slane %v2666_v0, 2 }
0x1fe9   :  { %v2588_v14 = vmul.f32 %v2586_v26, %v4264_v8  ;;  %v2589_v2 = vmul.f32 %v2587_v10, %v4282_v41  ;;  %v2619_v6 = vstv %s2618_s2  ;;  %v2668_v1 = vadd.f32 %v2667_v42, %v2666_v0 }
0x1fea   :  { %v4460_v20 = vsub.f32 %v4433_v15, %v2619_v6  ;;  %v4463_v55 = vsub.f32 %v4435_v30, %v2619_v6  ;;  %v4476_v30 = vld [vmem:[%s4554_s22 + $0x8] sm:$0xff]  ;;  %v1762_v42 = vadd.f32 %v4221_v63, %v4491_v4 }
0x1feb   :  { %v2591_v48 = vadd.f32 %v2589_v2, %v4289_v13  ;;  %v2590_v29 = vadd.f32 %v2588_v14, %v4273_v51  ;;  %v2669_v24 = vrot.slane %v2668_v1, 1  ;;  %v2862_v2 = vld [vmem:[%s4556_s24] sm:$0xff]  ;;  %s3476_s24 = smov [#allocation14]  }
0x1fec   :  { %v2622_v23 = vmul.f32 %v4460_v20, %v4460_v20  ;;  %v2623_v49 = vmul.f32 %v4463_v55, %v4463_v55  ;;  %s3040_s27 = sshll.u32 %s3476_s24, 4  ;;  %s3041_s27 = int_to_ptr.vmem [resolvable:$true] %s3040_s27 }
0x1fed   :  { %2735 = vmatprep.subr.mxu0 %v2591_v48  ;;  %v2670_v46 = vadd.f32 %v2669_v24, %v2668_v1  ;;  %s3432_s20 = scalar_lea.vmem %s3041_s27, 512  ;;  %p3437_p3 = scmp.lt.s32.totalorder %s3041_s27, %s3041_s27 }
0x1fee   :  { %2736 = vmatpush1.msra.mxu0 %v2535_v60  ;;  %v2624_v15 = vadd.f32 %v2623_v49, %v2622_v23  ;;  %p3433_p2 = scmp.ne.s32.totalorder %s3041_s27, %s3432_s20  ;;  %p3438_p4 = scmp.lt.s32.totalorder %s3432_s20, %s3432_s20 }
0x1fef   :  { %2737 = vmatprep.subr.mxu0 %v2590_v29 }
0x1ff0   :  { %2625 = vadd.xlane.f32.xlu1 %v2624_v15  ;;  %2738 = vmatpush1.msra.mxu0 %v2534_v11  ;;  %p3439_p5 = por %p3438_p4, %p3437_p3 }
0x1ff1   :  { %3133 = vmatmul.mubr.msk.f32.vlgmr.msra.gmra.mxu0 %vm371_vm0, %v4476_v30 }
0x1ff2   :  { %2950 = vmatprep.mubr.f32.mxu0 %v3469_v61  ;;  %p3440_p6 = pnand %p3439_p5, %p3433_p2 }
0x2079   :  { %v2626_v33 = vpop.xlane.xlu1 %2625 }
0x207a   :  { %v2627_v35 = vrot.slane %v2626_v33, 4 }
0x207c   :  { %v2628_v38 = vadd.f32 %v2627_v35, %v2626_v33 }
0x207e   :  { %v2629_v32 = vrot.slane %v2628_v38, 2 }
0x2080   :  { %v2630_v36 = vadd.f32 %v2629_v32, %v2628_v38 }
0x2082   :  { %v2631_v9 = vrot.slane %v2630_v36, 1 }
0x2084   :  { %v2632_v37 = vadd.f32 %v2631_v9, %v2630_v36 }
0x2086   :  { %3271 = vpush %v2632_v37 }
0x20b1   :  { %v2773_v57 = vpop.f32.mrf.mxu0 }
0x20b7   :  { %s3272_s22 = spop %3271 }
0x20b8   :  { %s2636_s19 = smul.f32 0.00048828125, %s3272_s22 }
0x20ba   :  { %s2637_s16 = sadd.f32 1e-08, %s2636_s19 }
0x20bc   :  { %v2638_v34 = vstv %s2637_s16 }
0x20bd   :  { %3356 = vrsqrt.f32 %v2638_v34 }
0x20ca   :  { %v3357_v47 = vpop.eup %3356 }
0x20cb   :  { %3273 = vpush %v3357_v47 }
0x20cc   :  { %3275 = vpush %v2670_v46 }
0x20fc   :  { %s4481_s14 = spop %3273 }
0x20fd   :  { %s3276_s9 = spop %3275  ;;  %v2641_v23 = vstv %s4481_s14 }
0x20fe   :  { %s2674_s29 = smul.f32 0.00048828125, %s3276_s9  ;;  %v2643_v49 = vmul.f32 %v2641_v23, %v4463_v55  ;;  %v2642_v29 = vmul.f32 %v2641_v23, %v4460_v20 }
0x2100   :  { %v2675_v50 = vstv %s2674_s29  ;;  %v2645_v35 = vmul.f32 %v2643_v49, %v4282_v41  ;;  %v2644_v36 = vmul.f32 %v2642_v29, %v4264_v8 }
0x2101   :  { %v2676_v44 = vsub.f32 %v4441_v12, %v2675_v50  ;;  %v2677_v3 = vsub.f32 %v4443_v28, %v2675_v50  ;;  %v2775_v12 = vpop.f32.mrf.mxu0  ;;  %v1689_v28 = vadd.f32 %v4148_v58, %v4491_v4 }
0x2102   :  { %v2850_v40 = vadd.f32 %v2775_v12, %v1691_v53  ;;  %v2647_v37 = vadd.f32 %v2645_v35, %v4289_v13  ;;  %v2646_v20 = vadd.f32 %v2644_v36, %v4273_v51 }
0x2103   :  { %v2678_v16 = vmul.f32 %v2676_v44, %v2676_v44  ;;  %v2679_v62 = vmul.f32 %v2677_v3, %v2677_v3  ;;  %v2849_v45 = vadd.f32 %v2773_v57, %v1689_v28 }
0x2105   :  { %v2680_v22 = vadd.f32 %v2679_v62, %v2678_v16 }
0x2107   :  { %2681 = vadd.xlane.f32.xlu1 %v2680_v22 }
0x2118   :  { %2855 = vperm.xlu1 %3311, %v3107_v17  }
0x211c   :  { %2880 = vperm.xlu1 %3311, %v2863_v56  }
0x2190   :  { %v2682_v52 = vpop.xlane.xlu1 %2681 }
0x2191   :  { %v2683_v5 = vrot.slane %v2682_v52, 4 }
0x2193   :  { %v2684_v19 = vadd.f32 %v2683_v5, %v2682_v52 }
0x2194   :  { %v2856_v7 = vpop.permute.xlu1 %2855 }
0x2195   :  { %v2685_v18 = vrot.slane %v2684_v19, 2  ;;  %v2858_v27 = vadd.f32 %v2856_v7, %v2849_v45  ;;  %v2859_v26 = vadd.f32 %v2856_v7, %v2850_v40 }
0x2197   :  { %vm2866_vm10 = vcmp.ge.f32.partialorder %v2859_v26, 0.0  ;;  %v2871_v10 = vmul.f32 %v4500_v25, %v2859_v26  ;;  %vm2865_vm11 = vcmp.ge.f32.partialorder %v2858_v27, 0.0  ;;  %v2870_v58 = vmul.f32 %v4500_v25, %v2858_v27 }
0x2198   :  { %v2686_v43 = vadd.f32 %v2685_v18, %v2684_v19 }
0x2199   :  { %v2875_v54 = vsel %vm2866_vm10, %v2859_v26, %v2871_v10  ;;  %v2874_v14 = vsel %vm2865_vm11, %v2858_v27, %v2870_v58 }
0x219a   :  { %2916 = vmatprep.subr.mxu0 %v2875_v54  ;;  %v2687_v6 = vrot.slane %v2686_v43, 1 }
0x219b   :  { %2917 = vmatpush1.msra.mxu0 %v2874_v14 }
0x219c   :  { %3135 = vmatmul.mubr.msk.f32.vlgmr.msra.gmra.mxu0 %vm549_vm1, %v2862_v2  ;;  %v2688_v21 = vadd.f32 %v2687_v6, %v2686_v43 }
0x219e   :  { %3277 = vpush %v2688_v21 }
0x21cf   :  { %s3278_s13 = spop %3277 }
0x21d0   :  { %s2692_s15 = smul.f32 0.00048828125, %s3278_s13 }
0x21d2   :  { %s2693_s3 = sadd.f32 1e-08, %s2692_s15 }
0x21d4   :  { %v2694_v48 = vstv %s2693_s3 }
0x21d5   :  { %3358 = vrsqrt.f32 %v2694_v48 }
0x21e2   :  { %v3359_v60 = vpop.eup %3358 }
0x21e3   :  { %3279 = vpush %v3359_v60 }
0x2214   :  { %s3280_s30 = spop %3279 }
0x2215   :  { %v2697_v11 = vstv %s3280_s30 }
0x2216   :  { %v2698_v15 = vmul.f32 %v2697_v11, %v2676_v44  ;;  %v2699_v33 = vmul.f32 %v2697_v11, %v2677_v3 }
0x2218   :  { %v2700_v38 = vmul.f32 %v2698_v15, %v4264_v8  ;;  %v2701_v32 = vmul.f32 %v2699_v33, %v4282_v41  ;;  %v2881_v41 = vpop.permute.xlu1 %2880 }
0x221a   :  { %v2703_v9 = vadd.f32 %v2701_v32, %v4289_v13  ;;  %v2702_v55 = vadd.f32 %v2700_v38, %v4273_v51  ;;  %v1760_v13 = vadd.f32 %v4219_v59, %v4491_v4 }
0x221c   :  { %2806 = vmatprep.subr.mxu1 %v2703_v9 }
0x221d   :  { %2807 = vmatpush1.msra.mxu1 %v2647_v37 }
0x221e   :  { %2808 = vmatprep.subr.mxu1 %v2702_v55 }
0x221f   :  { %2809 = vmatpush1.msra.mxu1 %v2646_v20 }
0x2220   :  { %3134 = vmatmul.mubr.msk.f32.vlgmr.msra.gmra.mxu1 %vm371_vm0, %v4476_v30 }
0x2221   :  { %3021 = vmatprep.mubr.f32.mxu1 %v3469_v61 }
0x225c   :  { %v2952_v31 = vpop.f32.mrf.mxu0 }
0x225d   :  { %v2953_v8 = vadd.f32 %v2952_v31, %v2881_v41 }
0x225e   :  { %v2954_v39 = vpop.f32.mrf.mxu0 }
0x225f   :  { %3028 = vst [vmem:[#allocation14] sm:$0xff] %v2953_v8  ;;  %v2955_v0 = vadd.f32 %v2954_v39, %v2881_v41 }
0x2261   :  { %3030 = vst [vmem:[#allocation14 + $0x8] sm:$0xff] %v2955_v0 }
0x22e0   :  { %v2844_v34 = vpop.f32.mrf.mxu1 }
0x22e1   :  { %v2851_v51 = vadd.f32 %v2844_v34, %v1760_v13 }
0x22e2   :  { %v2846_v1 = vpop.f32.mrf.mxu1 }
0x22e3   :  { %v2860_v24 = vadd.f32 %v2856_v7, %v2851_v51  ;;  %v2852_v30 = vadd.f32 %v2846_v1, %v1762_v42 }
0x22e5   :  { %v2861_v47 = vadd.f32 %v2856_v7, %v2852_v30  ;;  %v2872_v61 = vmul.f32 %v4500_v25, %v2860_v24  ;;  %vm2867_vm12 = vcmp.ge.f32.partialorder %v2860_v24, 0.0 }
0x22e7   :  { %vm2868_vm0 = vcmp.ge.f32.partialorder %v2861_v47, 0.0  ;;  %v2873_v46 = vmul.f32 %v4500_v25, %v2861_v47  ;;  %v2876_v44 = vsel %vm2867_vm12, %v2860_v24, %v2872_v61 }
0x22e9   :  { %v2877_v50 = vsel %vm2868_vm0, %v2861_v47, %v2873_v46 }
0x22ea   :  { %2987 = vmatprep.subr.mxu1 %v2877_v50 }
0x22eb   :  { %2988 = vmatpush1.msra.mxu1 %v2876_v44 }
0x22ec   :  { %3136 = vmatmul.mubr.msk.f32.vlgmr.msra.gmra.mxu1 %vm549_vm1, %v2862_v2 }
0x23ac   :  { %v3023_v59 = vpop.f32.mrf.mxu1 }
0x23ad   :  { %v3024_v63 = vadd.f32 %v3023_v59, %v2881_v41 }
0x23ae   :  { %v3025_v3 = vpop.f32.mrf.mxu1 }
0x23af   :  { %3032 = vst [vmem:[#allocation14 + $0x10] sm:$0xff] %v3024_v63  ;;  %v3026_v16 = vadd.f32 %v3025_v3, %v2881_v41 }
0x23b1   :  { %3034 = vst [vmem:[#allocation14 + $0x18] sm:$0xff] %v3026_v16 }
0x23b2   :  { %3443 = shalt.err (!%p3440_p6)
}
0x23b3   :  { %s3477_s8 = smov 128   ;;  %s3478_s4 = smov 8  }
0x23b4   :  { %3046 = dma.vmem_to_hbm [thread:$0]  %s3041_s27, 512, %s4558_s26, [#allocation4], %s3477_s8, %s3477_s8, %s3478_s4  }
0x23b5   :  { %3460 = dma.done.wait [#allocation4], 512  }
0x23b6   :  { %3461 = vsyncadd [#allocation4], 4294966784 }
0x23b7   :  { %3050 = vsyncpa [#allocation4], 1 }
0x23b8   :  { %3051 = vsyncpa [#allocation5], 1 }
0x23b9   :  { %3052 = vsyncpa [#allocation7], 1 }
0x23ba   :  { %3053 = vsyncpa [#allocation10], 1 }
0x23bb   :  { %3054 = vsyncpa [#allocation13], 1 }

</bundles_post_ra>
